<compile_context>
chip_gen: v5e
topology: v5e:2x2
jax: 0.10.0
libtpu: 0.0.40
codegen_flags: <defaults>
</compile_context>

<pallas_src>
import functools

import jax
import jax.numpy as jnp
from jax.experimental import pallas as pl
from jax.experimental.pallas import tpu as pltpu

BLOCK_LN_EPS = 1e-6   # timm Block: LayerNorm(eps=1e-6)
FINAL_LN_EPS = 1e-5   # encoder.layer_norm: nn.LayerNorm default eps


# --------------------------------------------------------------------------
# Fused transformer-stack kernel (grid over layers, activation resident in VMEM)
# --------------------------------------------------------------------------
def _vit_stack_kernel(
    # inputs (order must match in_specs)
    patches_ref, pw_ref, pb_ref, cls_ref, pos_ref,
    ln1g_ref, ln1b_ref, wqkv_ref, wo_ref, bo_ref,
    ln2g_ref, ln2b_ref, w1_ref, b1_ref, w2_ref, b2_ref,
    lnfg_ref, lnfb_ref, hw_ref, hb_ref,
    # output
    logits_ref,
    # scratch
    x_vmem,
    *, num_heads, seq_len, num_patches,
):
    layer = pl.program_id(0)
    B, S_pad, C = x_vmem.shape
    H = num_heads
    D = C // H
    scale = 1.0 / (D ** 0.5)
    bf16 = jnp.bfloat16
    f32 = jnp.float32

    def layer_norm(v, g, b, eps):
        mu = jnp.mean(v, axis=-1, keepdims=True)
        vc = v - mu
        var = jnp.mean(vc * vc, axis=-1, keepdims=True)
        return vc * jax.lax.rsqrt(var + eps) * g + b

    # ---- layer 0: patch embedding + pos embedding + cls token ----
    @pl.when(layer == 0)
    def _():
        T = num_patches
        p = patches_ref[...]                                   # (B, T, PD) f32
        PD = p.shape[-1]
        emb = jnp.dot(p.reshape(B * T, PD).astype(bf16), pw_ref[...],
                      preferred_element_type=f32) + pb_ref[...]
        emb = emb.reshape(B, T, C) + pos_ref[...]              # (1,T,C) bcast
        x_vmem[...] = jnp.zeros((B, S_pad, C), f32)
        x_vmem[:, 0:1, :] = jnp.broadcast_to(cls_ref[...][None, :, :], (B, 1, C))
        x_vmem[:, 1:T + 1, :] = emb

    # ---- one pre-LN transformer block over the whole batch ----
    x = x_vmem[...].reshape(B * S_pad, C)                      # f32 residual stream

    h = layer_norm(x, ln1g_ref[0], ln1b_ref[0], BLOCK_LN_EPS).astype(bf16)

    # fused QKV projection: one dense (C, 3C) matmul (qkv_bias=False in timm Block)
    qkv = jnp.dot(h, wqkv_ref[0], preferred_element_type=f32)  # (B*S, 3C)
    qkv = qkv.reshape(B, S_pad, 3 * C)

    key_valid = jax.lax.broadcasted_iota(jnp.int32, (1, 1, S_pad), 2) < seq_len

    head_outs = []
    for hd in range(H):                                        # static, heads only
        qh = qkv[:, :, hd * D:(hd + 1) * D].astype(bf16)
        kh = qkv[:, :, C + hd * D:C + (hd + 1) * D].astype(bf16)
        vh = qkv[:, :, 2 * C + hd * D:2 * C + (hd + 1) * D].astype(bf16)
        s = jnp.einsum('bqd,bkd->bqk', qh, kh,
                       preferred_element_type=f32) * scale     # (B, S, S)
        s = jnp.where(key_valid, s, jnp.float32(-1e30))        # mask padded keys
        s = s - jnp.max(s, axis=-1, keepdims=True)
        e = jnp.exp(s)
        pattn = e * pl.reciprocal(jnp.sum(e, axis=-1, keepdims=True), approx=True)
        head_outs.append(
            jnp.einsum('bqk,bkd->bqd', pattn.astype(bf16), vh,
                       preferred_element_type=f32))
    attn = jnp.concatenate(head_outs, axis=-1).reshape(B * S_pad, C)

    # fused output projection: one dense (C, C) matmul
    attn = jnp.dot(attn.astype(bf16), wo_ref[0],
                   preferred_element_type=f32) + bo_ref[0]
    x = x + attn                                               # residual 1

    h2 = layer_norm(x, ln2g_ref[0], ln2b_ref[0], BLOCK_LN_EPS).astype(bf16)
    m = jnp.dot(h2, w1_ref[0], preferred_element_type=f32) + b1_ref[0]
    # TODO(synk): PyTorch nn.GELU is exact (erf); tanh approximation used for
    #             robust Mosaic lowering (max abs diff ~1e-3).
    m = jax.nn.gelu(m, approximate=True)
    m = jnp.dot(m.astype(bf16), w2_ref[0], preferred_element_type=f32) + b2_ref[0]
    x = x + m                                                  # residual 2

    x_vmem[...] = x.reshape(B, S_pad, C)

    # ---- last layer: final LayerNorm on the cls token + classification head ----
    @pl.when(layer == pl.num_programs(0) - 1)
    def _():
        cls_tok = x.reshape(B, S_pad, C)[:, 0:1, :].reshape(B, C)
        f = layer_norm(cls_tok, lnfg_ref[...], lnfb_ref[...], FINAL_LN_EPS)
        logits_ref[...] = jnp.dot(f.astype(bf16), hw_ref[...],
                                  preferred_element_type=f32) + hb_ref[...]


def _resident(shape):
    nd = len(shape)
    return pl.BlockSpec(tuple(shape), lambda l, _nd=nd: (0,) * _nd)


def _per_layer(shape_wo_l):
    nd = len(shape_wo_l)
    return pl.BlockSpec((1,) + tuple(shape_wo_l),
                        lambda l, _nd=nd: (l,) + (0,) * _nd)


# --------------------------------------------------------------------------
# Wrapper
# --------------------------------------------------------------------------
def vit_classifier_forward(img, params, *, patch_size, num_heads, num_classes):
    B, in_c, Hh, Ww = img.shape
    emb = params["cls_token"].shape[-1]
    T = params["pos_embedding"].shape[1]
    L = params["w_qkv"].shape[0]
    NCp = params["head_w"].shape[-1]
    S = T + 1
    S_pad = ((S + 7) // 8) * 8

    # space-to-depth patch extraction == Conv2d(k=patch, stride=patch) on flattened
    # (c, i, j) patches; token order (h, w) row-major matches 'b c h w -> (h w) b c'.
    p = patch_size
    hp, wp = Hh // p, Ww // p
    x = img.reshape(B, in_c, hp, p, wp, p)
    x = jnp.transpose(x, (0, 2, 4, 1, 3, 5))                   # (B, hp, wp, c, p, p)
    patches = x.reshape(B, hp * wp, in_c * p * p).astype(jnp.float32)

    bf = jnp.bfloat16
    args = [
        patches,
        params["patch_w"].astype(bf), params["patch_b"],
        params["cls_token"], params["pos_embedding"],
        params["ln1_g"], params["ln1_b"],
        params["w_qkv"].astype(bf), params["w_o"].astype(bf), params["b_o"],
        params["ln2_g"], params["ln2_b"],
        params["w1"].astype(bf), params["b1"],
        params["w2"].astype(bf), params["b2"],
        params["lnf_g"], params["lnf_b"],
        params["head_w"].astype(bf), params["head_b"],
    ]
    in_specs = [
        _resident(patches.shape),
        _resident(params["patch_w"].shape), _resident(params["patch_b"].shape),
        _resident(params["cls_token"].shape), _resident(params["pos_embedding"].shape),
        _per_layer(params["ln1_g"].shape[1:]), _per_layer(params["ln1_b"].shape[1:]),
        _per_layer(params["w_qkv"].shape[1:]), _per_layer(params["w_o"].shape[1:]),
        _per_layer(params["b_o"].shape[1:]),
        _per_layer(params["ln2_g"].shape[1:]), _per_layer(params["ln2_b"].shape[1:]),
        _per_layer(params["w1"].shape[1:]), _per_layer(params["b1"].shape[1:]),
        _per_layer(params["w2"].shape[1:]), _per_layer(params["b2"].shape[1:]),
        _resident(params["lnf_g"].shape), _resident(params["lnf_b"].shape),
        _resident(params["head_w"].shape), _resident(params["head_b"].shape),
    ]

    kernel = functools.partial(_vit_stack_kernel, num_heads=num_heads,
                               seq_len=S, num_patches=T)

    logits_pad = pl.pallas_call(
        kernel,
        out_shape=jax.ShapeDtypeStruct((B, NCp), jnp.float32),
        grid_spec=pltpu.PrefetchScalarGridSpec(
            num_scalar_prefetch=0,
            grid=(L,),
            in_specs=in_specs,
            out_specs=pl.BlockSpec((B, NCp), lambda l: (0, 0)),
            scratch_shapes=[pltpu.VMEM((B, S_pad, emb), jnp.float32)],
        ),
        compiler_params=pltpu.CompilerParams(
            dimension_semantics=("arbitrary",)),
    )(*args)
    return logits_pad[:, :num_classes]


# --------------------------------------------------------------------------
# Deterministic synthetic parameters (no checkpoint load)
# --------------------------------------------------------------------------
def init_params(key, *, emb_dim, num_layer, num_head, patch_size, img_size,
                num_classes, num_classes_padded):
    T = (img_size // patch_size) ** 2
    PD = 3 * patch_size * patch_size
    hidden = 4 * emb_dim
    k = jax.random.split(key, 8)

    def nrm(kk, shape):
        return 0.02 * jax.random.normal(kk, shape, jnp.float32)

    head_w = jnp.zeros((emb_dim, num_classes_padded), jnp.float32)
    head_w = head_w.at[:, :num_classes].set(nrm(k[7], (emb_dim, num_classes)))
    head_b = jnp.zeros((1, num_classes_padded), jnp.float32)

    return dict(
        cls_token=nrm(k[0], (1, emb_dim)),
        pos_embedding=nrm(k[1], (1, T, emb_dim)),
        patch_w=nrm(k[2], (PD, emb_dim)),
        patch_b=jnp.zeros((1, emb_dim), jnp.float32),
        ln1_g=jnp.ones((num_layer, 1, emb_dim), jnp.float32),
        ln1_b=jnp.zeros((num_layer, 1, emb_dim), jnp.float32),
        w_qkv=nrm(k[3], (num_layer, emb_dim, 3 * emb_dim)),
        w_o=nrm(k[4], (num_layer, emb_dim, emb_dim)),
        b_o=jnp.zeros((num_layer, 1, emb_dim), jnp.float32),
        ln2_g=jnp.ones((num_layer, 1, emb_dim), jnp.float32),
        ln2_b=jnp.zeros((num_layer, 1, emb_dim), jnp.float32),
        w1=nrm(k[5], (num_layer, emb_dim, hidden)),
        b1=jnp.zeros((num_layer, 1, hidden), jnp.float32),
        w2=nrm(k[6], (num_layer, hidden, emb_dim)),
        b2=jnp.zeros((num_layer, 1, emb_dim), jnp.float32),
        lnf_g=jnp.ones((1, emb_dim), jnp.float32),
        lnf_b=jnp.zeros((1, emb_dim), jnp.float32),
        head_w=head_w,
        head_b=head_b,
    )


# --------------------------------------------------------------------------
if __name__ == "__main__":
    IMG_SIZE = 16
    PATCH = 4
    EMB = 48           # 3 heads x head_dim 16
    NUM_HEAD = 3
    NUM_LAYER = 2
    BATCH = 2
    NUM_CLASSES = 10
    NC_PAD = 128       # lane-dense head output, sliced back to 10 in the wrapper

    key = jax.random.PRNGKey(0)
    k_img, k_par = jax.random.split(key)
    img = jax.random.normal(k_img, (BATCH, 3, IMG_SIZE, IMG_SIZE), jnp.float32)

    params = init_params(k_par, emb_dim=EMB, num_layer=NUM_LAYER,
                         num_head=NUM_HEAD, patch_size=PATCH, img_size=IMG_SIZE,
                         num_classes=NUM_CLASSES, num_classes_padded=NC_PAD)

    logits = vit_classifier_forward(img, params, patch_size=PATCH,
                                    num_heads=NUM_HEAD, num_classes=NUM_CLASSES)
    logits = jax.block_until_ready(logits)

    assert logits.shape == (BATCH, NUM_CLASSES), logits.shape
    assert bool(jnp.all(jnp.isfinite(logits)))
    print("KERNEL_OK")
</pallas_src>

<mosaic_0001>
module attributes {stable_mosaic.version = 11 : i64} {
  func.func @_vit_stack_kernel(%arg0: i32, %arg1: memref<2x16x48xf32, #tpu.memory_space<vmem>>, %arg2: memref<48x48xbf16, #tpu.memory_space<vmem>>, %arg3: memref<1x48xf32, #tpu.memory_space<vmem>>, %arg4: memref<1x48xf32, #tpu.memory_space<vmem>>, %arg5: memref<1x16x48xf32, #tpu.memory_space<vmem>>, %arg6: memref<1x1x48xf32, #tpu.memory_space<vmem>>, %arg7: memref<1x1x48xf32, #tpu.memory_space<vmem>>, %arg8: memref<1x48x144xbf16, #tpu.memory_space<vmem>>, %arg9: memref<1x48x48xbf16, #tpu.memory_space<vmem>>, %arg10: memref<1x1x48xf32, #tpu.memory_space<vmem>>, %arg11: memref<1x1x48xf32, #tpu.memory_space<vmem>>, %arg12: memref<1x1x48xf32, #tpu.memory_space<vmem>>, %arg13: memref<1x48x192xbf16, #tpu.memory_space<vmem>>, %arg14: memref<1x1x192xf32, #tpu.memory_space<vmem>>, %arg15: memref<1x192x48xbf16, #tpu.memory_space<vmem>>, %arg16: memref<1x1x48xf32, #tpu.memory_space<vmem>>, %arg17: memref<1x48xf32, #tpu.memory_space<vmem>>, %arg18: memref<1x48xf32, #tpu.memory_space<vmem>>, %arg19: memref<48x128xbf16, #tpu.memory_space<vmem>>, %arg20: memref<1x128xf32, #tpu.memory_space<vmem>>, %arg21: memref<2x128xf32, #tpu.memory_space<vmem>>, %arg22: memref<2x24x48xf32, #tpu.memory_space<vmem>>) attributes {dimension_semantics = [#tpu.dimension_semantics<arbitrary>], iteration_bounds = array<i64: 2>, scalar_prefetch = 0 : i64, scratch_operands = 1 : i64, tpu.core_type = #tpu.core_type<tc>, window_params = [{pipeline_mode = #tpu.pipeline_mode<synchronous>, transform_indices = @transform_0, window_bounds = array<i64: 2, 16, 48>}, {pipeline_mode = #tpu.pipeline_mode<synchronous>, transform_indices = @transform_1, window_bounds = array<i64: 48, 48>}, {pipeline_mode = #tpu.pipeline_mode<synchronous>, transform_indices = @transform_2, window_bounds = array<i64: 1, 48>}, {pipeline_mode = #tpu.pipeline_mode<synchronous>, transform_indices = @transform_3, window_bounds = array<i64: 1, 48>}, {pipeline_mode = #tpu.pipeline_mode<synchronous>, transform_indices = @transform_4, window_bounds = array<i64: 1, 16, 48>}, {transform_indices = @transform_5, window_bounds = array<i64: 1, 1, 48>}, {transform_indices = @transform_6, window_bounds = array<i64: 1, 1, 48>}, {transform_indices = @transform_7, window_bounds = array<i64: 1, 48, 144>}, {transform_indices = @transform_8, window_bounds = array<i64: 1, 48, 48>}, {transform_indices = @transform_9, window_bounds = array<i64: 1, 1, 48>}, {transform_indices = @transform_10, window_bounds = array<i64: 1, 1, 48>}, {transform_indices = @transform_11, window_bounds = array<i64: 1, 1, 48>}, {transform_indices = @transform_12, window_bounds = array<i64: 1, 48, 192>}, {transform_indices = @transform_13, window_bounds = array<i64: 1, 1, 192>}, {transform_indices = @transform_14, window_bounds = array<i64: 1, 192, 48>}, {transform_indices = @transform_15, window_bounds = array<i64: 1, 1, 48>}, {pipeline_mode = #tpu.pipeline_mode<synchronous>, transform_indices = @transform_16, window_bounds = array<i64: 1, 48>}, {pipeline_mode = #tpu.pipeline_mode<synchronous>, transform_indices = @transform_17, window_bounds = array<i64: 1, 48>}, {pipeline_mode = #tpu.pipeline_mode<synchronous>, transform_indices = @transform_18, window_bounds = array<i64: 48, 128>}, {pipeline_mode = #tpu.pipeline_mode<synchronous>, transform_indices = @transform_19, window_bounds = array<i64: 1, 128>}, {pipeline_mode = #tpu.pipeline_mode<synchronous>, transform_indices = @transform_20, window_bounds = array<i64: 2, 128>}]} {
    %c0_i32 = arith.constant 0 : i32
    %0 = arith.cmpi eq, %arg0, %c0_i32 : i32
    %1 = arith.extui %0 : i1 to i32
    %c0_i32_0 = arith.constant 0 : i32
    %2 = arith.cmpi ne, %1, %c0_i32_0 : i32
    scf.if %2 {
      %c0_75 = arith.constant 0 : index
      %c0_76 = arith.constant 0 : index
      %c0_77 = arith.constant 0 : index
      %182 = vector.load %arg1[%c0_75, %c0_76, %c0_77] : memref<2x16x48xf32, #tpu.memory_space<vmem>>, vector<2x16x48xf32>
      %183 = vector.shape_cast %182 : vector<2x16x48xf32> to vector<32x48xf32>
      %184 = arith.truncf %183 : vector<32x48xf32> to vector<32x48xbf16>
      %c0_78 = arith.constant 0 : index
      %c0_79 = arith.constant 0 : index
      %185 = vector.load %arg2[%c0_78, %c0_79] : memref<48x48xbf16, #tpu.memory_space<vmem>>, vector<48x48xbf16>
      %cst_80 = arith.constant dense<0.000000e+00> : vector<32x48xf32>
      %186 = tpu.matmul %184, %185, %cst_80 {dimension_numbers = #tpu.dot_dimension_numbers<[1], [0], [0], [1], [0, 0, 1, 1], [], []>} : vector<32x48xbf16>, vector<48x48xbf16>, vector<32x48xf32> -> vector<32x48xf32>
      %c0_81 = arith.constant 0 : index
      %c0_82 = arith.constant 0 : index
      %187 = vector.load %arg3[%c0_81, %c0_82] : memref<1x48xf32, #tpu.memory_space<vmem>>, vector<1x48xf32>
      %188 = vector.broadcast %187 : vector<1x48xf32> to vector<32x48xf32>
      %189 = arith.addf %186, %188 : vector<32x48xf32>
      %190 = vector.shape_cast %189 : vector<32x48xf32> to vector<2x16x48xf32>
      %c0_83 = arith.constant 0 : index
      %c0_84 = arith.constant 0 : index
      %c0_85 = arith.constant 0 : index
      %191 = vector.load %arg5[%c0_83, %c0_84, %c0_85] : memref<1x16x48xf32, #tpu.memory_space<vmem>>, vector<1x16x48xf32>
      %192 = vector.broadcast %191 : vector<1x16x48xf32> to vector<2x16x48xf32>
      %193 = arith.addf %190, %192 : vector<2x16x48xf32>
      %cst_86 = arith.constant 0.000000e+00 : f32
      %194 = vector.broadcast %cst_86 : f32 to vector<2x24x48xf32>
      %c0_87 = arith.constant 0 : index
      %c0_88 = arith.constant 0 : index
      %c0_89 = arith.constant 0 : index
      %195 = vector.load %arg22[%c0_87, %c0_88, %c0_89] : memref<2x24x48xf32, #tpu.memory_space<vmem>>, vector<2x24x48xf32>
      tpu.vector_store %arg22[%c0_87, %c0_88, %c0_89], %194 {strides = array<i32>} : memref<2x24x48xf32, #tpu.memory_space<vmem>>, vector<2x24x48xf32>,
      %c0_90 = arith.constant 0 : index
      %c0_91 = arith.constant 0 : index
      %196 = vector.load %arg4[%c0_90, %c0_91] : memref<1x48xf32, #tpu.memory_space<vmem>>, vector<1x48xf32>
      %197 = vector.shape_cast %196 : vector<1x48xf32> to vector<1x1x48xf32>
      %198 = vector.shape_cast %197 : vector<1x1x48xf32> to vector<1x1x48xf32>
      %199 = vector.broadcast %198 : vector<1x1x48xf32> to vector<2x1x48xf32>
      %c0_92 = arith.constant 0 : index
      %c0_93 = arith.constant 0 : index
      %c0_94 = arith.constant 0 : index
      %200 = vector.load %arg22[%c0_92, %c0_93, %c0_94] : memref<2x24x48xf32, #tpu.memory_space<vmem>>, vector<2x1x48xf32>
      tpu.vector_store %arg22[%c0_92, %c0_93, %c0_94], %199 {strides = array<i32>} : memref<2x24x48xf32, #tpu.memory_space<vmem>>, vector<2x1x48xf32>,
      %c0_95 = arith.constant 0 : index
      %c1 = arith.constant 1 : index
      %c0_96 = arith.constant 0 : index
      %201 = vector.load %arg22[%c0_95, %c1, %c0_96] : memref<2x24x48xf32, #tpu.memory_space<vmem>>, vector<2x16x48xf32>
      tpu.vector_store %arg22[%c0_95, %c1, %c0_96], %193 {strides = array<i32>} : memref<2x24x48xf32, #tpu.memory_space<vmem>>, vector<2x16x48xf32>,
    } else {
    }
    %c0 = arith.constant 0 : index
    %c0_1 = arith.constant 0 : index
    %c0_2 = arith.constant 0 : index
    %3 = vector.load %arg22[%c0, %c0_1, %c0_2] : memref<2x24x48xf32, #tpu.memory_space<vmem>>, vector<2x24x48xf32>
    %4 = vector.shape_cast %3 : vector<2x24x48xf32> to vector<48x48xf32>
    %c0_3 = arith.constant 0 : index
    %c0_4 = arith.constant 0 : index
    %c0_5 = arith.constant 0 : index
    %5 = vector.load %arg6[%c0_3, %c0_4, %c0_5] : memref<1x1x48xf32, #tpu.memory_space<vmem>>, vector<1x1x48xf32>
    %6 = vector.shape_cast %5 : vector<1x1x48xf32> to vector<1x48xf32>
    %c0_6 = arith.constant 0 : index
    %c0_7 = arith.constant 0 : index
    %c0_8 = arith.constant 0 : index
    %7 = vector.load %arg7[%c0_6, %c0_7, %c0_8] : memref<1x1x48xf32, #tpu.memory_space<vmem>>, vector<1x1x48xf32>
    %8 = vector.shape_cast %7 : vector<1x1x48xf32> to vector<1x48xf32>
    %cst = arith.constant dense<0.000000e+00> : vector<48xf32>
    %9 = vector.multi_reduction <add>, %4, %cst [1] : vector<48x48xf32> to vector<48xf32>
    %10 = vector.shape_cast %9 : vector<48xf32> to vector<48x1xf32>
    %cst_9 = arith.constant 4.800000e+01 : f32
    %11 = vector.broadcast %cst_9 : f32 to vector<48x1xf32>
    %12 = arith.divf %10, %11 : vector<48x1xf32>
    %13 = vector.broadcast %12 : vector<48x1xf32> to vector<48x48xf32>
    %14 = arith.subf %4, %13 : vector<48x48xf32>
    %15 = arith.mulf %14, %14 : vector<48x48xf32>
    %cst_10 = arith.constant dense<0.000000e+00> : vector<48xf32>
    %16 = vector.multi_reduction <add>, %15, %cst_10 [1] : vector<48x48xf32> to vector<48xf32>
    %17 = vector.shape_cast %16 : vector<48xf32> to vector<48x1xf32>
    %cst_11 = arith.constant 4.800000e+01 : f32
    %18 = vector.broadcast %cst_11 : f32 to vector<48x1xf32>
    %19 = arith.divf %17, %18 : vector<48x1xf32>
    %cst_12 = arith.constant 9.99999997E-7 : f32
    %20 = vector.broadcast %cst_12 : f32 to vector<48x1xf32>
    %21 = arith.addf %19, %20 : vector<48x1xf32>
    %22 = math.rsqrt %21 : vector<48x1xf32>
    %23 = vector.broadcast %22 : vector<48x1xf32> to vector<48x48xf32>
    %24 = arith.mulf %14, %23 : vector<48x48xf32>
    %25 = vector.broadcast %6 : vector<1x48xf32> to vector<48x48xf32>
    %26 = arith.mulf %24, %25 : vector<48x48xf32>
    %27 = vector.broadcast %8 : vector<1x48xf32> to vector<48x48xf32>
    %28 = arith.addf %26, %27 : vector<48x48xf32>
    %29 = arith.truncf %28 : vector<48x48xf32> to vector<48x48xbf16>
    %c0_13 = arith.constant 0 : index
    %c0_14 = arith.constant 0 : index
    %c0_15 = arith.constant 0 : index
    %30 = vector.load %arg8[%c0_13, %c0_14, %c0_15] : memref<1x48x144xbf16, #tpu.memory_space<vmem>>, vector<1x48x144xbf16>
    %31 = vector.shape_cast %30 : vector<1x48x144xbf16> to vector<48x144xbf16>
    %cst_16 = arith.constant dense<0.000000e+00> : vector<48x144xf32>
    %32 = tpu.matmul %29, %31, %cst_16 {dimension_numbers = #tpu.dot_dimension_numbers<[1], [0], [0], [1], [0, 0, 1, 1], [], []>} : vector<48x48xbf16>, vector<48x144xbf16>, vector<48x144xf32> -> vector<48x144xf32>
    %33 = vector.shape_cast %32 : vector<48x144xf32> to vector<2x24x144xf32>
    %34 = tpu.iota {dimensions = array<i32: 2>} : vector<1x1x24xi32>
    %c17_i32 = arith.constant 17 : i32
    %35 = vector.broadcast %c17_i32 : i32 to vector<1x1x24xi32>
    %36 = arith.cmpi slt, %34, %35 : vector<1x1x24xi32>
    %37 = vector.extract_strided_slice %33 {offsets = [0, 0, 0], sizes = [2, 24, 16], strides = [1, 1, 1]} : vector<2x24x144xf32> to vector<2x24x16xf32>
    %38 = arith.truncf %37 : vector<2x24x16xf32> to vector<2x24x16xbf16>
    %39 = vector.extract_strided_slice %33 {offsets = [0, 0, 48], sizes = [2, 24, 16], strides = [1, 1, 1]} : vector<2x24x144xf32> to vector<2x24x16xf32>
    %40 = arith.truncf %39 : vector<2x24x16xf32> to vector<2x24x16xbf16>
    %41 = vector.extract_strided_slice %33 {offsets = [0, 0, 96], sizes = [2, 24, 16], strides = [1, 1, 1]} : vector<2x24x144xf32> to vector<2x24x16xf32>
    %42 = arith.truncf %41 : vector<2x24x16xf32> to vector<2x24x16xbf16>
    "tpu.trace_start"() <{level = 10 : i32, message = "bqd,bkd->bqk"}> : () -> ()
    %cst_17 = arith.constant dense<0.000000e+00> : vector<2x24x24xf32>
    %43 = tpu.matmul %38, %40, %cst_17 {dimension_numbers = #tpu.dot_dimension_numbers<[2], [2], [1], [1], [0, 0, 0, 1, 1, 1], [0], [0]>} : vector<2x24x16xbf16>, vector<2x24x16xbf16>, vector<2x24x24xf32> -> vector<2x24x24xf32>
    "tpu.trace_stop"() : () -> ()
    %cst_18 = arith.constant 2.500000e-01 : f32
    %44 = vector.broadcast %cst_18 : f32 to vector<2x24x24xf32>
    %45 = arith.mulf %43, %44 : vector<2x24x24xf32>
    %cst_19 = arith.constant -1.000000e+30 : f32
    %46 = vector.shape_cast %36 : vector<1x1x24xi1> to vector<1x1x24xi1>
    %47 = vector.broadcast %46 : vector<1x1x24xi1> to vector<2x24x24xi1>
    %48 = vector.broadcast %cst_19 : f32 to vector<2x24x24xf32>
    %49 = arith.select %47, %45, %48 : vector<2x24x24xi1>, vector<2x24x24xf32>
    %cst_20 = arith.constant dense<0xFF800000> : vector<2x24xf32>
    %50 = vector.multi_reduction <maximumf>, %49, %cst_20 [2] : vector<2x24x24xf32> to vector<2x24xf32>
    %51 = vector.shape_cast %50 : vector<2x24xf32> to vector<2x24x1xf32>
    %52 = vector.broadcast %51 : vector<2x24x1xf32> to vector<2x24x24xf32>
    %53 = arith.subf %49, %52 : vector<2x24x24xf32>
    %54 = math.exp %53 : vector<2x24x24xf32>
    %cst_21 = arith.constant dense<0.000000e+00> : vector<2x24xf32>
    %55 = vector.multi_reduction <add>, %54, %cst_21 [2] : vector<2x24x24xf32> to vector<2x24xf32>
    %56 = vector.shape_cast %55 : vector<2x24xf32> to vector<2x24x1xf32>
    %57 = tpu.reciprocal %56 {approx = true} : vector<2x24x1xf32> -> vector<2x24x1xf32>
    %58 = vector.broadcast %57 : vector<2x24x1xf32> to vector<2x24x24xf32>
    %59 = arith.mulf %54, %58 : vector<2x24x24xf32>
    %60 = arith.truncf %59 : vector<2x24x24xf32> to vector<2x24x24xbf16>
    "tpu.trace_start"() <{level = 10 : i32, message = "bqk,bkd->bqd"}> : () -> ()
    %cst_22 = arith.constant dense<0.000000e+00> : vector<2x24x16xf32>
    %61 = tpu.matmul %60, %42, %cst_22 {dimension_numbers = #tpu.dot_dimension_numbers<[2], [1], [1], [2], [0, 0, 0, 1, 1, 2], [0], [0]>} : vector<2x24x24xbf16>, vector<2x24x16xbf16>, vector<2x24x16xf32> -> vector<2x24x16xf32>
    "tpu.trace_stop"() : () -> ()
    %62 = vector.extract_strided_slice %33 {offsets = [0, 0, 16], sizes = [2, 24, 16], strides = [1, 1, 1]} : vector<2x24x144xf32> to vector<2x24x16xf32>
    %63 = arith.truncf %62 : vector<2x24x16xf32> to vector<2x24x16xbf16>
    %64 = vector.extract_strided_slice %33 {offsets = [0, 0, 64], sizes = [2, 24, 16], strides = [1, 1, 1]} : vector<2x24x144xf32> to vector<2x24x16xf32>
    %65 = arith.truncf %64 : vector<2x24x16xf32> to vector<2x24x16xbf16>
    %66 = vector.extract_strided_slice %33 {offsets = [0, 0, 112], sizes = [2, 24, 16], strides = [1, 1, 1]} : vector<2x24x144xf32> to vector<2x24x16xf32>
    %67 = arith.truncf %66 : vector<2x24x16xf32> to vector<2x24x16xbf16>
    "tpu.trace_start"() <{level = 10 : i32, message = "bqd,bkd->bqk"}> : () -> ()
    %cst_23 = arith.constant dense<0.000000e+00> : vector<2x24x24xf32>
    %68 = tpu.matmul %63, %65, %cst_23 {dimension_numbers = #tpu.dot_dimension_numbers<[2], [2], [1], [1], [0, 0, 0, 1, 1, 1], [0], [0]>} : vector<2x24x16xbf16>, vector<2x24x16xbf16>, vector<2x24x24xf32> -> vector<2x24x24xf32>
    "tpu.trace_stop"() : () -> ()
    %cst_24 = arith.constant 2.500000e-01 : f32
    %69 = vector.broadcast %cst_24 : f32 to vector<2x24x24xf32>
    %70 = arith.mulf %68, %69 : vector<2x24x24xf32>
    %cst_25 = arith.constant -1.000000e+30 : f32
    %71 = vector.shape_cast %36 : vector<1x1x24xi1> to vector<1x1x24xi1>
    %72 = vector.broadcast %71 : vector<1x1x24xi1> to vector<2x24x24xi1>
    %73 = vector.broadcast %cst_25 : f32 to vector<2x24x24xf32>
    %74 = arith.select %72, %70, %73 : vector<2x24x24xi1>, vector<2x24x24xf32>
    %cst_26 = arith.constant dense<0xFF800000> : vector<2x24xf32>
    %75 = vector.multi_reduction <maximumf>, %74, %cst_26 [2] : vector<2x24x24xf32> to vector<2x24xf32>
    %76 = vector.shape_cast %75 : vector<2x24xf32> to vector<2x24x1xf32>
    %77 = vector.broadcast %76 : vector<2x24x1xf32> to vector<2x24x24xf32>
    %78 = arith.subf %74, %77 : vector<2x24x24xf32>
    %79 = math.exp %78 : vector<2x24x24xf32>
    %cst_27 = arith.constant dense<0.000000e+00> : vector<2x24xf32>
    %80 = vector.multi_reduction <add>, %79, %cst_27 [2] : vector<2x24x24xf32> to vector<2x24xf32>
    %81 = vector.shape_cast %80 : vector<2x24xf32> to vector<2x24x1xf32>
    %82 = tpu.reciprocal %81 {approx = true} : vector<2x24x1xf32> -> vector<2x24x1xf32>
    %83 = vector.broadcast %82 : vector<2x24x1xf32> to vector<2x24x24xf32>
    %84 = arith.mulf %79, %83 : vector<2x24x24xf32>
    %85 = arith.truncf %84 : vector<2x24x24xf32> to vector<2x24x24xbf16>
    "tpu.trace_start"() <{level = 10 : i32, message = "bqk,bkd->bqd"}> : () -> ()
    %cst_28 = arith.constant dense<0.000000e+00> : vector<2x24x16xf32>
    %86 = tpu.matmul %85, %67, %cst_28 {dimension_numbers = #tpu.dot_dimension_numbers<[2], [1], [1], [2], [0, 0, 0, 1, 1, 2], [0], [0]>} : vector<2x24x24xbf16>, vector<2x24x16xbf16>, vector<2x24x16xf32> -> vector<2x24x16xf32>
    "tpu.trace_stop"() : () -> ()
    %87 = vector.extract_strided_slice %33 {offsets = [0, 0, 32], sizes = [2, 24, 16], strides = [1, 1, 1]} : vector<2x24x144xf32> to vector<2x24x16xf32>
    %88 = arith.truncf %87 : vector<2x24x16xf32> to vector<2x24x16xbf16>
    %89 = vector.extract_strided_slice %33 {offsets = [0, 0, 80], sizes = [2, 24, 16], strides = [1, 1, 1]} : vector<2x24x144xf32> to vector<2x24x16xf32>
    %90 = arith.truncf %89 : vector<2x24x16xf32> to vector<2x24x16xbf16>
    %91 = vector.extract_strided_slice %33 {offsets = [0, 0, 128], sizes = [2, 24, 16], strides = [1, 1, 1]} : vector<2x24x144xf32> to vector<2x24x16xf32>
    %92 = arith.truncf %91 : vector<2x24x16xf32> to vector<2x24x16xbf16>
    "tpu.trace_start"() <{level = 10 : i32, message = "bqd,bkd->bqk"}> : () -> ()
    %cst_29 = arith.constant dense<0.000000e+00> : vector<2x24x24xf32>
    %93 = tpu.matmul %88, %90, %cst_29 {dimension_numbers = #tpu.dot_dimension_numbers<[2], [2], [1], [1], [0, 0, 0, 1, 1, 1], [0], [0]>} : vector<2x24x16xbf16>, vector<2x24x16xbf16>, vector<2x24x24xf32> -> vector<2x24x24xf32>
    "tpu.trace_stop"() : () -> ()
    %cst_30 = arith.constant 2.500000e-01 : f32
    %94 = vector.broadcast %cst_30 : f32 to vector<2x24x24xf32>
    %95 = arith.mulf %93, %94 : vector<2x24x24xf32>
    %cst_31 = arith.constant -1.000000e+30 : f32
    %96 = vector.shape_cast %36 : vector<1x1x24xi1> to vector<1x1x24xi1>
    %97 = vector.broadcast %96 : vector<1x1x24xi1> to vector<2x24x24xi1>
    %98 = vector.broadcast %cst_31 : f32 to vector<2x24x24xf32>
    %99 = arith.select %97, %95, %98 : vector<2x24x24xi1>, vector<2x24x24xf32>
    %cst_32 = arith.constant dense<0xFF800000> : vector<2x24xf32>
    %100 = vector.multi_reduction <maximumf>, %99, %cst_32 [2] : vector<2x24x24xf32> to vector<2x24xf32>
    %101 = vector.shape_cast %100 : vector<2x24xf32> to vector<2x24x1xf32>
    %102 = vector.broadcast %101 : vector<2x24x1xf32> to vector<2x24x24xf32>
    %103 = arith.subf %99, %102 : vector<2x24x24xf32>
    %104 = math.exp %103 : vector<2x24x24xf32>
    %cst_33 = arith.constant dense<0.000000e+00> : vector<2x24xf32>
    %105 = vector.multi_reduction <add>, %104, %cst_33 [2] : vector<2x24x24xf32> to vector<2x24xf32>
    %106 = vector.shape_cast %105 : vector<2x24xf32> to vector<2x24x1xf32>
    %107 = tpu.reciprocal %106 {approx = true} : vector<2x24x1xf32> -> vector<2x24x1xf32>
    %108 = vector.broadcast %107 : vector<2x24x1xf32> to vector<2x24x24xf32>
    %109 = arith.mulf %104, %108 : vector<2x24x24xf32>
    %110 = arith.truncf %109 : vector<2x24x24xf32> to vector<2x24x24xbf16>
    "tpu.trace_start"() <{level = 10 : i32, message = "bqk,bkd->bqd"}> : () -> ()
    %cst_34 = arith.constant dense<0.000000e+00> : vector<2x24x16xf32>
    %111 = tpu.matmul %110, %92, %cst_34 {dimension_numbers = #tpu.dot_dimension_numbers<[2], [1], [1], [2], [0, 0, 0, 1, 1, 2], [0], [0]>} : vector<2x24x24xbf16>, vector<2x24x16xbf16>, vector<2x24x16xf32> -> vector<2x24x16xf32>
    "tpu.trace_stop"() : () -> ()
    %112 = tpu.concatenate %61, %86, %111 in 2 : vector<2x24x16xf32>, vector<2x24x16xf32>, vector<2x24x16xf32> -> vector<2x24x48xf32>
    %113 = vector.shape_cast %112 : vector<2x24x48xf32> to vector<48x48xf32>
    %114 = arith.truncf %113 : vector<48x48xf32> to vector<48x48xbf16>
    %c0_35 = arith.constant 0 : index
    %c0_36 = arith.constant 0 : index
    %c0_37 = arith.constant 0 : index
    %115 = vector.load %arg9[%c0_35, %c0_36, %c0_37] : memref<1x48x48xbf16, #tpu.memory_space<vmem>>, vector<1x48x48xbf16>
    %116 = vector.shape_cast %115 : vector<1x48x48xbf16> to vector<48x48xbf16>
    %cst_38 = arith.constant dense<0.000000e+00> : vector<48x48xf32>
    %117 = tpu.matmul %114, %116, %cst_38 {dimension_numbers = #tpu.dot_dimension_numbers<[1], [0], [0], [1], [0, 0, 1, 1], [], []>} : vector<48x48xbf16>, vector<48x48xbf16>, vector<48x48xf32> -> vector<48x48xf32>
    %c0_39 = arith.constant 0 : index
    %c0_40 = arith.constant 0 : index
    %c0_41 = arith.constant 0 : index
    %118 = vector.load %arg10[%c0_39, %c0_40, %c0_41] : memref<1x1x48xf32, #tpu.memory_space<vmem>>, vector<1x1x48xf32>
    %119 = vector.shape_cast %118 : vector<1x1x48xf32> to vector<1x48xf32>
    %120 = vector.broadcast %119 : vector<1x48xf32> to vector<48x48xf32>
    %121 = arith.addf %117, %120 : vector<48x48xf32>
    %122 = arith.addf %4, %121 : vector<48x48xf32>
    %c0_42 = arith.constant 0 : index
    %c0_43 = arith.constant 0 : index
    %c0_44 = arith.constant 0 : index
    %123 = vector.load %arg11[%c0_42, %c0_43, %c0_44] : memref<1x1x48xf32, #tpu.memory_space<vmem>>, vector<1x1x48xf32>
    %124 = vector.shape_cast %123 : vector<1x1x48xf32> to vector<1x48xf32>
    %c0_45 = arith.constant 0 : index
    %c0_46 = arith.constant 0 : index
    %c0_47 = arith.constant 0 : index
    %125 = vector.load %arg12[%c0_45, %c0_46, %c0_47] : memref<1x1x48xf32, #tpu.memory_space<vmem>>, vector<1x1x48xf32>
    %126 = vector.shape_cast %125 : vector<1x1x48xf32> to vector<1x48xf32>
    %cst_48 = arith.constant dense<0.000000e+00> : vector<48xf32>
    %127 = vector.multi_reduction <add>, %122, %cst_48 [1] : vector<48x48xf32> to vector<48xf32>
    %128 = vector.shape_cast %127 : vector<48xf32> to vector<48x1xf32>
    %cst_49 = arith.constant 4.800000e+01 : f32
    %129 = vector.broadcast %cst_49 : f32 to vector<48x1xf32>
    %130 = arith.divf %128, %129 : vector<48x1xf32>
    %131 = vector.broadcast %130 : vector<48x1xf32> to vector<48x48xf32>
    %132 = arith.subf %122, %131 : vector<48x48xf32>
    %133 = arith.mulf %132, %132 : vector<48x48xf32>
    %cst_50 = arith.constant dense<0.000000e+00> : vector<48xf32>
    %134 = vector.multi_reduction <add>, %133, %cst_50 [1] : vector<48x48xf32> to vector<48xf32>
    %135 = vector.shape_cast %134 : vector<48xf32> to vector<48x1xf32>
    %cst_51 = arith.constant 4.800000e+01 : f32
    %136 = vector.broadcast %cst_51 : f32 to vector<48x1xf32>
    %137 = arith.divf %135, %136 : vector<48x1xf32>
    %cst_52 = arith.constant 9.99999997E-7 : f32
    %138 = vector.broadcast %cst_52 : f32 to vector<48x1xf32>
    %139 = arith.addf %137, %138 : vector<48x1xf32>
    %140 = math.rsqrt %139 : vector<48x1xf32>
    %141 = vector.broadcast %140 : vector<48x1xf32> to vector<48x48xf32>
    %142 = arith.mulf %132, %141 : vector<48x48xf32>
    %143 = vector.broadcast %124 : vector<1x48xf32> to vector<48x48xf32>
    %144 = arith.mulf %142, %143 : vector<48x48xf32>
    %145 = vector.broadcast %126 : vector<1x48xf32> to vector<48x48xf32>
    %146 = arith.addf %144, %145 : vector<48x48xf32>
    %147 = arith.truncf %146 : vector<48x48xf32> to vector<48x48xbf16>
    %c0_53 = arith.constant 0 : index
    %c0_54 = arith.constant 0 : index
    %c0_55 = arith.constant 0 : index
    %148 = vector.load %arg13[%c0_53, %c0_54, %c0_55] : memref<1x48x192xbf16, #tpu.memory_space<vmem>>, vector<1x48x192xbf16>
    %149 = vector.shape_cast %148 : vector<1x48x192xbf16> to vector<48x192xbf16>
    %cst_56 = arith.constant dense<0.000000e+00> : vector<48x192xf32>
    %150 = tpu.matmul %147, %149, %cst_56 {dimension_numbers = #tpu.dot_dimension_numbers<[1], [0], [0], [1], [0, 0, 1, 1], [], []>} : vector<48x48xbf16>, vector<48x192xbf16>, vector<48x192xf32> -> vector<48x192xf32>
    %c0_57 = arith.constant 0 : index
    %c0_58 = arith.constant 0 : index
    %c0_59 = arith.constant 0 : index
    %151 = vector.load %arg14[%c0_57, %c0_58, %c0_59] : memref<1x1x192xf32, #tpu.memory_space<vmem>>, vector<1x1x192xf32>
    %152 = vector.shape_cast %151 : vector<1x1x192xf32> to vector<1x192xf32>
    %153 = vector.broadcast %152 : vector<1x192xf32> to vector<48x192xf32>
    %154 = arith.addf %150, %153 : vector<48x192xf32>
    %155 = arith.mulf %154, %154 : vector<48x192xf32>
    %156 = arith.mulf %154, %155 : vector<48x192xf32>
    %cst_60 = arith.constant 4.471500e-02 : f32
    %157 = vector.broadcast %cst_60 : f32 to vector<48x192xf32>
    %158 = arith.mulf %157, %156 : vector<48x192xf32>
    %159 = arith.addf %154, %158 : vector<48x192xf32>
    %cst_61 = arith.constant 0.797884583 : f32
    %160 = vector.broadcast %cst_61 : f32 to vector<48x192xf32>
    %161 = arith.mulf %160, %159 : vector<48x192xf32>
    %162 = math.tanh %161 : vector<48x192xf32>
    %cst_62 = arith.constant 1.000000e+00 : f32
    %163 = vector.broadcast %cst_62 : f32 to vector<48x192xf32>
    %164 = arith.addf %163, %162 : vector<48x192xf32>
    %cst_63 = arith.constant 5.000000e-01 : f32
    %165 = vector.broadcast %cst_63 : f32 to vector<48x192xf32>
    %166 = arith.mulf %165, %164 : vector<48x192xf32>
    %167 = arith.mulf %154, %166 : vector<48x192xf32>
    %168 = arith.truncf %167 : vector<48x192xf32> to vector<48x192xbf16>
    %c0_64 = arith.constant 0 : index
    %c0_65 = arith.constant 0 : index
    %c0_66 = arith.constant 0 : index
    %169 = vector.load %arg15[%c0_64, %c0_65, %c0_66] : memref<1x192x48xbf16, #tpu.memory_space<vmem>>, vector<1x192x48xbf16>
    %170 = vector.shape_cast %169 : vector<1x192x48xbf16> to vector<192x48xbf16>
    %cst_67 = arith.constant dense<0.000000e+00> : vector<48x48xf32>
    %171 = tpu.matmul %168, %170, %cst_67 {dimension_numbers = #tpu.dot_dimension_numbers<[1], [0], [0], [1], [0, 0, 1, 1], [], []>} : vector<48x192xbf16>, vector<192x48xbf16>, vector<48x48xf32> -> vector<48x48xf32>
    %c0_68 = arith.constant 0 : index
    %c0_69 = arith.constant 0 : index
    %c0_70 = arith.constant 0 : index
    %172 = vector.load %arg16[%c0_68, %c0_69, %c0_70] : memref<1x1x48xf32, #tpu.memory_space<vmem>>, vector<1x1x48xf32>
    %173 = vector.shape_cast %172 : vector<1x1x48xf32> to vector<1x48xf32>
    %174 = vector.broadcast %173 : vector<1x48xf32> to vector<48x48xf32>
    %175 = arith.addf %171, %174 : vector<48x48xf32>
    %176 = arith.addf %122, %175 : vector<48x48xf32>
    %177 = vector.shape_cast %176 : vector<48x48xf32> to vector<2x24x48xf32>
    %c0_71 = arith.constant 0 : index
    %c0_72 = arith.constant 0 : index
    %c0_73 = arith.constant 0 : index
    %178 = vector.load %arg22[%c0_71, %c0_72, %c0_73] : memref<2x24x48xf32, #tpu.memory_space<vmem>>, vector<2x24x48xf32>
    tpu.vector_store %arg22[%c0_71, %c0_72, %c0_73], %177 {strides = array<i32>} : memref<2x24x48xf32, #tpu.memory_space<vmem>>, vector<2x24x48xf32>,
    %c1_i32 = arith.constant 1 : i32
    %179 = arith.cmpi eq, %arg0, %c1_i32 : i32
    %180 = arith.extui %179 : i1 to i32
    %c0_i32_74 = arith.constant 0 : i32
    %181 = arith.cmpi ne, %180, %c0_i32_74 : i32
    scf.if %181 {
      %182 = vector.shape_cast %176 : vector<48x48xf32> to vector<2x24x48xf32>
      %183 = vector.extract_strided_slice %182 {offsets = [0, 0, 0], sizes = [2, 1, 48], strides = [1, 1, 1]} : vector<2x24x48xf32> to vector<2x1x48xf32>
      %184 = vector.shape_cast %183 : vector<2x1x48xf32> to vector<2x48xf32>
      %c0_75 = arith.constant 0 : index
      %c0_76 = arith.constant 0 : index
      %185 = vector.load %arg17[%c0_75, %c0_76] : memref<1x48xf32, #tpu.memory_space<vmem>>, vector<1x48xf32>
      %c0_77 = arith.constant 0 : index
      %c0_78 = arith.constant 0 : index
      %186 = vector.load %arg18[%c0_77, %c0_78] : memref<1x48xf32, #tpu.memory_space<vmem>>, vector<1x48xf32>
      %cst_79 = arith.constant dense<0.000000e+00> : vector<2xf32>
      %187 = vector.multi_reduction <add>, %184, %cst_79 [1] : vector<2x48xf32> to vector<2xf32>
      %188 = vector.shape_cast %187 : vector<2xf32> to vector<2x1xf32>
      %cst_80 = arith.constant 4.800000e+01 : f32
      %189 = vector.broadcast %cst_80 : f32 to vector<2x1xf32>
      %190 = arith.divf %188, %189 : vector<2x1xf32>
      %191 = vector.broadcast %190 : vector<2x1xf32> to vector<2x48xf32>
      %192 = arith.subf %184, %191 : vector<2x48xf32>
      %193 = arith.mulf %192, %192 : vector<2x48xf32>
      %cst_81 = arith.constant dense<0.000000e+00> : vector<2xf32>
      %194 = vector.multi_reduction <add>, %193, %cst_81 [1] : vector<2x48xf32> to vector<2xf32>
      %195 = vector.shape_cast %194 : vector<2xf32> to vector<2x1xf32>
      %cst_82 = arith.constant 4.800000e+01 : f32
      %196 = vector.broadcast %cst_82 : f32 to vector<2x1xf32>
      %197 = arith.divf %195, %196 : vector<2x1xf32>
      %cst_83 = arith.constant 9.99999974E-6 : f32
      %198 = vector.broadcast %cst_83 : f32 to vector<2x1xf32>
      %199 = arith.addf %197, %198 : vector<2x1xf32>
      %200 = math.rsqrt %199 : vector<2x1xf32>
      %201 = vector.broadcast %200 : vector<2x1xf32> to vector<2x48xf32>
      %202 = arith.mulf %192, %201 : vector<2x48xf32>
      %203 = vector.broadcast %185 : vector<1x48xf32> to vector<2x48xf32>
      %204 = arith.mulf %202, %203 : vector<2x48xf32>
      %205 = vector.broadcast %186 : vector<1x48xf32> to vector<2x48xf32>
      %206 = arith.addf %204, %205 : vector<2x48xf32>
      %207 = arith.truncf %206 : vector<2x48xf32> to vector<2x48xbf16>
      %c0_84 = arith.constant 0 : index
      %c0_85 = arith.constant 0 : index
      %208 = vector.load %arg19[%c0_84, %c0_85] : memref<48x128xbf16, #tpu.memory_space<vmem>>, vector<48x128xbf16>
      %cst_86 = arith.constant dense<0.000000e+00> : vector<2x128xf32>
      %209 = tpu.matmul %207, %208, %cst_86 {dimension_numbers = #tpu.dot_dimension_numbers<[1], [0], [0], [1], [0, 0, 1, 1], [], []>} : vector<2x48xbf16>, vector<48x128xbf16>, vector<2x128xf32> -> vector<2x128xf32>
      %c0_87 = arith.constant 0 : index
      %c0_88 = arith.constant 0 : index
      %210 = vector.load %arg20[%c0_87, %c0_88] : memref<1x128xf32, #tpu.memory_space<vmem>>, vector<1x128xf32>
      %211 = vector.broadcast %210 : vector<1x128xf32> to vector<2x128xf32>
      %212 = arith.addf %209, %211 : vector<2x128xf32>
      %c0_89 = arith.constant 0 : index
      %c0_90 = arith.constant 0 : index
      %213 = vector.load %arg21[%c0_89, %c0_90] : memref<2x128xf32, #tpu.memory_space<vmem>>, vector<2x128xf32>
      tpu.vector_store %arg21[%c0_89, %c0_90], %212 {strides = array<i32>} : memref<2x128xf32, #tpu.memory_space<vmem>>, vector<2x128xf32>,
    } else {
    }
    return
  }
  func.func @transform_0(%arg0: i32) -> (i32, i32, i32) {
    %c0_i32 = arith.constant 0 : i32
    %c0_i32_0 = arith.constant 0 : i32
    %c0_i32_1 = arith.constant 0 : i32
    %c0_i32_2 = arith.constant 0 : i32
    return %c0_i32, %c0_i32_0, %c0_i32_1 : i32, i32, i32
  }
  func.func @transform_1(%arg0: i32) -> (i32, i32) {
    %c0_i32 = arith.constant 0 : i32
    %c0_i32_0 = arith.constant 0 : i32
    %c0_i32_1 = arith.constant 0 : i32
    return %c0_i32, %c0_i32_0 : i32, i32
  }
  func.func @transform_2(%arg0: i32) -> (i32, i32) {
    %c0_i32 = arith.constant 0 : i32
    %c0_i32_0 = arith.constant 0 : i32
    %c0_i32_1 = arith.constant 0 : i32
    return %c0_i32, %c0_i32_0 : i32, i32
  }
  func.func @transform_3(%arg0: i32) -> (i32, i32) {
    %c0_i32 = arith.constant 0 : i32
    %c0_i32_0 = arith.constant 0 : i32
    %c0_i32_1 = arith.constant 0 : i32
    return %c0_i32, %c0_i32_0 : i32, i32
  }
  func.func @transform_4(%arg0: i32) -> (i32, i32, i32) {
    %c0_i32 = arith.constant 0 : i32
    %c0_i32_0 = arith.constant 0 : i32
    %c0_i32_1 = arith.constant 0 : i32
    %c0_i32_2 = arith.constant 0 : i32
    return %c0_i32, %c0_i32_0, %c0_i32_1 : i32, i32, i32
  }
  func.func @transform_5(%arg0: i32) -> (i32, i32, i32) {
    %c0_i32 = arith.constant 0 : i32
    %c0_i32_0 = arith.constant 0 : i32
    %c0_i32_1 = arith.constant 0 : i32
    return %arg0, %c0_i32, %c0_i32_0 : i32, i32, i32
  }
  func.func @transform_6(%arg0: i32) -> (i32, i32, i32) {
    %c0_i32 = arith.constant 0 : i32
    %c0_i32_0 = arith.constant 0 : i32
    %c0_i32_1 = arith.constant 0 : i32
    return %arg0, %c0_i32, %c0_i32_0 : i32, i32, i32
  }
  func.func @transform_7(%arg0: i32) -> (i32, i32, i32) {
    %c0_i32 = arith.constant 0 : i32
    %c0_i32_0 = arith.constant 0 : i32
    %c0_i32_1 = arith.constant 0 : i32
    return %arg0, %c0_i32, %c0_i32_0 : i32, i32, i32
  }
  func.func @transform_8(%arg0: i32) -> (i32, i32, i32) {
    %c0_i32 = arith.constant 0 : i32
    %c0_i32_0 = arith.constant 0 : i32
    %c0_i32_1 = arith.constant 0 : i32
    return %arg0, %c0_i32, %c0_i32_0 : i32, i32, i32
  }
  func.func @transform_9(%arg0: i32) -> (i32, i32, i32) {
    %c0_i32 = arith.constant 0 : i32
    %c0_i32_0 = arith.constant 0 : i32
    %c0_i32_1 = arith.constant 0 : i32
    return %arg0, %c0_i32, %c0_i32_0 : i32, i32, i32
  }
  func.func @transform_10(%arg0: i32) -> (i32, i32, i32) {
    %c0_i32 = arith.constant 0 : i32
    %c0_i32_0 = arith.constant 0 : i32
    %c0_i32_1 = arith.constant 0 : i32
    return %arg0, %c0_i32, %c0_i32_0 : i32, i32, i32
  }
  func.func @transform_11(%arg0: i32) -> (i32, i32, i32) {
    %c0_i32 = arith.constant 0 : i32
    %c0_i32_0 = arith.constant 0 : i32
    %c0_i32_1 = arith.constant 0 : i32
    return %arg0, %c0_i32, %c0_i32_0 : i32, i32, i32
  }
  func.func @transform_12(%arg0: i32) -> (i32, i32, i32) {
    %c0_i32 = arith.constant 0 : i32
    %c0_i32_0 = arith.constant 0 : i32
    %c0_i32_1 = arith.constant 0 : i32
    return %arg0, %c0_i32, %c0_i32_0 : i32, i32, i32
  }
  func.func @transform_13(%arg0: i32) -> (i32, i32, i32) {
    %c0_i32 = arith.constant 0 : i32
    %c0_i32_0 = arith.constant 0 : i32
    %c0_i32_1 = arith.constant 0 : i32
    return %arg0, %c0_i32, %c0_i32_0 : i32, i32, i32
  }
  func.func @transform_14(%arg0: i32) -> (i32, i32, i32) {
    %c0_i32 = arith.constant 0 : i32
    %c0_i32_0 = arith.constant 0 : i32
    %c0_i32_1 = arith.constant 0 : i32
    return %arg0, %c0_i32, %c0_i32_0 : i32, i32, i32
  }
  func.func @transform_15(%arg0: i32) -> (i32, i32, i32) {
    %c0_i32 = arith.constant 0 : i32
    %c0_i32_0 = arith.constant 0 : i32
    %c0_i32_1 = arith.constant 0 : i32
    return %arg0, %c0_i32, %c0_i32_0 : i32, i32, i32
  }
  func.func @transform_16(%arg0: i32) -> (i32, i32) {
    %c0_i32 = arith.constant 0 : i32
    %c0_i32_0 = arith.constant 0 : i32
    %c0_i32_1 = arith.constant 0 : i32
    return %c0_i32, %c0_i32_0 : i32, i32
  }
  func.func @transform_17(%arg0: i32) -> (i32, i32) {
    %c0_i32 = arith.constant 0 : i32
    %c0_i32_0 = arith.constant 0 : i32
    %c0_i32_1 = arith.constant 0 : i32
    return %c0_i32, %c0_i32_0 : i32, i32
  }
  func.func @transform_18(%arg0: i32) -> (i32, i32) {
    %c0_i32 = arith.constant 0 : i32
    %c0_i32_0 = arith.constant 0 : i32
    %c0_i32_1 = arith.constant 0 : i32
    return %c0_i32, %c0_i32_0 : i32, i32
  }
  func.func @transform_19(%arg0: i32) -> (i32, i32) {
    %c0_i32 = arith.constant 0 : i32
    %c0_i32_0 = arith.constant 0 : i32
    %c0_i32_1 = arith.constant 0 : i32
    return %c0_i32, %c0_i32_0 : i32, i32
  }
  func.func @transform_20(%arg0: i32) -> (i32, i32) {
    %c0_i32 = arith.constant 0 : i32
    %c0_i32_0 = arith.constant 0 : i32
    %c0_i32_1 = arith.constant 0 : i32
    return %c0_i32, %c0_i32_0 : i32, i32
  }
}

</mosaic_0001>

<bundles_post_ra>
// kernel: tpu_custom_call.1
= control target key start
LH: loop header
LB: loop body
LE: loop exit
PB: predicated region body
PF: predicated region fallthrough
CT: control target
= control target key end

     0   :  { %s5116_s0 = inlined_call_operand.vmem [shape: f32[2,16,48], index: 0, kind: input, shape index: {}]   ;;  %s5117_s1 = inlined_call_operand.hbm [shape: bf16[48,48], index: 1, kind: input, shape index: {}]   ;;  %s5118_s2 = inlined_call_operand.vmem [shape: f32[1,48], index: 2, kind: input, shape index: {}]   ;;  %s5119_s3 = inlined_call_operand.hbm [shape: f32[1,48], index: 3, kind: input, shape index: {}]   ;;  %s5120_s4 = inlined_call_operand.hbm [shape: f32[1,16,48], index: 4, kind: input, shape index: {}]   ;;  %s5121_s5 = inlined_call_operand.vmem [shape: f32[2,1,48], index: 5, kind: input, shape index: {}]   ;;  %s5122_s6 = inlined_call_operand.hbm [shape: f32[2,1,48], index: 6, kind: input, shape index: {}]   ;;  %s5123_s7 = inlined_call_operand.vmem [shape: bf16[2,48,144], index: 7, kind: input, shape index: {}]   ;;  %s5124_s8 = inlined_call_operand.vmem [shape: bf16[2,48,48], index: 8, kind: input, shape index: {}]   ;;  %s5125_s9 = inlined_call_operand.hbm [shape: f32[2,1,48], index: 9, kind: input, shape index: {}]   ;;  %s5126_s10 = inlined_call_operand.hbm [shape: f32[2,1,48], index: 10, kind: input, shape index: {}]   ;;  %s5127_s11 = inlined_call_operand.hbm [shape: f32[2,1,48], index: 11, kind: input, shape index: {}]   ;;  %s5128_s12 = inlined_call_operand.vmem [shape: bf16[2,48,192], index: 12, kind: input, shape index: {}]   ;;  %s5129_s13 = inlined_call_operand.hbm [shape: f32[2,1,192], index: 13, kind: input, shape index: {}]   ;;  %s5130_s14 = inlined_call_operand.vmem [shape: bf16[2,192,48], index: 14, kind: input, shape index: {}]   ;;  %s5131_s15 = inlined_call_operand.hbm [shape: f32[2,1,48], index: 15, kind: input, shape index: {}]   ;;  %s5132_s16 = inlined_call_operand.vmem [shape: f32[1,48], index: 16, kind: input, shape index: {}]   ;;  %s5133_s17 = inlined_call_operand.vmem [shape: f32[1,48], index: 17, kind: input, shape index: {}]   ;;  %s5134_s18 = inlined_call_operand.vmem [shape: bf16[48,128], index: 18, kind: input, shape index: {}]   ;;  %s5135_s19 = inlined_call_operand.vmem [shape: f32[1,128], index: 19, kind: input, shape index: {}]   ;;  %s5136_s20 = inlined_call_operand.hbm [shape: f32[2,128], index: 20, kind: output, shape index: {}]  }
   0x1   :  { %5145 = sst [smem:[#allocation28_spill]] %s5116_s0 }
   0x2   :  { %5146 = sst [smem:[#allocation29_spill]] %s5117_s1 }
   0x3   :  { %5147 = sst [smem:[#allocation30_spill]] %s5118_s2 }
   0x4   :  { %5148 = sst [smem:[#allocation31_spill]] %s5119_s3 }
   0x5   :  { %5149 = sst [smem:[#allocation32_spill]] %s5120_s4 }
   0x6   :  { %5150 = sst [smem:[#allocation33_spill]] %s5122_s6 }
   0x7   :  { %5151 = sst [smem:[#allocation34_spill]] %s5124_s8 }
   0x8   :  { %5152 = sst [smem:[#allocation35_spill]] %s5126_s10 }
   0x9   :  { %5153 = sst [smem:[#allocation36_spill]] %s5128_s12 }
   0xa   :  { %5154 = sst [smem:[#allocation37_spill]] %s5129_s13 }
   0xb   :  { %5155 = sst [smem:[#allocation38_spill]] %s5130_s14 }
   0xc   :  { %5156 = sst [smem:[#allocation39_spill]] %s5132_s16 }
   0xd   :  { %5157 = sst [smem:[#allocation40_spill]] %s5133_s17 }
   0xe   :  { %5158 = sst [smem:[#allocation41_spill]] %s5134_s18 }
   0xf   :  { %5159 = sst [smem:[#allocation42_spill]] %s5135_s19 }
  0x10   :  { %5160 = sst [smem:[#allocation43_spill]] %s5136_s20 }
  0x11   :  { %25 = vsyncpa [#allocation4], 0 }
  0x12   :  { %26 = vsyncpa [#allocation7], 0 }
  0x13   :  { %27 = vsyncpa [#allocation10], 0 }
  0x14   :  { %29 = vsyncpa [#allocation10 + $0x1], 0 }
  0x15   :  { %30 = vsyncpa [#allocation13], 0 }
  0x16   :  { %32 = vsyncpa [#allocation13 + $0x1], 0 }
  0x17   :  { %33 = vsyncpa [#allocation16], 0 }
  0x18   :  { %35 = vsyncpa [#allocation16 + $0x1], 0 }
  0x19   :  { %36 = vsyncpa [#allocation5], 0  ;;  %s4066_s1 = smov 0   ;;  %s4068_s22 = smov 0  }
  0x1a   :  { %s4070_s23 = smov 0   ;;  %s4072_s24 = smov 0  }
  0x1b LB: > { %5161 = sst [smem:[#allocation25_spill]] %s3938_s23  ;;  %s4085_s2 = sadd.s32 4294967295, %s3942_s24   ;;  %s3942_s24 = sphi %s4072_s24, %s5196_s24   ;;  %s3938_s23 = sphi %s4070_s23, %s5198_s23   ;;  %s3934_s22 = sphi %s4068_s22, %s5200_s22   ;;  %s3930_s1 = sphi %s4066_s1, %s5199_s1  }
  0x1c   : > { %s4088_s25 = sadd.s32 1, %s3942_s24   ;;  %s180_s26 = sadd.s32 1, %s3938_s23 }
  0x1d   : > { %5162 = sst [smem:[#allocation26_spill]] %s4088_s25  ;;  %s177_s3 = ssub.s32 %s3942_s24, %s4088_s25 }
  0x1e   : > { %p178_p0 = scmp.eq.s32.totalorder %s177_s3, 0  ;;  %p187_p1 = scmp.ne.s32.totalorder %s3938_s23, %s3934_s22 }
  0x1f   : > { %p188_p2 = scmp.eq.s32.totalorder %s3942_s24, 0  ;;  %p193_p3 = scmp.ne.s32.totalorder %s3934_s22, %s3930_s1 }
  0x20   : > { %s4098_s27 = scalar_select %p178_p0, %s3938_s23, %s180_s26  }
  0x21   : > { %p4100_p4 = por %p188_p2, %p187_p1  ;;  %p194_p5 = scmp.eq.s32.totalorder %s4085_s2, 0 }
  0x22   : > { %5163 = sst [smem:[#allocation27_spill]] %s4098_s27  ;;  %p3064_p6 = scmp.ge.s32.totalorder %s3942_s24, 1 }
  0x23   : > { %p543_p7 = scmp.lt.s32.totalorder %s3942_s24, 3  ;;  %p4109_p8 = por %p194_p5, %p193_p3 }
  0x24   : > { %p3065_p9 = scmp.ne.s32.totalorder %s4085_s2, 0  ;;  %s5167_s21 = sld [smem:[#allocation31_spill]] }
  0x25   : > { %p4114_p10 = pnand %p3064_p6, %p543_p7  ;;  %s3944_s3 = smov [#allocation6]  }
  0x26   : > { %s577_s26 = sshll.u32 %s3944_s3, 4  ;;  %p3365_p13 = scmp.lt.s32.totalorder %s3942_s24, 2  ;;  %s578_s26 = int_to_ptr.vmem [resolvable:$true] %s577_s26 }
  0x27   : > { %p3333_p11 = pneg %p4114_p10  ;;  %s4131_s25 = sand.u32 1, %s3942_s24  }
  0x28   : > { %s4134_s20 = sand.u32 1, %s3938_s23   ;;  %p4138_p0 = pnand %p3365_p13, %p4100_p4 }
  0x29   : > { %p4125_p12 = pnand %p3333_p11, %p194_p5  ;;  %s5170_s6 = sld [smem:[#allocation33_spill]] }
  0x2a   : > { %s575_s1 = sshll.u32 %s5167_s21, 4  ;;  %s623_s17 = scalar_lea.vmem [#allocation9], %s4134_s20  ;;  %s576_s1 = int_to_ptr.hbm [resolvable:$true] %s575_s1 }
  0x2b   : > { %3339 = dma.hbm_to_vmem [thread:$0]  (!%p4125_p12), %s576_s1, 16, %s578_s26, [#allocation7]  }
  0x2c   : > { %s630_s16 = sshll.u32 %s623_s17, 4  ;;  %s5142_s23 = scalar_lea.sflag [#allocation10], %s4131_s25  ;;  %s631_s16 = int_to_ptr.vmem [resolvable:$true] %s630_s16 }
  0x2d   : > { %p4152_p2 = pneg %p4138_p0 }
  0x2f   : > { %s626_s3 = scalar_lea.hbm %s5170_s6, %s3942_s24  ;;  %s3627_s17 = scalar_lea.hbm %s5170_s6, 2 }
  0x30   : > { %s628_s19 = sshll.u32 %s626_s3, 4  ;;  %s629_s19 = int_to_ptr.hbm [resolvable:$true] %s628_s19 }
  0x31   : > { %s3620_s18 = sshra.s32 %s629_s19, 4  ;;  %s3621_s18 = int_to_ptr.hbm [resolvable:$true] %s3620_s18 }
  0x32   : > { %s3622_s28 = scalar_lea.hbm %s3621_s18, 1  ;;  %p3628_p6 = scmp.lt.s32.totalorder %s3621_s18, %s5170_s6 }
  0x33   : > { %p3623_p1 = scmp.ne.s32.totalorder %s3621_s18, %s3622_s28  ;;  %p3629_p7 = scmp.lt.s32.totalorder %s3627_s17, %s3622_s28 }
  0x35   : > { %p3625_p3 = pnand %p4152_p2, %p3623_p1  ;;  %p3630_p11 = por %p3629_p7, %p3628_p6 }
  0x37   : > { %p3626_p4 = pneg %p3625_p3 }
  0x39   : > { %p3631_p13 = pnand %p3630_p11, %p3626_p4 }
  0x3b   : > { %3634 = shalt.err (!%p3631_p13)
}
  0x3c   : > { %3346 = dma.hbm_to_vmem [thread:$0]  (!%p4138_p0), %s629_s19, 16, %s631_s16, %s5142_s23  }
  0x3d   : > { %s5172_s10 = sld [smem:[#allocation35_spill]]  ;;  %s673_s8 = scalar_lea.vmem [#allocation12], %s4134_s20 }
  0x3e   : > { %s680_s0 = sshll.u32 %s673_s8, 4  ;;  %s5143_s28 = scalar_lea.sflag [#allocation13], %s4131_s25  ;;  %s681_s0 = int_to_ptr.vmem [resolvable:$true] %s680_s0 }
  0x43   : > { %s676_s26 = scalar_lea.hbm %s5172_s10, %s3942_s24  ;;  %s3657_s16 = scalar_lea.hbm %s5172_s10, 2 }
  0x44   : > { %s678_s18 = sshll.u32 %s676_s26, 4  ;;  %s679_s18 = int_to_ptr.hbm [resolvable:$true] %s678_s18 }
  0x45   : > { %s3650_s17 = sshra.s32 %s679_s18, 4  ;;  %s3651_s17 = int_to_ptr.hbm [resolvable:$true] %s3650_s17 }
  0x46   : > { %s3652_s21 = scalar_lea.hbm %s3651_s17, 1  ;;  %p3658_p6 = scmp.lt.s32.totalorder %s3651_s17, %s5172_s10 }
  0x47   : > { %p3653_p1 = scmp.ne.s32.totalorder %s3651_s17, %s3652_s21  ;;  %p3659_p7 = scmp.lt.s32.totalorder %s3657_s16, %s3652_s21 }
  0x49   : > { %p3655_p3 = pnand %p3653_p1, %p4152_p2  ;;  %p3660_p11 = por %p3659_p7, %p3658_p6 }
  0x4b   : > { %p3656_p4 = pneg %p3655_p3 }
  0x4d   : > { %p3661_p13 = pnand %p3660_p11, %p3656_p4 }
  0x4f   : > { %3664 = shalt.err (!%p3661_p13)
}
  0x50   : > { %3352 = dma.hbm_to_vmem [thread:$0]  (!%p4138_p0), %s679_s18, 16, %s681_s0, %s5143_s28  }
  0x51   : > { %s3069_s8 = sshll.u32 %s4134_s20, 1  ;;  %s3070_s6 = sshll.u32 %s3942_s24, 1 }
  0x52   : > { %s5173_s13 = sld [smem:[#allocation37_spill]]  ;;  %s716_s21 = scalar_lea.vmem [#allocation15], %s3069_s8 }
  0x53   : > { %s724_s16 = sshll.u32 %s716_s21, 4  ;;  %s5144_s19 = scalar_lea.sflag [#allocation16], %s4131_s25  ;;  %s725_s16 = int_to_ptr.vmem [resolvable:$true] %s724_s16 }
  0x58   : > { %s720_s26 = scalar_lea.hbm %s5173_s13, %s3070_s6  ;;  %s3687_s28 = scalar_lea.hbm %s5173_s13, 4 }
  0x59   : > { %s722_s17 = sshll.u32 %s720_s26, 4  ;;  %s723_s17 = int_to_ptr.hbm [resolvable:$true] %s722_s17 }
  0x5a   : > { %s3680_s3 = sshra.s32 %s723_s17, 4  ;;  %s3681_s3 = int_to_ptr.hbm [resolvable:$true] %s3680_s3 }
  0x5b   : > { %s3682_s23 = scalar_lea.hbm %s3681_s3, 2  ;;  %p3688_p6 = scmp.lt.s32.totalorder %s3681_s3, %s5173_s13 }
  0x5c   : > { %p3683_p1 = scmp.ne.s32.totalorder %s3681_s3, %s3682_s23  ;;  %p3689_p7 = scmp.lt.s32.totalorder %s3687_s28, %s3682_s23 }
  0x5e   : > { %p3685_p3 = pnand %p3683_p1, %p4152_p2  ;;  %p3690_p11 = por %p3689_p7, %p3688_p6 }
  0x60   : > { %p3686_p4 = pneg %p3685_p3 }
  0x62   : > { %p3691_p13 = pnand %p3690_p11, %p3686_p4 }
  0x64   : > { %3694 = shalt.err (!%p3691_p13)
}
  0x65   : > { %3358 = dma.hbm_to_vmem [thread:$0]  (!%p4138_p0), %s723_s17, 32, %s725_s16, %s5144_s19  }
  0x66   : > { %s5174_s1 = sld [smem:[#allocation29_spill]]  ;;  %s3945_s21 = smov [#allocation3]  }
  0x67   : > { %s559_s10 = sshll.u32 %s3945_s21, 4  ;;  %s5175_s3 = sld [smem:[#allocation32_spill]]  ;;  %s560_s10 = int_to_ptr.vmem [resolvable:$true] %s559_s10 }
  0x68   : > { %s3946_s18 = smov 64   ;;  %s3947_s12 = smov 4  }
  0x69   : > { %s3948_s17 = smov [#allocation8]   ;;  %s3949_s8 = smov 128  }
  0x6a   : > { %s588_s16 = sshll.u32 %s3948_s17, 4  ;;  %s3950_s6 = smov 8   ;;  %s589_s16 = int_to_ptr.vmem [resolvable:$true] %s588_s16 }
  0x6b   : > { %s659_s19 = scalar_lea.hbm %s5125_s9, %s3942_s24  ;;  %s656_s23 = scalar_lea.vmem [#allocation11], %s4134_s20 }
  0x6c   : > { %s557_s26 = sshll.u32 %s5174_s1, 4  ;;  %s661_s13 = sshll.u32 %s659_s19, 4  ;;  %s558_s26 = int_to_ptr.hbm [resolvable:$true] %s557_s26  ;;  %s662_s13 = int_to_ptr.hbm [resolvable:$true] %s661_s13 }
  0x6d   : > { %s586_s0 = sshll.u32 %s5175_s3, 4  ;;  %s663_s28 = sshll.u32 %s656_s23, 4  ;;  %s587_s0 = int_to_ptr.hbm [resolvable:$true] %s586_s0  ;;  %s664_s28 = int_to_ptr.vmem [resolvable:$true] %s663_s28 }
  0x6e   : > { %3336 = dma.hbm_to_vmem [thread:$0]  (!%p4125_p12), %s558_s26, 384, %s560_s10, [#allocation4], %s3946_s18, %s3946_s18, %s3947_s12  }
  0x6f   : > { %3342 = dma.hbm_to_vmem [thread:$0]  (!%p4125_p12), %s587_s0, 256, %s589_s16, [#allocation7], %s3949_s8, %s3949_s8, %s3950_s6  }
  0x70   : > { %s3770_s3 = sshra.s32 %s662_s13, 4  ;;  %s3777_s27 = scalar_lea.hbm %s5125_s9, 2  ;;  %s3771_s3 = int_to_ptr.hbm [resolvable:$true] %s3770_s3 }
  0x71   : > { %s3772_s26 = scalar_lea.hbm %s3771_s3, 1  ;;  %p3778_p12 = scmp.lt.s32.totalorder %s3771_s3, %s5125_s9 }
  0x72   : > { %p3773_p1 = scmp.ne.s32.totalorder %s3771_s3, %s3772_s26  ;;  %p3779_p6 = scmp.lt.s32.totalorder %s3777_s27, %s3772_s26 }
  0x74   : > { %p3775_p3 = pnand %p3773_p1, %p4152_p2  ;;  %p3780_p7 = por %p3779_p6, %p3778_p12 }
  0x76   : > { %p3776_p4 = pneg %p3775_p3 }
  0x78   : > { %p3781_p11 = pnand %p3780_p7, %p3776_p4 }
  0x7a   : > { %3784 = shalt.err (!%p3781_p11)
}
  0x7b   : > { %s5176_s19 = scalar_lea.sflag [#allocation10], %s4131_s25  ;;  %s693_s8 = scalar_lea.hbm %s5127_s11, %s3942_s24 }
  0x7c   : > { %3349 = dma.hbm_to_vmem [thread:$0]  (!%p4138_p0), %s662_s13, 16, %s664_s28, %s5176_s19  }
  0x7d   : > { %s695_s6 = sshll.u32 %s693_s8, 4  ;;  %s690_s1 = scalar_lea.vmem [#allocation14], %s4134_s20  ;;  %s696_s6 = int_to_ptr.hbm [resolvable:$true] %s695_s6 }
  0x7e   : > { %s697_s21 = sshll.u32 %s690_s1, 4  ;;  %s3800_s23 = sshra.s32 %s696_s6, 4  ;;  %s698_s21 = int_to_ptr.vmem [resolvable:$true] %s697_s21  ;;  %s3801_s23 = int_to_ptr.hbm [resolvable:$true] %s3800_s23 }
  0x7f   : > { %s3802_s3 = scalar_lea.hbm %s3801_s23, 1  ;;  %s3807_s13 = scalar_lea.hbm %s5127_s11, 2 }
  0x80   : > { %p3803_p13 = scmp.ne.s32.totalorder %s3801_s23, %s3802_s3  ;;  %p3808_p4 = scmp.lt.s32.totalorder %s3801_s23, %s5127_s11 }
  0x81   : > { %p3809_p12 = scmp.lt.s32.totalorder %s3807_s13, %s3802_s3 }
  0x82   : > { %p3805_p1 = pnand %p3803_p13, %p4152_p2 }
  0x83   : > { %p3810_p6 = por %p3809_p12, %p3808_p4 }
  0x84   : > { %p3806_p3 = pneg %p3805_p1 }
  0x86   : > { %p3811_p7 = pnand %p3810_p6, %p3806_p3 }
  0x88   : > { %3814 = shalt.err (!%p3811_p7)
}
  0x89   : > { %s5177_s27 = scalar_lea.sflag [#allocation13], %s4131_s25  ;;  %s745_s19 = scalar_lea.hbm %s5131_s15, %s3942_s24 }
  0x8a   : > { %3355 = dma.hbm_to_vmem [thread:$0]  (!%p4138_p0), %s696_s6, 16, %s698_s21, %s5177_s27  }
  0x8b   : > { %s747_s17 = sshll.u32 %s745_s19, 4  ;;  %s742_s16 = scalar_lea.vmem [#allocation17], %s4134_s20  ;;  %s748_s17 = int_to_ptr.hbm [resolvable:$true] %s747_s17 }
  0x8c   : > { %s749_s8 = sshll.u32 %s742_s16, 4  ;;  %s3830_s1 = sshra.s32 %s748_s17, 4  ;;  %s750_s8 = int_to_ptr.vmem [resolvable:$true] %s749_s8  ;;  %s3831_s1 = int_to_ptr.hbm [resolvable:$true] %s3830_s1 }
  0x8d   : > { %s3832_s23 = scalar_lea.hbm %s3831_s1, 1  ;;  %s3837_s6 = scalar_lea.hbm %s5131_s15, 2 }
  0x8e   : > { %p3833_p11 = scmp.ne.s32.totalorder %s3831_s1, %s3832_s23  ;;  %p3838_p3 = scmp.lt.s32.totalorder %s3831_s1, %s5131_s15 }
  0x8f   : > { %p3839_p4 = scmp.lt.s32.totalorder %s3837_s6, %s3832_s23 }
  0x90   : > { %p3835_p13 = pnand %p3833_p11, %p4152_p2 }
  0x91   : > { %p3840_p12 = por %p3839_p4, %p3838_p3 }
  0x92   : > { %p3836_p1 = pneg %p3835_p13 }
  0x94   : > { %p3841_p6 = pnand %p3840_p12, %p3836_p1 }
  0x96   : > { %3844 = shalt.err (!%p3841_p6)
}
  0x97   : > { %s5178_s20 = scalar_lea.sflag [#allocation16], %s4131_s25  ;;  %758 = sbr.rel (%p4114_p10) target bundleno = 2879 (0xb3f), region = 100 }
  0x98   : > { %3361 = dma.hbm_to_vmem [thread:$0]  (!%p4138_p0), %s748_s17, 16, %s750_s8, %s5178_s20  }
  0x9c   : > { %3905 = dma.done.wait (%p194_p5), [#allocation4], 384  }
  0x9d   : > { %3907 = vsyncadd (%p194_p5), [#allocation4], 4294966912 }
  0x9e   : > { %3909 = dma.done.wait (%p194_p5), [#allocation7], 272  }
  0x9f   : > { %3911 = vsyncadd (%p194_p5), [#allocation7], 4294967024  ;;  %s775_s14 = sand.u32 1, %s4085_s2   ;;  %s4277_s24 = sand.u32 1, %s3934_s22  }
  0xa0   : > { %s776_s25 = scalar_lea.sflag [#allocation10], %s775_s14  ;;  %s778_s29 = scalar_lea.vmem [#allocation9], %s4277_s24 }
  0xa1   : > { %3913 = dma.done.wait (%p4109_p8), %s776_s25, 32  }
  0xa2   : > { %3915 = vsyncadd (%p4109_p8), %s776_s25, 4294967264  ;;  %s794_s13 = scalar_lea.sflag [#allocation13], %s775_s14 }
  0xa3   : > { %3917 = dma.done.wait (%p4109_p8), %s794_s13, 32  }
  0xa4   : > { %3919 = vsyncadd (%p4109_p8), %s794_s13, 4294967264  ;;  %s3075_s18 = sshll.u32 %s4277_s24, 1  ;;  %s812_s0 = scalar_lea.sflag [#allocation16], %s775_s14 }
  0xa5   : > { %s4292_s12 = scalar_lea.vmem [#allocation15], %s3075_s18 }
  0xa6   : > { %3921 = dma.done.wait (%p4109_p8), %s812_s0, 48  }
  0xa7   : > { %3923 = vsyncadd (%p4109_p8), %s812_s0, 4294967248  ;;  %p920_p5 = scmp.lt.s32.totalorder %s4085_s2, 1  ;;  %s5179_s10 = sld [smem:[#allocation36_spill]] }
  0xa8   : > { %s5180_s13 = sld [smem:[#allocation34_spill]]  ;;  %s824_s30 = scalar_lea.vmem [#allocation17], %s4277_s24 }
  0xa9   : > { %s4300_s19 = scalar_select %p920_p5, %s4085_s2, 1 }
  0xaa   : > { %s5181_s27 = sld [smem:[#allocation38_spill]] }
  0xab   : > { %s922_s8 = scalar_lea.vmem %s5121_s5, %s4300_s19  ;;  %s3302_s1 = smul.u32 48, %s4300_s19 }
  0xac   : > { %s3303_s23 = smul.u32 24, %s4300_s19  ;;  %s5182_s26 = sld [smem:[#allocation28_spill]] (!%p3065_p9) }
  0xad   : > { %s4311_s4 = scalar_lea.vmem %s5123_s7, %s3302_s1  ;;  %s4316_s20 = scalar_lea.vmem %s5179_s10, %s3302_s1 }
  0xae   : > { %s4321_s18 = scalar_lea.vmem %s5180_s13, %s3303_s23  ;;  %s3304_s0 = smul.u32 96, %s4300_s19 }
  0xaf   : > { %947 = sbr.rel (%p3065_p9) target bundleno = 332 (0x14c), region = 140 }
  0xb0   : > { %s4327_s28 = scalar_lea.vmem %s5181_s27, %s3304_s0  ;;  %s5183_s0 = sld [smem:[#allocation30_spill]] (!%p3065_p9) }
  0xb4   : > { %v3265_v0 = vld [vmem:[#allocation3 + $0x10] sm:$0xff]  ;;  %v3264_v1 = vld [vmem:[#allocation3 + $0x8] sm:$0xff]  ;;  %v3263_v2 = vld [vmem:[#allocation3] sm:$0xff]  ;;  %vm982_vm0 = vcmask 392192   ;;  %vm1021_vm1 = vcmask 385024   ;;  %v3951_v10 = vmov 0.0  }
  0xb5   : > { %994 = vmatpush.bf16.msra.mxu0 %v3265_v0  ;;  %3296 = vmatpush.bf16.msra.mxu1 %v3265_v0  ;;  %v948_v3 = vld [vmem:[%s5182_s26] sm:$0xff]  ;;  %v949_v4 = vld [vmem:[%s5182_s26 + $0x8] sm:$0xff]  ;;  %v950_v5 = vld [vmem:[%s5182_s26 + $0x10] sm:$0xff]  ;;  %1014 = vst.msk [vmem:[#allocation2] sm:$0xff] %vm982_vm0, %v3951_v10 }
  0xb6   : > { %v951_v6 = vld [vmem:[%s5182_s26 + $0x18] sm:$0xff]  ;;  %v952_v7 = vpack.c.bf16 %v949_v4, %v948_v3  ;;  %v1020_v9 = vld [vmem:[#allocation6] sm:$0x1]  ;;  %1015 = vst.msk [vmem:[#allocation2 + $0x8] sm:$0xff] %vm982_vm0, %v3951_v10  ;;  %v3420_v11 = vld [vmem:[%s5183_s0] ss:$0 sm:$0xff] }
  0xb7   : > { %v953_v8 = vpack.c.bf16 %v951_v6, %v950_v5  ;;  %1022 = vst.msk [vmem:[#allocation2] sm:$0x1] %vm1021_vm1, %v1020_v9  ;;  %v1008_v13 = vld [vmem:[#allocation8] sm:$0xff]  ;;  %v1009_v20 = vld [vmem:[#allocation8 + $0x8] sm:$0xff] }
  0xb8   : > { %1016 = vst.msk [vmem:[#allocation2 + $0x10] sm:$0xff] %vm982_vm0, %v3951_v10 }
  0xb9   : > { %995 = vmatpush.bf16.msra.mxu0 %v3264_v1  ;;  %3297 = vmatpush.bf16.msra.mxu1 %v3264_v1  ;;  %1017 = vst.msk [vmem:[#allocation2 + $0x18] sm:$0xff] %vm982_vm0, %v3951_v10 }
  0xba   : > { %1018 = vst.msk [vmem:[#allocation2 + $0x20] sm:$0xff] %vm982_vm0, %v3951_v10 }
  0xbb   : > { %1019 = vst.msk [vmem:[#allocation2 + $0x28] sm:$0xff] %vm982_vm0, %v3951_v10 }
  0xbc   : > { %1023 = vst.msk [vmem:[#allocation2 + $0x18] sm:$0x1] %vm1021_vm1, %v1020_v9 }
  0xbd   : > { %996 = vmatpush.bf16.msra.mxu0 %v3263_v2  ;;  %3298 = vmatpush.bf16.msra.mxu1 %v3263_v2 }
  0xc0   : > { %3093 = vmatmul.msk.bf16.vlgmr.msra.gmra.mxu0 %vm982_vm0, %v952_v7  ;;  %3094 = vmatmul.msk.bf16.vlgmr.msra.gmra.mxu1 %vm982_vm0, %v953_v8 }
 0x13d   : > { %v998_v12 = vpop.f32.mrf.mxu0  ;;  %v1003_v14 = vpop.f32.mrf.mxu1 }
 0x13e   : > { %v999_v15 = vadd.f32 %v3420_v11, %v998_v12  ;;  %v1004_v16 = vadd.f32 %v3420_v11, %v1003_v14 }
 0x140   : > { %v1010_v17 = vadd.f32 %v1008_v13, %v999_v15  ;;  %v1012_v18 = vadd.f32 %v1008_v13, %v1004_v16 }
 0x142   : > { %1024 = vst.msk [vmem:[#allocation2 + $0x1] sm:$0xff] %vm982_vm0, %v1010_v17 }
 0x143   : > { %1026 = vst.msk [vmem:[#allocation2 + $0x19] sm:$0xff] %vm982_vm0, %v1012_v18 }
 0x145   : > { %v1000_v19 = vpop.f32.mrf.mxu0  ;;  %v1005_v21 = vpop.f32.mrf.mxu1 }
 0x146   : > { %v1001_v22 = vadd.f32 %v3420_v11, %v1000_v19  ;;  %v1006_v23 = vadd.f32 %v3420_v11, %v1005_v21 }
 0x148   : > { %v1011_v24 = vadd.f32 %v1009_v20, %v1001_v22  ;;  %v1013_v25 = vadd.f32 %v1009_v20, %v1006_v23 }
 0x14a   : > { %1025 = vst.msk [vmem:[#allocation2 + $0x9] sm:$0xff] %vm982_vm0, %v1011_v24 }
 0x14b   : > { %1027 = vst.msk [vmem:[#allocation2 + $0x21] sm:$0xff] %vm982_vm0, %v1013_v25 }
 0x14c PF: > { %vm1036_vm2 = vcmask 392192   ;;  %v1028_v28 = vld [vmem:[#allocation2] sm:$0xff]  ;;  %v1031_v33 = vld [vmem:[#allocation2 + $0x18] sm:$0xff]  ;;  %v3952_v38 = vmov 48.0   ;;  %v3271_v12 = vld [vmem:[%s4311_s4 + $0x24] sm:$0xf0] }
 0x14d   : > { %v1037_v31 = vsel %vm1036_vm2, %v1028_v28, 0.0  ;;  %v1046_v36 = vsel %vm1036_vm2, %v1031_v33, 0.0  ;;  %3457 = vrcp.f32 %v3952_v38  ;;  %v3113_v11 = vld [vmem:[%s4311_s4 + $0x20] sm:$0xf]  ;;  %v3105_v15 = vld [vmem:[%s4311_s4 + $0x10] sm:$0xf] }
 0x14e   : > { %1038 = vadd.xlane.f32.xlu0 %v1037_v31  ;;  %v3114_v13 = vor.u32 %v3271_v12, %v3113_v11  ;;  %v3269_v16 = vld [vmem:[%s4311_s4 + $0x14] sm:$0xf0]  ;;  %v3097_v23 = vld [vmem:[%s4311_s4] sm:$0xf]  ;;  %v3267_v24 = vld [vmem:[%s4311_s4 + $0x4] sm:$0xf0] }
 0x14f   : > { %v3106_v19 = vor.u32 %v3269_v16, %v3105_v15  ;;  %v3098_v25 = vor.u32 %v3267_v24, %v3097_v23  ;;  %v3268_v11 = vld [vmem:[%s4311_s4 + $0x14] sm:$0xf]  ;;  %v3107_v12 = vld [vmem:[%s4311_s4 + $0x18] sm:$0xf0]  ;;  %v3451_v15 = vld [vmem:[%s922_s8] ss:$0 sm:$0xff] }
 0x150   : > { %1247 = vmatpush.bf16.msra.mxu0 %v3114_v13  ;;  %3299 = vmatpush.bf16.msra.mxu1 %v3114_v13  ;;  %s3954_s19 = smov 64   ;;  %s3955_s8 = smov 112  }
 0x151   : > { %v1030_v27 = vld [vmem:[#allocation2 + $0x10] sm:$0xff]  ;;  %v1029_v34 = vld [vmem:[#allocation2 + $0x8] sm:$0xff]  ;;  %s3957_s1 = smov 96   ;;  %s3958_s3 = smov 32  }
 0x152   : > { %v1032_v26 = vld [vmem:[#allocation2 + $0x20] sm:$0xff]  ;;  %v1043_v30 = vsel %vm1036_vm2, %v1030_v27, 0.0  ;;  %v1033_v32 = vld [vmem:[#allocation2 + $0x28] sm:$0xff]  ;;  %v1040_v37 = vsel %vm1036_vm2, %v1029_v34, 0.0  ;;  %s3959_s23 = smov 16   ;;  %s5190_s6 = scalar_lea.vmem [#allocation14], %s4277_s24 }
 0x153   : > { %v1049_v29 = vsel %vm1036_vm2, %v1032_v26, 0.0  ;;  %1044 = vadd.xlane.f32.xlu1 %v1043_v30  ;;  %v1052_v35 = vsel %vm1036_vm2, %v1033_v32, 0.0  ;;  %v3458_v39 = vpop.eup %3457  ;;  %p3245_p8 = scmp.ne.s32.totalorder %s4085_s2, 1 }
 0x154   : > { %1050 = vadd.xlane.f32.xlu2 %v1049_v29  ;;  %v1056_v40 = vmul.f32 48.0, %v3458_v39  ;;  %vm1060_vm3 = vweird.f32 %v3458_v39  ;;  %1248 = vmatpush.bf16.msra.mxu0 %v3106_v19  ;;  %s5192_s13 = sld [smem:[#allocation39_spill]] (!%p3245_p8) }
 0x155   : > { %3300 = vmatpush.bf16.msra.mxu1 %v3106_v19  ;;  %s5193_s16 = sld [smem:[#allocation40_spill]] (!%p3245_p8) }
 0x156   : > { %1041 = vadd.xlane.f32.xlu0 %v1040_v37  ;;  %v1057_v41 = vsub.f32 1.0, %v1056_v40 }
 0x158   : > { %v1058_v42 = vmul.f32 %v3458_v39, %v1057_v41  ;;  %1249 = vmatpush.bf16.msra.mxu0 %v3098_v25 }
 0x159   : > { %3301 = vmatpush.bf16.msra.mxu1 %v3098_v25 }
 0x15a   : > { %v1059_v43 = vadd.f32 %v3458_v39, %v1058_v42 }
 0x15b   : > { %1047 = vadd.xlane.f32.xlu1 %v1046_v36 }
 0x15c   : > { %1053 = vadd.xlane.f32.xlu2 %v1052_v35  ;;  %v4365_v44 = vsel %vm1060_vm3, %v3458_v39, %v1059_v43 }
 0x1c1   : > { %v1039_v48 = vpop.xlane.xlu0 %1038 }
 0x1c2   : > { %v1062_v49 = vmul.f32 %v4365_v44, %v1039_v48 }
 0x1c4   : > { %v4371_v51 = vsub.f32 %v1028_v28, %v1062_v49 }
 0x1c6   : > { %v1045_v46 = vpop.xlane.xlu1 %1044  ;;  %v1074_v53 = vmul.f32 %v4371_v51, %v4371_v51 }
 0x1c7   : > { %v1051_v45 = vpop.xlane.xlu2 %1050  ;;  %v1064_v47 = vmul.f32 %v4365_v44, %v1045_v46 }
 0x1c8   : > { %v1080_v57 = vsel %vm1036_vm2, %v1074_v53, 0.0  ;;  %v1066_v61 = vmul.f32 %v4365_v44, %v1051_v45 }
 0x1c9   : > { %v4369_v50 = vsub.f32 %v1030_v27, %v1064_v47  ;;  %1081 = vadd.xlane.f32.xlu0 %v1080_v57  ;;  %v1042_v60 = vpop.xlane.xlu0 %1041 }
 0x1ca   : > { %v1063_v62 = vmul.f32 %v4365_v44, %v1042_v60  ;;  %v4393_v4 = vsub.f32 %v1032_v26, %v1066_v61 }
 0x1cb   : > { %v1076_v52 = vmul.f32 %v4369_v50, %v4369_v50 }
 0x1cc   : > { %v4387_v1 = vsub.f32 %v1029_v34, %v1063_v62  ;;  %v1078_v9 = vmul.f32 %v4393_v4, %v4393_v4 }
 0x1cd   : > { %v1086_v54 = vsel %vm1036_vm2, %v1076_v52, 0.0 }
 0x1ce   : > { %1087 = vadd.xlane.f32.xlu2 %v1086_v54  ;;  %v1048_v56 = vpop.xlane.xlu1 %1047  ;;  %v1075_v5 = vmul.f32 %v4387_v1, %v4387_v1  ;;  %v1092_v10 = vsel %vm1036_vm2, %v1078_v9, 0.0 }
 0x1cf   : > { %v1054_v55 = vpop.xlane.xlu2 %1053  ;;  %v1065_v59 = vmul.f32 %v4365_v44, %v1048_v56 }
 0x1d0   : > { %v1067_v58 = vmul.f32 %v4365_v44, %v1054_v55  ;;  %v1083_v8 = vsel %vm1036_vm2, %v1075_v5, 0.0  ;;  %v3270_v5 = vld [vmem:[%s4311_s4 + $0x24] sm:$0xf] }
 0x1d1   : > { %v4385_v0 = vsub.f32 %v1031_v33, %v1065_v59  ;;  %1084 = vadd.xlane.f32.xlu1 %v1083_v8 }
 0x1d2   : > { %v4383_v63 = vsub.f32 %v1033_v32, %v1067_v58 }
 0x1d3   : > { %v1077_v3 = vmul.f32 %v4385_v0, %v4385_v0 }
 0x1d4   : > { %v1079_v2 = vmul.f32 %v4383_v63, %v4383_v63 }
 0x1d5   : > { %v1089_v7 = vsel %vm1036_vm2, %v1077_v3, 0.0 }
 0x1d6   : > { %v1095_v6 = vsel %vm1036_vm2, %v1079_v2, 0.0  ;;  %1090 = vadd.xlane.f32.xlu0 %v1089_v7 }
 0x1d7   : > { %1096 = vadd.xlane.f32.xlu2 %v1095_v6  ;;  %v3115_v6 = vld [vmem:[%s4311_s4 + $0x28] sm:$0xf0] }
 0x1d9   : > { %1093 = vadd.xlane.f32.xlu1 %v1092_v10  ;;  %v3118_v10 = vor.u32 %v3270_v5, %v3115_v6 }
 0x1db   : > { %1271 = vmatpush.bf16.msrb.mxu1 %v3118_v10 }
 0x23c   : > { %v1082_v18 = vpop.xlane.xlu0 %1081 }
 0x23d   : > { %v1098_v20 = vmul.f32 %v1082_v18, %v4365_v44 }
 0x23f   : > { %v1104_v22 = vadd.f32 1e-06, %v1098_v20 }
 0x241   : > { %v1088_v14 = vpop.xlane.xlu2 %1087  ;;  %vm1116_vm5 = vweird.f32 %v1104_v22 }
 0x242   : > { %v1100_v17 = vmul.f32 %v1088_v14, %v4365_v44 }
 0x244   : > { %v1106_v21 = vadd.f32 1e-06, %v1100_v17  ;;  %v1085_v28 = vpop.xlane.xlu1 %1084  ;;  %v3110_v17 = vor.u32 %v3268_v11, %v3107_v12 }
 0x245   : > { %v1099_v30 = vmul.f32 %v1085_v28, %v4365_v44 }
 0x246   : > { %3459 = vrsqrt.f32 %v1106_v21  ;;  %vm1136_vm8 = vweird.f32 %v1106_v21  ;;  %1272 = vmatpush.bf16.msrb.mxu1 %v3110_v17 }
 0x247   : > { %3461 = vrsqrt.f32 %v1104_v22  ;;  %v1105_v36 = vadd.f32 1e-06, %v1099_v30 }
 0x249   : > { %v1091_v29 = vpop.xlane.xlu0 %1090  ;;  %vm1126_vm12 = vweird.f32 %v1105_v36 }
 0x24a   : > { %v1097_v26 = vpop.xlane.xlu2 %1096  ;;  %v1101_v31 = vmul.f32 %v1091_v29, %v4365_v44 }
 0x24b   : > { %v1103_v27 = vmul.f32 %v1097_v26, %v4365_v44 }
 0x24c   : > { %v3460_v32 = vpop.eup %3459  ;;  %v1107_v37 = vadd.f32 1e-06, %v1101_v31  ;;  %v1094_v43 = vpop.xlane.xlu1 %1093 }
 0x24d   : > { %v4414_v33 = vadd.f32 1e-06, %v1103_v27  ;;  %v3462_v34 = vpop.eup %3461  ;;  %v1131_v35 = vmul.f32 %v3460_v32, %v1106_v21  ;;  %v1102_v46 = vmul.f32 %v1094_v43, %v4365_v44  ;;  %vm1137_vm6 = vweird.f32 %v3460_v32  ;;  %v3266_v21 = vld [vmem:[%s4311_s4 + $0x4] sm:$0xf] }
 0x24e   : > { %v1111_v38 = vmul.f32 %v3462_v34, %v1104_v22  ;;  %vm1117_vm4 = vweird.f32 %v3462_v34  ;;  %vm4431_vm9 = vmor %vm1136_vm8, %vm1137_vm6  ;;  %v3099_v22 = vld [vmem:[%s4311_s4 + $0x8] sm:$0xf0]  ;;  %vm1146_vm14 = vweird.f32 %v1107_v37  ;;  %s3956_s4 = smov 48   ;;  %vm1490_vm8 = vcmask 1043456  }
 0x24f   : > { %3463 = vrsqrt.f32 %v4414_v33  ;;  %v1132_v39 = vmul.f32 %v3460_v32, %v1131_v35  ;;  %v4420_v52 = vadd.f32 1e-06, %v1102_v46  ;;  %vm4424_vm7 = vmor %vm1116_vm5, %vm1117_vm4  ;;  %v3102_v30 = vor.u32 %v3266_v21, %v3099_v22 }
 0x250   : > { %3465 = vrsqrt.f32 %v1105_v36  ;;  %v1112_v40 = vmul.f32 %v3462_v34, %v1111_v38  ;;  %vm1166_vm0 = vweird.f32 %v4414_v33 }
 0x251   : > { %3467 = vrsqrt.f32 %v1107_v37  ;;  %v1133_v41 = vmul.f32 0.5, %v1132_v39  ;;  %1273 = vmatpush.bf16.msrb.mxu1 %v3102_v30  ;;  %vm1156_vm5 = vweird.f32 %v4420_v52 }
 0x252   : > { %v1113_v42 = vmul.f32 0.5, %v1112_v40  ;;  %3469 = vrsqrt.f32 %v4420_v52 }
 0x253   : > { %v1134_v45 = vsub.f32 1.5, %v1133_v41 }
 0x254   : > { %v1114_v48 = vsub.f32 1.5, %v1113_v42 }
 0x255   : > { %v4418_v47 = vpop.eup %3463  ;;  %v1135_v56 = vmul.f32 %v3460_v32, %v1134_v45 }
 0x256   : > { %v3466_v49 = vpop.eup %3465  ;;  %v1115_v54 = vmul.f32 %v3462_v34, %v1114_v48  ;;  %v1161_v57 = vmul.f32 %v4418_v47, %v4414_v33  ;;  %vm1167_vm1 = vweird.f32 %v4418_v47 }
 0x257   : > { %v3468_v53 = vpop.eup %3467  ;;  %v1121_v55 = vmul.f32 %v3466_v49, %v1105_v36  ;;  %v1139_v7 = vsel %vm4431_vm9, %v3460_v32, %v1135_v56  ;;  %vm1127_vm10 = vweird.f32 %v3466_v49  ;;  %vm1168_vm4 = vmor %vm1166_vm0, %vm1167_vm1 }
 0x258   : > { %v1141_v58 = vmul.f32 %v3468_v53, %v1107_v37  ;;  %v1119_v61 = vsel %vm4424_vm7, %v3462_v34, %v1115_v54  ;;  %v1162_v8 = vmul.f32 %v4418_v47, %v1161_v57  ;;  %vm1147_vm11 = vweird.f32 %v3468_v53  ;;  %v3470_v18 = vpop.eup %3469  ;;  %vm1128_vm13 = vmor %vm1126_vm12, %vm1127_vm10 }
 0x259   : > { %v1122_v60 = vmul.f32 %v3466_v49, %v1121_v55  ;;  %v1170_v13 = vmul.f32 %v1119_v61, %v4371_v51  ;;  %v1172_v19 = vmul.f32 %v1139_v7, %v4369_v50  ;;  %v1151_v24 = vmul.f32 %v3470_v18, %v4420_v52  ;;  %vm1148_vm15 = vmor %vm1146_vm14, %vm1147_vm11  ;;  %v3452_v50 = vld [vmem:[%s778_s29] ss:$0 sm:$0xff]  ;;  %s3953_s29 = smov 80  }
 0x25a   : > { %v1142_v62 = vmul.f32 %v3468_v53, %v1141_v58  ;;  %v1163_v51 = vmul.f32 0.5, %v1162_v8  ;;  %vm1157_vm3 = vweird.f32 %v3470_v18  ;;  %vm1311_vm7 = vcmask 130048  }
 0x25b   : > { %v1123_v3 = vmul.f32 0.5, %v1122_v60  ;;  %v1179_v26 = vmul.f32 %v3451_v15, %v1170_v13  ;;  %v1152_v29 = vmul.f32 %v3470_v18, %v1151_v24  ;;  %v1181_v32 = vmul.f32 %v3451_v15, %v1172_v19  ;;  %vm1158_vm6 = vmor %vm1156_vm5, %vm1157_vm3 }
 0x25c   : > { %v1143_v9 = vmul.f32 0.5, %v1142_v62  ;;  %v1164_v34 = vsub.f32 1.5, %v1163_v51  ;;  %vm1398_vm10 = vcmask 195584   ;;  %vm2100_vm11 = vcmask 261120  }
 0x25d   : > { %v1124_v14 = vsub.f32 1.5, %v1123_v3  ;;  %v1153_v35 = vmul.f32 0.5, %v1152_v29  ;;  %v1190_v40 = vadd.f32 %v3452_v50, %v1181_v32 }
 0x25e   : > { %v1144_v16 = vsub.f32 1.5, %v1143_v9  ;;  %v1165_v42 = vmul.f32 %v4418_v47, %v1164_v34 }
 0x25f   : > { %v1125_v20 = vmul.f32 %v3466_v49, %v1124_v14  ;;  %v1154_v38 = vsub.f32 1.5, %v1153_v35 }
 0x260   : > { %v1145_v23 = vmul.f32 %v3468_v53, %v1144_v16  ;;  %v1169_v46 = vsel %vm1168_vm4, %v4418_v47, %v1165_v42 }
 0x261   : > { %v1129_v25 = vsel %vm1128_vm13, %v3466_v49, %v1125_v20  ;;  %v1175_v49 = vmul.f32 %v1169_v46, %v4383_v63 }
 0x262   : > { %v1171_v27 = vmul.f32 %v1129_v25, %v4387_v1  ;;  %v1149_v28 = vsel %vm1148_vm15, %v3468_v53, %v1145_v23  ;;  %v1188_v1 = vadd.f32 %v3452_v50, %v1179_v26 }
 0x263   : > { %v1173_v31 = vmul.f32 %v1149_v28, %v4385_v0  ;;  %v1155_v0 = vmul.f32 %v3470_v18, %v1154_v38  ;;  %v1184_v54 = vmul.f32 %v3451_v15, %v1175_v49 }
 0x264   : > { %v1180_v36 = vmul.f32 %v3451_v15, %v1171_v27 }
 0x265   : > { %v1182_v37 = vmul.f32 %v3451_v15, %v1173_v31  ;;  %v1159_v33 = vsel %vm1158_vm6, %v3470_v18, %v1155_v0  ;;  %v1193_v56 = vadd.f32 %v3452_v50, %v1184_v54 }
 0x266   : > { %v1189_v39 = vadd.f32 %v3452_v50, %v1180_v36  ;;  %v1174_v48 = vmul.f32 %v1159_v33, %v4393_v4 }
 0x267   : > { %v1191_v41 = vadd.f32 %v3452_v50, %v1182_v37 }
 0x268   : > { %v1194_v43 = vpack.c.bf16 %v1189_v39, %v1188_v1  ;;  %v1183_v53 = vmul.f32 %v3451_v15, %v1174_v48 }
 0x269   : > { %v1195_v45 = vpack.c.bf16 %v1191_v41, %v1190_v40 }
 0x26a   : > { %3119 = vmatmul.msk.bf16.vlgmr.msra.gmra.mxu0 %vm1036_vm2, %v1194_v43  ;;  %v1192_v55 = vadd.f32 %v3452_v50, %v1183_v53 }
 0x26b   : > { %3120 = vmatmul.msk.bf16.vlgmr.msra.gmra.mxu1 %vm1036_vm2, %v1195_v45 }
 0x26c   : > { %v1196_v57 = vpack.c.bf16 %v1193_v56, %v1192_v55 }
 0x27b   : > { %3121 = vmatmul.msk.bf16.gmra.mxu1 %vm1036_vm2, %v1196_v57 }
 0x28b   : > { %3122 = vmatmul.msk.bf16.vlgmr.msrb.gmra.mxu1 %vm1036_vm2, %v1194_v43 }
 0x29b   : > { %3123 = vmatmul.msk.bf16.gmra.mxu1 %vm1036_vm2, %v1195_v45 }
 0x2ab   : > { %3124 = vmatmul.msk.bf16.gmra.mxu1 %vm1036_vm2, %v1196_v57 }
 0x2e7   : > { %v1251_v52 = vpop.f32.mrf.mxu0 }
 0x2e8   : > { %v1256_v58 = vpop.f32.mrf.mxu1  ;;  %v1293_v63 = vpack.c.bf16 %v1251_v52, %v1251_v52 }
 0x2e9   : > { %v1295_v47 = vpack.c.bf16 %v1256_v58, %v1256_v58 }
 0x2ea   : > { %v1302_v2 = vunpack.c.l.b16 %v1293_v63 }
 0x2eb   : > { %v1304_v59 = vunpack.c.l.b16 %v1295_v47 }
 0x2ed   : > { %v4470_v4 = vpack.c.b16 %v1304_v59, %v1304_v59 }
 0x2ef   : > { %1309 = vrot.lane.b32.xlu0 %v4470_v4, %s3953_s29  ;;  %v1253_v60 = vpop.f32.mrf.mxu0 }
 0x2f0   : > { %v1294_v61 = vpack.c.bf16 %v1253_v60, %v1253_v60  ;;  %v1258_v62 = vpop.f32.mrf.mxu1 }
 0x2f1   : > { %v1296_v6 = vpack.c.bf16 %v1258_v62, %v1258_v62 }
 0x2f2   : > { %v1303_v3 = vunpack.c.l.b16 %v1294_v61 }
 0x2f3   : > { %v1345_v9 = vunpack.c.l.b16 %v1296_v6 }
 0x2f4   : > { %v4473_v5 = vpack.c.b16 %v1303_v3, %v1302_v2  ;;  %v1290_v3 = vlaneseq }
 0x2f6   : > { %1307 = vrot.lane.b32.xlu1 %v4473_v5, %s3953_s29  ;;  %v4545_v6 = vand.u32 127, %v1290_v3 }
 0x2f8   : > { %v1261_v7 = vpop.f32.mrf.mxu1  ;;  %vm1292_vm9 = vcmp.lt.s32.totalorder %v4545_v6, 17 }
 0x2f9   : > { %v1297_v8 = vpack.c.bf16 %v1261_v7, %v1261_v7 }
 0x2fb   : > { %v1346_v10 = vunpack.c.l.b16 %v1297_v8 }
 0x2fd   : > { %v4476_v11 = vpack.c.b16 %v1346_v10, %v1345_v9 }
 0x2fe   : > { %1556 = vrot.lane.b32.xlu1 %v4473_v5, %s3954_s19 }
 0x2ff   : > { %1350 = vrot.lane.b32.xlu0 %v4476_v11, %s3953_s29 }
 0x300   : > { %v1263_v12 = vpop.f32.mrf.mxu1 }
 0x301   : > { %v1298_v13 = vpack.c.bf16 %v1263_v12, %v1263_v12 }
 0x303   : > { %v1347_v14 = vunpack.c.l.b16 %v1298_v13 }
 0x305   : > { %v4480_v15 = vpack.c.b16 %v1347_v14, %v1347_v14 }
 0x306   : > { %1554 = vrot.lane.b32.xlu1 %v4470_v4, %s3955_s8 }
 0x307   : > { %1552 = vrot.lane.b32.xlu0 %v4473_v5, %s3955_s8  ;;  %1352 = vrot.lane.b32.xlu2 %v4480_v15, %s3953_s29 }
 0x308   : > { %v1275_v16 = vpop.f32.mrf.mxu1 }
 0x309   : > { %v1792_v17 = vpack.c.bf16 %v1275_v16, %v1275_v16 }
 0x30b   : > { %v4488_v20 = vunpack.c.l.b16 %v1792_v17 }
 0x30e   : > { %1590 = vrot.lane.b32.xlu1 %v4476_v11, %s3955_s8 }
 0x30f   : > { %1594 = vrot.lane.b32.xlu0 %v4476_v11, %s3954_s19  ;;  %1558 = vrot.lane.b32.xlu2 %v4470_v4, %s3954_s19 }
 0x310   : > { %v1277_v18 = vpop.f32.mrf.mxu1 }
 0x311   : > { %v1793_v19 = vpack.c.bf16 %v1277_v18, %v1277_v18 }
 0x313   : > { %v4490_v21 = vunpack.c.l.b16 %v1793_v19 }
 0x315   : > { %v1972_v22 = vpack.c.b16 %v4490_v21, %v4488_v20 }
 0x316   : > { %1592 = vrot.lane.b32.xlu1 %v4480_v15, %s3955_s8  ;;  %s5194_s8 = sld [smem:[#allocation42_spill]] (!%p3245_p8) }
 0x317   : > { %1802 = vrot.lane.b32.xlu0 %v4473_v5, %s3956_s4  ;;  %1596 = vrot.lane.b32.xlu2 %v4480_v15, %s3954_s19 }
 0x318   : > { %v4497_v51 = vpop.f32.mrf.mxu1 }
 0x31e   : > { %1836 = vrot.lane.b32.xlu1 %v4476_v11, %s3957_s1 }
 0x31f   : > { %1842 = vrot.lane.b32.xlu0 %v4480_v15, %s3956_s4  ;;  %1804 = vrot.lane.b32.xlu2 %v4470_v4, %s3956_s4 }
 0x320   : > { %v1282_v23 = vpop.f32.mrf.mxu1 }
 0x321   : > { %v1795_v24 = vpack.c.bf16 %v1282_v23, %v1282_v23 }
 0x323   : > { %v4504_v27 = vunpack.c.l.b16 %v1795_v24 }
 0x327   : > { %1800 = vrot.lane.b32.xlu0 %v4470_v4, %s3957_s1  ;;  %1798 = vrot.lane.b32.xlu2 %v4473_v5, %s3957_s1 }
 0x328   : > { %v1285_v25 = vpop.f32.mrf.mxu1 }
 0x329   : > { %v1796_v26 = vpack.c.bf16 %v1285_v25, %v1285_v25 }
 0x32b   : > { %v4506_v28 = vunpack.c.l.b16 %v1796_v26 }
 0x32d   : > { %v2016_v29 = vpack.c.b16 %v4506_v28, %v4504_v27 }
 0x32f   : > { %1481 = vrot.lane.b32.xlu0 %v4470_v4, %s3958_s3  ;;  %1840 = vrot.lane.b32.xlu2 %v4476_v11, %s3956_s4 }
 0x330   : > { %v4560_v24 = vpop.f32.mrf.mxu1 }
 0x337   : > { %1479 = vrot.lane.b32.xlu2 %v4473_v5, %s3958_s3 }
 0x33f   : > { %1838 = vrot.lane.b32.xlu2 %v4480_v15, %s3957_s1 }
 0x361   : > { %v1310_v50 = vpop.permute.xlu0 %1309  ;;  %v1353_v30 = vpop.permute.xlu2 %1352 }
 0x362   : > { %v1322_v31 = vsel %vm1311_vm7, %v1310_v50, 0  ;;  %v1364_v32 = vsel %vm1311_vm7, %v1353_v30, 0 }
 0x363   : > { %1330 = vmatpush.bf16.xpose.msra.mxu2 %v1322_v31  ;;  %1372 = vmatpush.bf16.xpose.msra.mxu3 %v1364_v32 }
 0x368   : > { %v1308_v34 = vpop.permute.xlu1 %1307 }
 0x369   : > { %v1559_v35 = vpop.permute.xlu2 %1558  ;;  %v1319_v36 = vsel %vm1311_vm7, %v1308_v34, 0 }
 0x36a   : > { %v1570_v37 = vsel %vm1311_vm7, %v1559_v35, 0 }
 0x36b   : > { %1331 = vmatpush.bf16.xpose.msra.mxu2 %v1319_v36  ;;  %1578 = vmatpush.bf16.xpose.msrb.mxu0 %v1570_v37 }
 0x370   : > { %v1557_v38 = vpop.permute.xlu1 %1556 }
 0x371   : > { %v1351_v1 = vpop.permute.xlu0 %1350  ;;  %v1597_v39 = vpop.permute.xlu2 %1596  ;;  %v1567_v40 = vsel %vm1311_vm7, %v1557_v38, 0 }
 0x372   : > { %v1608_v41 = vsel %vm1311_vm7, %v1597_v39, 0  ;;  %3125 = vmatmul.msk.bf16.vlgmr.msra.gmra.mxu2 %vm1311_vm7, %v4473_v5  ;;  %v1361_v42 = vsel %vm1311_vm7, %v1351_v1, 0 }
 0x373   : > { %1373 = vmatpush.bf16.xpose.msra.mxu3 %v1361_v42  ;;  %1579 = vmatpush.bf16.xpose.msrb.mxu0 %v1567_v40 }
 0x374   : > { %1616 = vmatpush.bf16.xpose.msra.mxu1 %v1608_v41 }
 0x378   : > { %v1555_v33 = vpop.permute.xlu1 %1554 }
 0x379   : > { %v1553_v0 = vpop.permute.xlu0 %1552  ;;  %v1805_v43 = vpop.permute.xlu2 %1804 }
 0x37a   : > { %v1816_v45 = vsel %vm1311_vm7, %v1805_v43, 0  ;;  %3127 = vmatmul.msk.bf16.vlgmr.msra.gmra.mxu3 %vm1311_vm7, %v4476_v11  ;;  %3133 = vmatmul.msk.bf16.vlgmr.msrb.gmra.mxu0 %vm1311_vm7, %v1553_v0 }
 0x37b   : > { %1824 = vmatpush.bf16.xpose.msra.mxu0 %v1816_v45 }
 0x380   : > { %v1591_v53 = vpop.permute.xlu1 %1590 }
 0x381   : > { %v1595_v46 = vpop.permute.xlu0 %1594  ;;  %v1799_v55 = vpop.permute.xlu2 %1798 }
 0x382   : > { %v1605_v48 = vsel %vm1311_vm7, %v1595_v46, 0  ;;  %3126 = vmatmul.msk.bf16.gmra.mxu2 %vm1311_vm7, %v4470_v4 }
 0x383   : > { %1617 = vmatpush.bf16.xpose.msra.mxu1 %v1605_v48 }
 0x388   : > { %v1593_v47 = vpop.permute.xlu1 %1592 }
 0x389   : > { %v1803_v49 = vpop.permute.xlu0 %1802  ;;  %v1841_v52 = vpop.permute.xlu2 %1840 }
 0x38a   : > { %v1813_v54 = vsel %vm1311_vm7, %v1803_v49, 0  ;;  %3128 = vmatmul.msk.bf16.gmra.mxu3 %vm1311_vm7, %v4480_v15  ;;  %3134 = vmatmul.msk.bf16.gmra.mxu0 %vm1311_vm7, %v1555_v33  ;;  %v1851_v59 = vsel %vm1311_vm7, %v1841_v52, 0 }
 0x38b   : > { %3135 = vmatmul.msk.bf16.vlgmr.msra.gmra.mxu1 %vm1311_vm7, %v1591_v53  ;;  %1825 = vmatpush.bf16.xpose.msra.mxu0 %v1813_v54 }
 0x390   : > { %v1837_v62 = vpop.permute.xlu1 %1836 }
 0x391   : > { %v1843_v56 = vpop.permute.xlu0 %1842  ;;  %v1480_v61 = vpop.permute.xlu2 %1479 }
 0x392   : > { %v1854_v57 = vsel %vm1311_vm7, %v1843_v56, 0 }
 0x393   : > { %1862 = vmatpush.bf16.xpose.msrb.mxu1 %v1854_v57 }
 0x399   : > { %v1801_v58 = vpop.permute.xlu0 %1800  ;;  %v1839_v2 = vpop.permute.xlu2 %1838 }
 0x39a   : > { %3141 = vmatmul.msk.bf16.vlgmr.msra.gmra.mxu0 %vm1311_vm7, %v1799_v55 }
 0x39b   : > { %3136 = vmatmul.msk.bf16.gmra.mxu1 %vm1311_vm7, %v1593_v47 }
 0x39c   : > { %1863 = vmatpush.bf16.xpose.msrb.mxu1 %v1851_v59 }
 0x3a1   : > { %v1482_v63 = vpop.permute.xlu0 %1481 }
 0x3a2   : > { %v1492_v60 = vsel %vm1490_vm8, %v1482_v63, 0 }
 0x3a3   : > { %1500 = vmatpush.bf16.msrb.mxu2 %v1492_v60 }
 0x3a7   : > { %1501 = vmatpush.bf16.msrb.mxu2 %v1480_v61 }
 0x3aa   : > { %3142 = vmatmul.msk.bf16.gmra.mxu0 %vm1311_vm7, %v1801_v58 }
 0x3ab   : > { %3143 = vmatmul.msk.bf16.vlgmr.msrb.gmra.mxu1 %vm1311_vm7, %v1837_v62 }
 0x3bb   : > { %3144 = vmatmul.msk.bf16.gmra.mxu1 %vm1311_vm7, %v1839_v2 }
 0x3f5   : > { %v1333_v7 = vpop.f32.mrf.mxu2 }
 0x3f6   : > { %v1384_v8 = vmul.f32 0.25, %v1333_v7 }
 0x3f7   : > { %v1581_v9 = vpop.f32.mrf.mxu0 }
 0x3f8   : > { %v1628_v10 = vmul.f32 0.25, %v1581_v9  ;;  %v4550_v12 = vsel %vm1292_vm9, %v1384_v8, -1e+30 }
 0x3f9   : > { %v1399_v13 = vsel %vm1398_vm10, %v4550_v12, -inf }
 0x3fa   : > { %1400 = vmax.xlane.f32.xlu1 %v1399_v13  ;;  %v4556_v14 = vsel %vm1292_vm9, %v1628_v10, -1e+30 }
 0x3fb   : > { %v1640_v16 = vsel %vm1398_vm10, %v4556_v14, -inf }
 0x3fc   : > { %1641 = vmax.xlane.f32.xlu2 %v1640_v16 }
 0x3fd   : > { %v1335_v17 = vpop.f32.mrf.mxu2  ;;  %v1375_v18 = vpop.f32.mrf.mxu3 }
 0x3fe   : > { %v1385_v19 = vmul.f32 0.25, %v1335_v17  ;;  %v1387_v59 = vmul.f32 0.25, %v1375_v18 }
 0x3ff   : > { %v1583_v23 = vpop.f32.mrf.mxu0 }
 0x400   : > { %v1629_v25 = vmul.f32 0.25, %v1583_v23  ;;  %v4564_v26 = vsel %vm1292_vm9, %v1385_v19, -1e+30  ;;  %v4602_v61 = vsel %vm1292_vm9, %v1387_v59, -1e+30 }
 0x401   : > { %v1402_v50 = vsel %vm1398_vm10, %v4564_v26, -inf  ;;  %v1408_v2 = vsel %vm1398_vm10, %v4602_v61, -inf }
 0x402   : > { %1403 = vmax.xlane.f32.xlu0 %v1402_v50  ;;  %v4570_v30 = vsel %vm1292_vm9, %v1629_v25, -1e+30 }
 0x403   : > { %v1643_v31 = vsel %vm1398_vm10, %v4570_v30, -inf }
 0x404   : > { %1644 = vmax.xlane.f32.xlu1 %v1643_v31 }
 0x405   : > { %v1338_v32 = vpop.f32.mrf.mxu2  ;;  %v1377_v34 = vpop.f32.mrf.mxu3 }
 0x406   : > { %v1386_v39 = vmul.f32 0.25, %v1338_v32  ;;  %v1388_v52 = vmul.f32 0.25, %v1377_v34 }
 0x407   : > { %v1586_v35 = vpop.f32.mrf.mxu0 }
 0x408   : > { %v1630_v36 = vmul.f32 0.25, %v1586_v35  ;;  %v1619_v37 = vpop.f32.mrf.mxu1  ;;  %v4582_v43 = vsel %vm1292_vm9, %v1386_v39, -1e+30  ;;  %v4596_v47 = vsel %vm1292_vm9, %v1388_v52, -1e+30 }
 0x409   : > { %v1405_v45 = vsel %vm1398_vm10, %v4582_v43, -inf  ;;  %v1631_v13 = vmul.f32 0.25, %v1619_v37 }
 0x40a   : > { %v4576_v38 = vsel %vm1292_vm9, %v1630_v36, -1e+30 }
 0x40b   : > { %v1646_v1 = vsel %vm1398_vm10, %v4576_v38, -inf  ;;  %v4626_v19 = vsel %vm1292_vm9, %v1631_v13, -1e+30 }
 0x40c   : > { %1647 = vmax.xlane.f32.xlu2 %v1646_v1  ;;  %v1649_v25 = vsel %vm1398_vm10, %v4626_v19, -inf }
 0x40d   : > { %v1340_v40 = vpop.f32.mrf.mxu2  ;;  %v1380_v41 = vpop.f32.mrf.mxu3 }
 0x40e   : > { %v1389_v8 = vmul.f32 0.25, %v1380_v41 }
 0x40f   : > { %v1588_v42 = vpop.f32.mrf.mxu0 }
 0x410   : > { %v1621_v0 = vpop.f32.mrf.mxu1  ;;  %v4618_v10 = vsel %vm1292_vm9, %v1389_v8, -1e+30 }
 0x411   : > { %v1632_v3 = vmul.f32 0.25, %v1621_v0  ;;  %v1414_v18 = vsel %vm1398_vm10, %v4618_v10, -inf }
 0x413   : > { %v4614_v9 = vsel %vm1292_vm9, %v1632_v3, -1e+30 }
 0x414   : > { %1406 = vmax.xlane.f32.xlu2 %v1405_v45  ;;  %v1652_v16 = vsel %vm1398_vm10, %v4614_v9, -inf }
 0x415   : > { %v1382_v33 = vpop.f32.mrf.mxu3 }
 0x416   : > { %1520 = vrot.lane.b32.xlu0 %v4476_v11, %s3958_s3 }
 0x417   : > { %v1827_v46 = vpop.f32.mrf.mxu0 }
 0x418   : > { %v1624_v48 = vpop.f32.mrf.mxu1  ;;  %v1874_v50 = vmul.f32 0.25, %v1827_v46 }
 0x419   : > { %v1633_v63 = vmul.f32 0.25, %v1624_v48 }
 0x41a   : > { %v4638_v34 = vsel %vm1292_vm9, %v1874_v50, -1e+30 }
 0x41b   : > { %v4606_v62 = vsel %vm1292_vm9, %v1633_v63, -1e+30  ;;  %v1886_v36 = vsel %vm1398_vm10, %v4638_v34, -inf }
 0x41c   : > { %v1655_v7 = vsel %vm1398_vm10, %v4606_v62, -inf }
 0x41d   : > { %1722 = vrot.lane.b32.xlu1 %v4470_v4, %s3959_s23  ;;  %v1411_v4 = vsel %vm1398_vm10, %v4596_v47, -inf }
 0x41f   : > { %v1829_v49 = vpop.f32.mrf.mxu0 }
 0x420   : > { %v1626_v53 = vpop.f32.mrf.mxu1  ;;  %v1875_v17 = vmul.f32 0.25, %v1829_v49 }
 0x422   : > { %v4630_v23 = vsel %vm1292_vm9, %v1875_v17, -1e+30 }
 0x423   : > { %v1889_v31 = vsel %vm1398_vm10, %v4630_v23, -inf }
 0x427   : > { %v1832_v54 = vpop.f32.mrf.mxu0 }
 0x428   : > { %v1865_v55 = vpop.f32.mrf.mxu1  ;;  %v1876_v32 = vmul.f32 0.25, %v1832_v54 }
 0x429   : > { %v1877_v1 = vmul.f32 0.25, %v1865_v55 }
 0x42a   : > { %v4642_v35 = vsel %vm1292_vm9, %v1876_v32, -1e+30 }
 0x42b   : > { %v1892_v37 = vsel %vm1398_vm10, %v4642_v35, -inf  ;;  %v4650_v39 = vsel %vm1292_vm9, %v1877_v1, -1e+30 }
 0x42c   : > { %1522 = vrot.lane.b32.xlu2 %v4480_v15, %s3958_s3  ;;  %v1895_v40 = vsel %vm1398_vm10, %v4650_v39, -inf }
 0x42f   : > { %v1834_v56 = vpop.f32.mrf.mxu0 }
 0x430   : > { %v1867_v57 = vpop.f32.mrf.mxu1 }
 0x431   : > { %v1878_v41 = vmul.f32 0.25, %v1867_v57 }
 0x433   : > { %v4656_v42 = vsel %vm1292_vm9, %v1878_v41, -1e+30 }
 0x434   : > { %v1898_v45 = vsel %vm1398_vm10, %v4656_v42, -inf }
 0x438   : > { %v4592_v58 = vpop.f32.mrf.mxu1 }
 0x440   : > { %v1872_v60 = vpop.f32.mrf.mxu1  ;;  %1412 = vmax.xlane.f32.xlu0 %v1411_v4 }
 0x447   : > { %1409 = vmax.xlane.f32.xlu1 %v1408_v2 }
 0x448   : > { %1656 = vmax.xlane.f32.xlu0 %v1655_v7 }
 0x44f   : > { %1653 = vmax.xlane.f32.xlu1 %v1652_v16 }
 0x450   : > { %1415 = vmax.xlane.f32.xlu0 %v1414_v18 }
 0x455   : > { %1650 = vmax.xlane.f32.xlu2 %v1649_v25 }
 0x457   : > { %1890 = vmax.xlane.f32.xlu1 %v1889_v31 }
 0x45d   : > { %1887 = vmax.xlane.f32.xlu2 %v1886_v36 }
 0x45f   : > { %1893 = vmax.xlane.f32.xlu1 %v1892_v37 }
 0x467   : > { %1896 = vmax.xlane.f32.xlu1 %v1895_v40  ;;  %v1879_v40 = vmul.f32 0.25, %v4592_v58 }
 0x46d   : > { %v1401_v0 = vpop.xlane.xlu1 %1400 }
 0x46e   : > { %v1417_v48 = vsub.f32 %v4550_v12, %v1401_v0 }
 0x46f   : > { %v1642_v33 = vpop.xlane.xlu2 %1641  ;;  %1899 = vmax.xlane.f32.xlu1 %v1898_v45 }
 0x470   : > { %v1658_v46 = vsub.f32 %v4556_v14, %v1642_v33  ;;  %v1423_v53 = vmul.f32 1.442695, %v1417_v48 }
 0x472   : > { %v1664_v49 = vmul.f32 1.442695, %v1658_v46  ;;  %v4699_v46 = vsel %vm1292_vm9, %v1879_v40, -1e+30 }
 0x474   : > { %3471 = vpow2.f32 %v1664_v49 }
 0x475   : > { %v1404_v54 = vpop.xlane.xlu0 %1403  ;;  %3473 = vpow2.f32 %v1423_v53 }
 0x476   : > { %v1418_v55 = vsub.f32 %v4564_v26, %v1404_v54 }
 0x477   : > { %v1645_v56 = vpop.xlane.xlu1 %1644 }
 0x478   : > { %v1425_v57 = vmul.f32 1.442695, %v1418_v55  ;;  %v1659_v52 = vsub.f32 %v4570_v30, %v1645_v56 }
 0x47a   : > { %v4664_v59 = vpop.eup %3471  ;;  %3475 = vpow2.f32 %v1425_v57  ;;  %v1666_v4 = vmul.f32 1.442695, %v1659_v52 }
 0x47b   : > { %v1676_v14 = vsel %vm1398_vm10, %v4664_v59, 0.0  ;;  %v4668_v12 = vpop.eup %3473 }
 0x47c   : > { %3477 = vpow2.f32 %v1666_v4  ;;  %1677 = vadd.xlane.f32.xlu1 %v1676_v14  ;;  %v1435_v8 = vsel %vm1398_vm10, %v4668_v12, 0.0 }
 0x47f   : > { %v1648_v63 = vpop.xlane.xlu2 %1647 }
 0x480   : > { %v4670_v60 = vpop.eup %3475  ;;  %v1660_v26 = vsub.f32 %v4576_v38, %v1648_v63 }
 0x481   : > { %v1438_v30 = vsel %vm1398_vm10, %v4670_v60, 0.0 }
 0x482   : > { %v4675_v2 = vpop.eup %3477  ;;  %v1668_v3 = vmul.f32 1.442695, %v1660_v26  ;;  %1439 = vadd.xlane.f32.xlu0 %v1438_v30 }
 0x483   : > { %v1679_v7 = vsel %vm1398_vm10, %v4675_v2, 0.0 }
 0x484   : > { %3479 = vpow2.f32 %v1668_v3  ;;  %1680 = vadd.xlane.f32.xlu2 %v1679_v7  ;;  %1436 = vadd.xlane.f32.xlu1 %v1435_v8 }
 0x487   : > { %v1407_v13 = vpop.xlane.xlu2 %1406 }
 0x488   : > { %v1419_v16 = vsub.f32 %v4582_v43, %v1407_v13  ;;  %v1521_v37 = vpop.permute.xlu0 %1520 }
 0x48a   : > { %v4682_v38 = vpop.eup %3479  ;;  %v1427_v17 = vmul.f32 1.442695, %v1419_v16 }
 0x48b   : > { %v1682_v18 = vsel %vm1398_vm10, %v4682_v38, 0.0 }
 0x48c   : > { %3481 = vpow2.f32 %v1427_v17  ;;  %1683 = vadd.xlane.f32.xlu2 %v1682_v18 }
 0x48f   : > { %v1723_v25 = vpop.permute.xlu1 %1722  ;;  %v1523_v50 = vpop.permute.xlu2 %1522 }
 0x490   : > { %v1732_v31 = vsel %vm1490_vm8, %v1723_v25, 0  ;;  %v1532_v32 = vsel %vm1490_vm8, %v1523_v50, 0 }
 0x491   : > { %1540 = vmatpush.bf16.msrb.mxu3 %v1532_v32  ;;  %1740 = vmatpush.bf16.msra.mxu2 %v1732_v31 }
 0x492   : > { %v4688_v36 = vpop.eup %3481 }
 0x493   : > { %v1441_v43 = vsel %vm1398_vm10, %v4688_v36, 0.0 }
 0x494   : > { %1442 = vadd.xlane.f32.xlu1 %v1441_v43 }
 0x495   : > { %1541 = vmatpush.bf16.msrb.mxu3 %v1521_v37 }
 0x496   : > { %1720 = vrot.lane.b32.xlu0 %v4473_v5, %s3959_s23  ;;  %v1901_v5 = vsel %vm1398_vm10, %v4699_v46, -inf }
 0x4b3   : > { %v1413_v1 = vpop.xlane.xlu0 %1412 }
 0x4b4   : > { %v1421_v48 = vsub.f32 %v4596_v47, %v1413_v1 }
 0x4b6   : > { %v1431_v58 = vmul.f32 1.442695, %v1421_v48 }
 0x4ba   : > { %v1410_v41 = vpop.xlane.xlu1 %1409 }
 0x4bb   : > { %v1420_v0 = vsub.f32 %v4602_v61, %v1410_v41  ;;  %v1657_v45 = vpop.xlane.xlu0 %1656 }
 0x4bc   : > { %v1663_v33 = vsub.f32 %v4606_v62, %v1657_v45 }
 0x4bd   : > { %v1429_v49 = vmul.f32 1.442695, %v1420_v0 }
 0x4be   : > { %v1674_v53 = vmul.f32 1.442695, %v1663_v33 }
 0x4bf   : > { %3483 = vpow2.f32 %v1429_v49 }
 0x4c0   : > { %3485 = vpow2.f32 %v1674_v53  ;;  %1902 = vmax.xlane.f32.xlu0 %v1901_v5  ;;  %v1794_v5 = vpack.c.bf16 %v4497_v51, %v4497_v51 }
 0x4c1   : > { %3487 = vpow2.f32 %v1431_v58 }
 0x4c2   : > { %v1654_v54 = vpop.xlane.xlu1 %1653 }
 0x4c3   : > { %v1416_v61 = vpop.xlane.xlu0 %1415  ;;  %v1662_v63 = vsub.f32 %v4614_v9, %v1654_v54 }
 0x4c4   : > { %v1422_v55 = vsub.f32 %v4618_v10, %v1416_v61 }
 0x4c5   : > { %v4705_v62 = vpop.eup %3483  ;;  %v1672_v3 = vmul.f32 1.442695, %v1662_v63 }
 0x4c6   : > { %v4707_v6 = vpop.eup %3485  ;;  %v1444_v47 = vsel %vm1398_vm10, %v4705_v62, 0.0  ;;  %v1433_v57 = vmul.f32 1.442695, %v1422_v55 }
 0x4c7   : > { %1445 = vadd.xlane.f32.xlu1 %v1444_v47  ;;  %v1691_v56 = vsel %vm1398_vm10, %v4707_v6, 0.0  ;;  %v4716_v10 = vpop.eup %3487  ;;  %v1971_v47 = vunpack.c.l.b16 %v1794_v5 }
 0x4c8   : > { %v1651_v52 = vpop.xlane.xlu2 %1650  ;;  %1692 = vadd.xlane.f32.xlu0 %v1691_v56  ;;  %3489 = vpow2.f32 %v1433_v57  ;;  %v1447_v30 = vsel %vm1398_vm10, %v4716_v10, 0.0 }
 0x4c9   : > { %v1661_v4 = vsub.f32 %v4626_v19, %v1651_v52  ;;  %v1973_v52 = vpack.c.b16 %v1971_v47, %v1971_v47 }
 0x4ca   : > { %v4714_v14 = vpop.xlane.xlu1 %1890 }
 0x4cb   : > { %v1670_v26 = vmul.f32 1.442695, %v1661_v4 }
 0x4cd   : > { %3491 = vpow2.f32 %v1670_v26  ;;  %v1905_v26 = vsub.f32 %v4630_v23, %v4714_v14 }
 0x4ce   : > { %v4721_v8 = vpop.eup %3489  ;;  %3493 = vpow2.f32 %v1672_v3 }
 0x4cf   : > { %1448 = vadd.xlane.f32.xlu1 %v1447_v30  ;;  %v1450_v25 = vsel %vm1398_vm10, %v4721_v8, 0.0 }
 0x4d0   : > { %v1888_v7 = vpop.xlane.xlu2 %1887 }
 0x4d1   : > { %v1904_v19 = vsub.f32 %v4638_v34, %v1888_v7 }
 0x4d2   : > { %v1894_v13 = vpop.xlane.xlu1 %1893 }
 0x4d3   : > { %v4723_v16 = vpop.eup %3491  ;;  %v1906_v17 = vsub.f32 %v4642_v35, %v1894_v13  ;;  %v1910_v50 = vmul.f32 1.442695, %v1904_v19 }
 0x4d4   : > { %v1685_v9 = vsel %vm1398_vm10, %v4723_v16, 0.0  ;;  %v4731_v31 = vpop.eup %3493 }
 0x4d5   : > { %v1914_v18 = vmul.f32 1.442695, %v1906_v17  ;;  %1686 = vadd.xlane.f32.xlu2 %v1685_v9  ;;  %v1688_v34 = vsel %vm1398_vm10, %v4731_v31, 0.0 }
 0x4d7   : > { %3495 = vpow2.f32 %v1914_v18  ;;  %1451 = vadd.xlane.f32.xlu1 %v1450_v25 }
 0x4d8   : > { %3497 = vpow2.f32 %v1910_v50 }
 0x4da   : > { %v1897_v32 = vpop.xlane.xlu1 %1896 }
 0x4db   : > { %v1907_v7 = vsub.f32 %v4650_v39, %v1897_v32 }
 0x4dd   : > { %v4735_v43 = vpop.eup %3495  ;;  %1689 = vadd.xlane.f32.xlu2 %v1688_v34  ;;  %v1916_v9 = vmul.f32 1.442695, %v1907_v7 }
 0x4de   : > { %v1928_v35 = vsel %vm1398_vm10, %v4735_v43, 0.0  ;;  %v4739_v37 = vpop.eup %3497 }
 0x4df   : > { %1929 = vadd.xlane.f32.xlu0 %v1928_v35  ;;  %v1922_v41 = vsel %vm1398_vm10, %v4739_v37, 0.0 }
 0x4e2   : > { %v1900_v1 = vpop.xlane.xlu1 %1899 }
 0x4e3   : > { %v1908_v40 = vsub.f32 %v4656_v42, %v1900_v1 }
 0x4e5   : > { %v1918_v0 = vmul.f32 1.442695, %v1908_v40  ;;  %1923 = vadd.xlane.f32.xlu2 %v1922_v41 }
 0x4e7   : > { %3499 = vpow2.f32 %v1918_v0 }
 0x4ed   : > { %v4744_v45 = vpop.eup %3499 }
 0x4ee   : > { %v1934_v33 = vsel %vm1398_vm10, %v4744_v45, 0.0 }
 0x4ef   : > { %v1678_v48 = vpop.xlane.xlu1 %1677  ;;  %1935 = vadd.xlane.f32.xlu0 %v1934_v33 }
 0x4f0   : > { %1762 = vrot.lane.b32.xlu1 %v4480_v15, %s3959_s23 }
 0x4f5   : > { %v1440_v49 = vpop.xlane.xlu0 %1439 }
 0x4f6   : > { %3501 = vrcp.f32 %v1440_v49 }
 0x4f7   : > { %v1437_v53 = vpop.xlane.xlu1 %1436  ;;  %v1681_v30 = vpop.xlane.xlu2 %1680 }
 0x4f8   : > { %3503 = vrcp.f32 %v1437_v53 }
 0x4fc   : > { %v3502_v42 = vpop.eup %3501 }
 0x4fd   : > { %v1460_v58 = vmul.f32 %v3502_v42, %v4670_v60  ;;  %1760 = vrot.lane.b32.xlu2 %v4476_v11, %s3959_s23  ;;  %v1982_v11 = vsel %vm1490_vm8, %v1973_v52, 0  ;;  %v1912_v60 = vmul.f32 1.442695, %v1905_v26 }
 0x4fe   : > { %v3504_v54 = vpop.eup %3503 }
 0x4ff   : > { %v1466_v61 = vpack.c.bf16 %v1460_v58, %v1460_v58  ;;  %v1459_v55 = vmul.f32 %v3504_v54, %v4668_v12  ;;  %v1684_v25 = vpop.xlane.xlu2 %1683 }
 0x501   : > { %v1465_v56 = vpack.c.bf16 %v1459_v55, %v1459_v55  ;;  %v1475_v15 = vunpack.c.l.b16 %v1466_v61 }
 0x503   : > { %v1474_v57 = vunpack.c.l.b16 %v1465_v56 }
 0x505   : > { %v1477_v4 = vpack.c.b16 %v1475_v15, %v1474_v57 }
 0x507   : > { %v1443_v63 = vpop.xlane.xlu1 %1442  ;;  %3129 = vmatmul.msk.bf16.vlgmr.msrb.gmra.mxu2 %vm1398_vm10, %v1477_v4 }
 0x508   : > { %3505 = vrcp.f32 %v1443_v63  ;;  %v1721_v51 = vpop.permute.xlu0 %1720 }
 0x509   : > { %1741 = vmatpush.bf16.msra.mxu2 %v1721_v51  ;;  %3507 = vpow2.f32 %v1912_v60 }
 0x50a   : > { %3509 = vrcp.f32 %v1681_v30 }
 0x50b   : > { %3511 = vrcp.f32 %v1678_v48 }
 0x50c   : > { %3513 = vpow2.f32 %v1916_v9 }
 0x50d   : > { %1990 = vmatpush.bf16.msrb.mxu2 %v1982_v11  ;;  %3515 = vrcp.f32 %v1684_v25 }
 0x50e   : > { %v3506_v12 = vpop.eup %3505 }
 0x50f   : > { %v1461_v3 = vmul.f32 %v3506_v12, %v4688_v36  ;;  %v4765_v19 = vpop.eup %3507 }
 0x510   : > { %v3510_v17 = vpop.eup %3509  ;;  %v1925_v20 = vsel %vm1398_vm10, %v4765_v19, 0.0 }
 0x511   : > { %1991 = vmatpush.bf16.msrb.mxu2 %v1972_v22  ;;  %v1467_v23 = vpack.c.bf16 %v1461_v3, %v1461_v3  ;;  %v3512_v18 = vpop.eup %3511  ;;  %v1701_v21 = vmul.f32 %v3510_v17, %v4675_v2 }
 0x512   : > { %v1700_v22 = vmul.f32 %v3512_v18, %v4664_v59  ;;  %v4772_v50 = vpop.eup %3513 }
 0x513   : > { %v1476_v14 = vunpack.c.l.b16 %v1467_v23  ;;  %v1707_v36 = vpack.c.bf16 %v1701_v21, %v1701_v21  ;;  %v1931_v35 = vsel %vm1398_vm10, %v4772_v50, 0.0  ;;  %v3516_v40 = vpop.eup %3515 }
 0x514   : > { %v1706_v39 = vpack.c.bf16 %v1700_v22, %v1700_v22  ;;  %v1702_v2 = vmul.f32 %v3516_v40, %v4682_v38 }
 0x515   : > { %v1478_v13 = vpack.c.b16 %v1476_v14, %v1476_v14  ;;  %v1716_v32 = vunpack.c.l.b16 %v1707_v36 }
 0x516   : > { %v1715_v34 = vunpack.c.l.b16 %v1706_v39  ;;  %v1708_v41 = vpack.c.bf16 %v1702_v2, %v1702_v2 }
 0x517   : > { %3130 = vmatmul.msk.bf16.gmra.mxu2 %vm1398_vm10, %v1478_v13 }
 0x518   : > { %v1718_v1 = vpack.c.b16 %v1716_v32, %v1715_v34  ;;  %v1717_v59 = vunpack.c.l.b16 %v1708_v41 }
 0x51a   : > { %1926 = vadd.xlane.f32.xlu1 %v1925_v20  ;;  %v1719_v49 = vpack.c.b16 %v1717_v59, %v1717_v59 }
 0x526   : > { %1932 = vadd.xlane.f32.xlu2 %v1931_v35 }
 0x527   : > { %3137 = vmatmul.msk.bf16.vlgmr.msra.gmra.mxu2 %vm1398_vm10, %v1718_v1 }
 0x533   : > { %v1903_v0 = vpop.xlane.xlu0 %1902 }
 0x534   : > { %v1909_v33 = vsub.f32 %v4699_v46, %v1903_v0 }
 0x536   : > { %v1920_v48 = vmul.f32 1.442695, %v1909_v33 }
 0x537   : > { %3138 = vmatmul.msk.bf16.gmra.mxu2 %vm1398_vm10, %v1719_v49 }
 0x538   : > { %3517 = vpow2.f32 %v1920_v48 }
 0x53a   : > { %v1446_v53 = vpop.xlane.xlu1 %1445 }
 0x53b   : > { %3519 = vrcp.f32 %v1446_v53 }
 0x53e   : > { %v4780_v42 = vpop.eup %3517 }
 0x53f   : > { %v1937_v5 = vsel %vm1398_vm10, %v4780_v42, 0.0 }
 0x540   : > { %1938 = vadd.xlane.f32.xlu1 %v1937_v5 }
 0x541   : > { %v3520_v38 = vpop.eup %3519 }
 0x542   : > { %v1449_v58 = vpop.xlane.xlu1 %1448  ;;  %v1462_v54 = vmul.f32 %v3520_v38, %v4705_v62  ;;  %v1797_v62 = vpack.c.bf16 %v4560_v24, %v4560_v24  ;;  %v1693_v24 = vpop.xlane.xlu0 %1692 }
 0x543   : > { %3521 = vrcp.f32 %v1449_v58 }
 0x544   : > { %v1468_v55 = vpack.c.bf16 %v1462_v54, %v1462_v54  ;;  %v2015_v12 = vunpack.c.l.b16 %v1797_v62 }
 0x546   : > { %v1515_v57 = vunpack.c.l.b16 %v1468_v55  ;;  %v2017_v13 = vpack.c.b16 %v2015_v12, %v2015_v12 }
 0x548   : > { %v1687_v46 = vpop.xlane.xlu2 %1686  ;;  %v2026_v20 = vsel %vm1490_vm8, %v2017_v13, 0 }
 0x549   : > { %v3522_v61 = vpop.eup %3521 }
 0x54a   : > { %v1463_v47 = vmul.f32 %v3522_v61, %v4716_v10  ;;  %v1452_v56 = vpop.xlane.xlu1 %1451 }
 0x54b   : > { %3523 = vrcp.f32 %v1452_v56 }
 0x54c   : > { %v1469_v15 = vpack.c.bf16 %v1463_v47, %v1463_v47 }
 0x54e   : > { %v1516_v52 = vunpack.c.l.b16 %v1469_v15 }
 0x550   : > { %v1518_v4 = vpack.c.b16 %v1516_v52, %v1515_v57  ;;  %v1690_v26 = vpop.xlane.xlu2 %1689 }
 0x551   : > { %v3524_v63 = vpop.eup %3523  ;;  %3525 = vrcp.f32 %v1690_v26 }
 0x552   : > { %3131 = vmatmul.msk.bf16.vlgmr.msrb.gmra.mxu3 %vm1398_vm10, %v1518_v4  ;;  %v1464_v51 = vmul.f32 %v3524_v63, %v4721_v8  ;;  %3527 = vrcp.f32 %v1687_v46  ;;  %v1930_v35 = vpop.xlane.xlu0 %1929 }
 0x553   : > { %3529 = vrcp.f32 %v1693_v24 }
 0x554   : > { %v1470_v11 = vpack.c.bf16 %v1464_v51, %v1464_v51 }
 0x556   : > { %v1517_v60 = vunpack.c.l.b16 %v1470_v11 }
 0x557   : > { %v3526_v3 = vpop.eup %3525 }
 0x558   : > { %v1924_v10 = vpop.xlane.xlu2 %1923  ;;  %v1519_v30 = vpack.c.b16 %v1517_v60, %v1517_v60  ;;  %v3528_v14 = vpop.eup %3527  ;;  %v1704_v8 = vmul.f32 %v3526_v3, %v4731_v31 }
 0x559   : > { %v1703_v17 = vmul.f32 %v3528_v14, %v4723_v16  ;;  %v3530_v31 = vpop.eup %3529  ;;  %3531 = vrcp.f32 %v1924_v10 }
 0x55a   : > { %v1710_v18 = vpack.c.bf16 %v1704_v8, %v1704_v8  ;;  %v1705_v16 = vmul.f32 %v3530_v31, %v4707_v6 }
 0x55b   : > { %v1709_v21 = vpack.c.bf16 %v1703_v17, %v1703_v17 }
 0x55c   : > { %v1756_v22 = vunpack.c.l.b16 %v1710_v18  ;;  %v1711_v39 = vpack.c.bf16 %v1705_v16, %v1705_v16 }
 0x55d   : > { %v1755_v36 = vunpack.c.l.b16 %v1709_v21 }
 0x55e   : > { %v1757_v32 = vunpack.c.l.b16 %v1711_v39 }
 0x55f   : > { %v1758_v25 = vpack.c.b16 %v1756_v22, %v1755_v36  ;;  %v3532_v2 = vpop.eup %3531 }
 0x560   : > { %v1761_v9 = vpop.permute.xlu2 %1760  ;;  %v1759_v34 = vpack.c.b16 %v1757_v32, %v1757_v32  ;;  %v1946_v27 = vmul.f32 %v3532_v2, %v4739_v37  ;;  %v3272_v2 = vld [vmem:[%s4321_s18] sm:$0xff] }
 0x562   : > { %3132 = vmatmul.msk.bf16.gmra.mxu3 %vm1398_vm10, %v1519_v30  ;;  %v1763_v23 = vpop.permute.xlu1 %1762  ;;  %v1936_v28 = vpop.xlane.xlu0 %1935  ;;  %v1952_v6 = vpack.c.bf16 %v1946_v27, %v1946_v27 }
 0x563   : > { %v1772_v7 = vsel %vm1490_vm8, %v1763_v23, 0 }
 0x564   : > { %1780 = vmatpush.bf16.msra.mxu3 %v1772_v7  ;;  %v1961_v33 = vunpack.c.l.b16 %v1952_v6 }
 0x568   : > { %1781 = vmatpush.bf16.msra.mxu3 %v1761_v9 }
 0x56c   : > { %2034 = vmatpush.bf16.msrb.mxu3 %v2026_v20 }
 0x570   : > { %2035 = vmatpush.bf16.msrb.mxu3 %v2016_v29 }
 0x572   : > { %3139 = vmatmul.msk.bf16.vlgmr.msra.gmra.mxu3 %vm1398_vm10, %v1758_v25 }
 0x582   : > { %3140 = vmatmul.msk.bf16.gmra.mxu3 %vm1398_vm10, %v1759_v34 }
 0x58a   : > { %v4801_v1 = vpop.f32.mrf.mxu2 }
 0x58d   : > { %v1927_v40 = vpop.xlane.xlu1 %1926 }
 0x58e   : > { %3533 = vrcp.f32 %v1927_v40  ;;  %v3273_v40 = vld [vmem:[%s4321_s18 + $0x8] sm:$0xff] }
 0x58f   : > { %3535 = vrcp.f32 %v1936_v28 }
 0x590   : > { %3537 = vrcp.f32 %v1930_v35  ;;  %v3274_v35 = vld [vmem:[%s4321_s18 + $0x10] sm:$0xff]  ;;  %s5188_s18 = scalar_lea.vmem [#allocation11], %s4277_s24 }
 0x591   : > { %2152 = vmatpush.bf16.msrb.mxu0 %v3274_v35 }
 0x592   : > { %v4804_v29 = vpop.f32.mrf.mxu2 }
 0x594   : > { %v3534_v41 = vpop.eup %3533 }
 0x595   : > { %v1947_v59 = vmul.f32 %v3534_v41, %v4765_v19  ;;  %v3536_v53 = vpop.eup %3535  ;;  %2153 = vmatpush.bf16.msrb.mxu0 %v3273_v40  ;;  %v3584_v40 = vld [vmem:[#allocation2 + $0x28] sm:$0xff] }
 0x596   : > { %v3538_v38 = vpop.eup %3537  ;;  %v1950_v37 = vmul.f32 %v3536_v53, %v4744_v45 }
 0x597   : > { %v1953_v0 = vpack.c.bf16 %v1947_v59, %v1947_v59  ;;  %v1948_v54 = vmul.f32 %v3538_v38, %v4735_v43 }
 0x598   : > { %v1956_v46 = vpack.c.bf16 %v1950_v37, %v1950_v37 }
 0x599   : > { %v1962_v48 = vunpack.c.l.b16 %v1953_v0  ;;  %v1933_v49 = vpop.xlane.xlu2 %1932  ;;  %v1954_v56 = vpack.c.bf16 %v1948_v54, %v1948_v54  ;;  %2154 = vmatpush.bf16.msrb.mxu0 %v3272_v2 }
 0x59a   : > { %3539 = vrcp.f32 %v1933_v49  ;;  %v4807_v58 = vpop.f32.mrf.mxu2  ;;  %v2006_v15 = vunpack.c.l.b16 %v1956_v46 }
 0x59b   : > { %v1964_v5 = vpack.c.b16 %v1962_v48, %v1961_v33  ;;  %v1963_v4 = vunpack.c.l.b16 %v1954_v56 }
 0x59d   : > { %3145 = vmatmul.msk.bf16.vlgmr.msrb.gmra.mxu2 %vm1398_vm10, %v1964_v5  ;;  %v1965_v26 = vpack.c.b16 %v1963_v4, %v1963_v4 }
 0x5a0   : > { %v3540_v61 = vpop.eup %3539 }
 0x5a1   : > { %v1949_v19 = vmul.f32 %v3540_v61, %v4772_v50 }
 0x5a2   : > { %v1510_v47 = vpop.f32.mrf.mxu2 }
 0x5a3   : > { %v1955_v55 = vpack.c.bf16 %v1949_v19, %v1949_v19 }
 0x5a5   : > { %v2005_v57 = vunpack.c.l.b16 %v1955_v55 }
 0x5a7   : > { %v2008_v52 = vpack.c.b16 %v2006_v15, %v2005_v57 }
 0x5a9   : > { %3147 = vmatmul.msk.bf16.vlgmr.msrb.gmra.mxu3 %vm1398_vm10, %v2008_v52 }
 0x5aa   : > { %v1743_v63 = vpop.f32.mrf.mxu2 }
 0x5ad   : > { %3146 = vmatmul.msk.bf16.gmra.mxu2 %vm1398_vm10, %v1965_v26 }
 0x5b2   : > { %v1745_v45 = vpop.f32.mrf.mxu2 }
 0x5b3   : > { %v1939_v51 = vpop.xlane.xlu1 %1938  ;;  %v3421_v43 = vpack.i.bf16 %v1745_v45, %v1743_v63 }
 0x5b4   : > { %3541 = vrcp.f32 %v1939_v51 }
 0x5b5   : > { %3422 = vrot.lane.b32.xlu0 %v3421_v43, %s3959_s23 }
 0x5ba   : > { %v3542_v50 = vpop.eup %3541  ;;  %v1748_v11 = vpop.f32.mrf.mxu2 }
 0x5bb   : > { %v1951_v62 = vmul.f32 %v3542_v50, %v4780_v42 }
 0x5bd   : > { %v1957_v60 = vpack.c.bf16 %v1951_v62, %v1951_v62 }
 0x5bf   : > { %v2007_v10 = vunpack.c.l.b16 %v1957_v60 }
 0x5c1   : > { %v2009_v12 = vpack.c.b16 %v2007_v10, %v2007_v10  ;;  %v3579_v10 = vld [vmem:[#allocation2] sm:$0xff] }
 0x5c2   : > { %v1750_v30 = vpop.f32.mrf.mxu2 }
 0x5c3   : > { %3148 = vmatmul.msk.bf16.gmra.mxu3 %vm1398_vm10, %v2009_v12 }
 0x5d5   : > { %v1543_v3 = vpop.f32.mrf.mxu3 }
 0x5dd   : > { %v4818_v23 = vpop.f32.mrf.mxu3 }
 0x5e5   : > { %v1548_v14 = vpop.f32.mrf.mxu3 }
 0x5ed   : > { %v1550_v7 = vpop.f32.mrf.mxu3 }
 0x5f5   : > { %v1783_v13 = vpop.f32.mrf.mxu3 }
 0x5f6   : > { %v3431_v8 = vpack.i.bf16 %v1783_v13, %v1748_v11  ;;  %v3453_v11 = vld [vmem:[%s5188_s18] ss:$0 sm:$0xff] }
 0x5f8   : > { %3432 = vrot.lane.b32.xlu0 %v3431_v8, %s3959_s23 }
 0x5fd   : > { %v1785_v17 = vpop.f32.mrf.mxu3 }
 0x605   : > { %v1788_v9 = vpop.f32.mrf.mxu3 }
 0x606   : > { %v3441_v24 = vpack.i.bf16 %v1788_v9, %v1785_v17  ;;  %v3581_v9 = vld [vmem:[#allocation2 + $0x10] sm:$0xff] }
 0x608   : > { %3442 = vrot.lane.b32.xlu0 %v3441_v24, %s3959_s23 }
 0x60d   : > { %v1790_v42 = vpop.f32.mrf.mxu3 }
 0x620   : > { %v1993_v18 = vpop.f32.mrf.mxu2 }
 0x627   : > { %v3423_v27 = vpop.permute.xlu0 %3422 }
 0x628   : > { %v1995_v20 = vpop.f32.mrf.mxu2  ;;  %v3425_v28 = vunpack.i.h.bf16 %v3423_v27  ;;  %v3424_v41 = vunpack.i.l.bf16 %v3423_v27 }
 0x629   : > { %v3426_v21 = vpack.i.bf16 %v1995_v20, %v1993_v18 }
 0x62a   : > { %v2095_v33 = vsel %vm1311_vm7, %v4804_v29, %v3425_v28  ;;  %v2094_v48 = vsel %vm1311_vm7, %v4801_v1, %v3424_v41 }
 0x62b   : > { %3427 = vrot.lane.b32.xlu1 %v3426_v21, %s3958_s3  ;;  %v3582_v21 = vld [vmem:[#allocation2 + $0x18] sm:$0xff] }
 0x62c   : > { %v2037_v22 = vpop.f32.mrf.mxu3 }
 0x630   : > { %v1998_v36 = vpop.f32.mrf.mxu2 }
 0x631   : > { %v3436_v25 = vpack.i.bf16 %v2037_v22, %v1998_v36 }
 0x633   : > { %3437 = vrot.lane.b32.xlu2 %v3436_v25, %s3958_s3 }
 0x634   : > { %v2039_v16 = vpop.f32.mrf.mxu3 }
 0x638   : > { %v2000_v31 = vpop.f32.mrf.mxu2 }
 0x646   : > { %v2042_v39 = vpop.f32.mrf.mxu3 }
 0x647   : > { %v3446_v32 = vpack.i.bf16 %v2042_v39, %v2039_v16  ;;  %v3583_v16 = vld [vmem:[#allocation2 + $0x20] sm:$0xff] }
 0x649   : > { %3447 = vrot.lane.b32.xlu1 %v3446_v32, %s3958_s3 }
 0x64e   : > { %v2044_v34 = vpop.f32.mrf.mxu3 }
 0x66a   : > { %v3433_v38 = vpop.permute.xlu0 %3432 }
 0x66b   : > { %v3435_v54 = vunpack.i.h.bf16 %v3433_v38  ;;  %v3434_v61 = vunpack.i.l.bf16 %v3433_v38 }
 0x66d   : > { %v2097_v55 = vsel %vm1311_vm7, %v1543_v3, %v3435_v54  ;;  %v2096_v29 = vsel %vm1311_vm7, %v4807_v58, %v3434_v61 }
 0x67a   : > { %v3443_v15 = vpop.permute.xlu0 %3442 }
 0x67b   : > { %v3445_v57 = vunpack.i.h.bf16 %v3443_v15  ;;  %v3444_v52 = vunpack.i.l.bf16 %v3443_v15 }
 0x67d   : > { %v2099_v45 = vsel %vm1311_vm7, %v1548_v14, %v3445_v57  ;;  %v2098_v51 = vsel %vm1311_vm7, %v4818_v23, %v3444_v52  ;;  %v3580_v14 = vld [vmem:[#allocation2 + $0x8] sm:$0xff] }
 0x68d   : > { %v3438_v37 = vpop.permute.xlu2 %3437 }
 0x68e   : > { %v3440_v46 = vunpack.i.h.bf16 %v3438_v37  ;;  %v3439_v19 = vunpack.i.l.bf16 %v3438_v37 }
 0x690   : > { %v2103_v1 = vsel %vm2100_vm11, %v2096_v29, %v3439_v19  ;;  %v2104_v47 = vsel %vm2100_vm11, %v2097_v55, %v3440_v46 }
 0x691   : > { %v2108_v56 = vpack.c.bf16 %v2104_v47, %v2103_v1 }
 0x69d   : > { %v3428_v6 = vpop.permute.xlu1 %3427 }
 0x69e   : > { %v3430_v59 = vunpack.i.h.bf16 %v3428_v6  ;;  %v3429_v0 = vunpack.i.l.bf16 %v3428_v6 }
 0x6a0   : > { %v2101_v49 = vsel %vm2100_vm11, %v2094_v48, %v3429_v0  ;;  %v2102_v53 = vsel %vm2100_vm11, %v2095_v33, %v3430_v59 }
 0x6a1   : > { %v2107_v5 = vpack.c.bf16 %v2102_v53, %v2101_v49 }
 0x6a3   : > { %3161 = vmatmul.msk.bf16.vlgmr.msrb.gmra.mxu0 %vm1036_vm2, %v2107_v5 }
 0x6b3   : > { %3162 = vmatmul.msk.bf16.gmra.mxu0 %vm1036_vm2, %v2108_v56 }
 0x6bb   : > { %v3448_v4 = vpop.permute.xlu1 %3447 }
 0x6bc   : > { %v3450_v63 = vunpack.i.h.bf16 %v3448_v4  ;;  %v3449_v26 = vunpack.i.l.bf16 %v3448_v4 }
 0x6be   : > { %v2105_v58 = vsel %vm2100_vm11, %v2098_v51, %v3449_v26  ;;  %v2106_v43 = vsel %vm2100_vm11, %v2099_v45, %v3450_v63 }
 0x6bf   : > { %v2109_v50 = vpack.c.bf16 %v2106_v43, %v2105_v58  ;;  %v3182_v43 = vld [vmem:[%s4316_s20 + $0x20] sm:$0xf] }
 0x6c3   : > { %3163 = vmatmul.msk.bf16.gmra.mxu0 %vm1036_vm2, %v2109_v50  ;;  %v3280_v50 = vld [vmem:[%s4316_s20 + $0x24] sm:$0xf0] }
 0x720   : > { %v2156_v62 = vpop.f32.mrf.mxu0 }
 0x721   : > { %v2157_v60 = vadd.f32 %v3453_v11, %v2156_v62  ;;  %v3183_v62 = vor.u32 %v3280_v50, %v3182_v43 }
 0x723   : > { %v4849_v12 = vadd.f32 %v3579_v10, %v2157_v60  ;;  %v3184_v60 = vld [vmem:[%s4316_s20 + $0x28] sm:$0xf0]  ;;  %2388 = vmatpush.bf16.msra.mxu1 %v3183_v62 }
 0x725   : > { %v2179_v30 = vsel %vm1036_vm2, %v4849_v12, 0.0 }
 0x726   : > { %2180 = vadd.xlane.f32.xlu0 %v2179_v30  ;;  %v3174_v30 = vld [vmem:[%s4316_s20 + $0x10] sm:$0xf] }
 0x728   : > { %v2158_v3 = vpop.f32.mrf.mxu0 }
 0x729   : > { %v2159_v23 = vadd.f32 %v3453_v11, %v2158_v3  ;;  %v3278_v3 = vld [vmem:[%s4316_s20 + $0x14] sm:$0xf0] }
 0x72b   : > { %v4853_v7 = vadd.f32 %v3580_v14, %v2159_v23  ;;  %v3277_v23 = vld [vmem:[%s4316_s20 + $0x14] sm:$0xf]  ;;  %v3175_v14 = vor.u32 %v3278_v3, %v3174_v30 }
 0x72d   : > { %v2182_v13 = vsel %vm1036_vm2, %v4853_v7, 0.0  ;;  %2389 = vmatpush.bf16.msra.mxu1 %v3175_v14 }
 0x72e   : > { %2183 = vadd.xlane.f32.xlu1 %v2182_v13  ;;  %v3176_v13 = vld [vmem:[%s4316_s20 + $0x18] sm:$0xf0] }
 0x730   : > { %v2161_v8 = vpop.f32.mrf.mxu0 }
 0x731   : > { %v2162_v17 = vadd.f32 %v3453_v11, %v2161_v8 }
 0x733   : > { %v4857_v24 = vadd.f32 %v3581_v9, %v2162_v17  ;;  %v3179_v17 = vor.u32 %v3277_v23, %v3176_v13 }
 0x735   : > { %v2185_v42 = vsel %vm1036_vm2, %v4857_v24, 0.0 }
 0x736   : > { %2186 = vadd.xlane.f32.xlu2 %v2185_v42  ;;  %v3166_v42 = vld [vmem:[%s4316_s20] sm:$0xf] }
 0x738   : > { %v2163_v18 = vpop.f32.mrf.mxu0 }
 0x739   : > { %v2164_v20 = vadd.f32 %v3453_v11, %v2163_v18  ;;  %v3276_v18 = vld [vmem:[%s4316_s20 + $0x4] sm:$0xf0] }
 0x73b   : > { %v4861_v22 = vadd.f32 %v3582_v21, %v2164_v20  ;;  %v3275_v20 = vld [vmem:[%s4316_s20 + $0x4] sm:$0xf] }
 0x73d   : > { %v2188_v36 = vsel %vm1036_vm2, %v4861_v22, 0.0 }
 0x73e   : > { %2189 = vadd.xlane.f32.xlu0 %v2188_v36  ;;  %v3167_v36 = vor.u32 %v3276_v18, %v3166_v42 }
 0x740   : > { %v2166_v25 = vpop.f32.mrf.mxu0  ;;  %2390 = vmatpush.bf16.msra.mxu1 %v3167_v36 }
 0x741   : > { %v2167_v31 = vadd.f32 %v3453_v11, %v2166_v25  ;;  %v3168_v25 = vld [vmem:[%s4316_s20 + $0x8] sm:$0xf0] }
 0x743   : > { %v4865_v39 = vadd.f32 %v3583_v16, %v2167_v31  ;;  %v3171_v31 = vor.u32 %v3275_v20, %v3168_v25 }
 0x745   : > { %v2191_v32 = vsel %vm1036_vm2, %v4865_v39, 0.0 }
 0x746   : > { %2192 = vadd.xlane.f32.xlu1 %v2191_v32 }
 0x748   : > { %v2168_v34 = vpop.f32.mrf.mxu0 }
 0x749   : > { %v2169_v35 = vadd.f32 %v3453_v11, %v2168_v34  ;;  %v3279_v11 = vld [vmem:[%s4316_s20 + $0x24] sm:$0xf]  ;;  %s5189_s20 = scalar_lea.vmem [#allocation12], %s4277_s24 }
 0x74a   : > { %v3187_v10 = vor.u32 %v3279_v11, %v3184_v60 }
 0x74b   : > { %v4869_v2 = vadd.f32 %v3584_v40, %v2169_v35 }
 0x74c   : > { %2412 = vmatpush.bf16.msra.mxu2 %v3187_v10 }
 0x74d   : > { %v2194_v27 = vsel %vm1036_vm2, %v4869_v2, 0.0 }
 0x74e   : > { %2195 = vadd.xlane.f32.xlu0 %v2194_v27 }
 0x750   : > { %2413 = vmatpush.bf16.msra.mxu2 %v3179_v17  ;;  %v3292_v17 = vld [vmem:[%s4327_s28 + $0x58] sm:$0xff] }
 0x751   : > { %2683 = vmatpush.bf16.msra.mxu0 %v3292_v17 }
 0x754   : > { %2414 = vmatpush.bf16.msra.mxu2 %v3171_v31 }
 0x799   : > { %v2181_v28 = vpop.xlane.xlu0 %2180 }
 0x79a   : > { %v2197_v41 = vmul.f32 %v2181_v28, %v4365_v44 }
 0x79c   : > { %v4875_v6 = vsub.f32 %v4849_v12, %v2197_v41 }
 0x79e   : > { %v2209_v59 = vmul.f32 %v4875_v6, %v4875_v6 }
 0x7a0   : > { %v2215_v0 = vsel %vm1036_vm2, %v2209_v59, 0.0 }
 0x7a1   : > { %v2184_v33 = vpop.xlane.xlu1 %2183  ;;  %2216 = vadd.xlane.f32.xlu1 %v2215_v0 }
 0x7a2   : > { %v2198_v48 = vmul.f32 %v2184_v33, %v4365_v44 }
 0x7a4   : > { %v4882_v49 = vsub.f32 %v4853_v7, %v2198_v48 }
 0x7a6   : > { %v2210_v53 = vmul.f32 %v4882_v49, %v4882_v49 }
 0x7a8   : > { %v2218_v5 = vsel %vm1036_vm2, %v2210_v53, 0.0 }
 0x7a9   : > { %v2187_v38 = vpop.xlane.xlu2 %2186  ;;  %2219 = vadd.xlane.f32.xlu2 %v2218_v5 }
 0x7aa   : > { %v2199_v37 = vmul.f32 %v2187_v38, %v4365_v44 }
 0x7ac   : > { %v4889_v54 = vsub.f32 %v4857_v24, %v2199_v37 }
 0x7ae   : > { %v2211_v61 = vmul.f32 %v4889_v54, %v4889_v54 }
 0x7b0   : > { %v2221_v46 = vsel %vm1036_vm2, %v2211_v61, 0.0 }
 0x7b1   : > { %2222 = vadd.xlane.f32.xlu0 %v2221_v46  ;;  %v2190_v19 = vpop.xlane.xlu0 %2189 }
 0x7b2   : > { %v2200_v55 = vmul.f32 %v2190_v19, %v4365_v44 }
 0x7b4   : > { %v4896_v29 = vsub.f32 %v4861_v22, %v2200_v55 }
 0x7b6   : > { %v2212_v1 = vmul.f32 %v4896_v29, %v4896_v29 }
 0x7b8   : > { %v2224_v47 = vsel %vm1036_vm2, %v2212_v1, 0.0 }
 0x7b9   : > { %v2193_v56 = vpop.xlane.xlu1 %2192  ;;  %2225 = vadd.xlane.f32.xlu1 %v2224_v47  ;;  %v4933_v47 = vld [vmem:[%s5189_s20] ss:$0 sm:$0xff] }
 0x7ba   : > { %v2201_v15 = vmul.f32 %v2193_v56, %v4365_v44 }
 0x7bc   : > { %v4903_v57 = vsub.f32 %v4865_v39, %v2201_v15 }
 0x7be   : > { %v2213_v52 = vmul.f32 %v4903_v57, %v4903_v57 }
 0x7c0   : > { %v2227_v4 = vsel %vm1036_vm2, %v2213_v52, 0.0 }
 0x7c1   : > { %2228 = vadd.xlane.f32.xlu2 %v2227_v4  ;;  %v2196_v63 = vpop.xlane.xlu0 %2195 }
 0x7c2   : > { %v2202_v26 = vmul.f32 %v2196_v63, %v4365_v44 }
 0x7c4   : > { %v4910_v45 = vsub.f32 %v4869_v2, %v2202_v26 }
 0x7c6   : > { %v2214_v51 = vmul.f32 %v4910_v45, %v4910_v45 }
 0x7c8   : > { %v2230_v58 = vsel %vm1036_vm2, %v2214_v51, 0.0  ;;  %v4938_v51 = vld [vmem:[%s5190_s6] ss:$0 sm:$0xff] }
 0x7c9   : > { %2231 = vadd.xlane.f32.xlu0 %v2230_v58 }
 0x814   : > { %v2217_v8 = vpop.xlane.xlu1 %2216 }
 0x815   : > { %v2233_v9 = vmul.f32 %v2217_v8, %v4365_v44 }
 0x817   : > { %v2239_v21 = vadd.f32 1e-06, %v2233_v9 }
 0x819   : > { %3543 = vrsqrt.f32 %v2239_v21  ;;  %vm2251_vm13 = vweird.f32 %v2239_v21 }
 0x81c   : > { %v2220_v16 = vpop.xlane.xlu2 %2219 }
 0x81d   : > { %v2234_v32 = vmul.f32 %v2220_v16, %v4365_v44 }
 0x81f   : > { %v3544_v34 = vpop.eup %3543  ;;  %v2240_v35 = vadd.f32 1e-06, %v2234_v32 }
 0x820   : > { %v2246_v40 = vmul.f32 %v3544_v34, %v2239_v21  ;;  %vm2252_vm12 = vweird.f32 %v3544_v34 }
 0x821   : > { %3545 = vrsqrt.f32 %v2240_v35  ;;  %vm2253_vm14 = vmor %vm2251_vm13, %vm2252_vm12  ;;  %vm2261_vm0 = vweird.f32 %v2240_v35 }
 0x822   : > { %v2247_v27 = vmul.f32 %v3544_v34, %v2246_v40 }
 0x824   : > { %v2248_v28 = vmul.f32 0.5, %v2247_v27  ;;  %v2223_v41 = vpop.xlane.xlu0 %2222 }
 0x825   : > { %v2235_v59 = vmul.f32 %v2223_v41, %v4365_v44 }
 0x826   : > { %v2249_v0 = vsub.f32 1.5, %v2248_v28 }
 0x827   : > { %v3546_v33 = vpop.eup %3545  ;;  %v2241_v48 = vadd.f32 1e-06, %v2235_v59 }
 0x828   : > { %v2250_v53 = vmul.f32 %v3544_v34, %v2249_v0  ;;  %v2256_v5 = vmul.f32 %v3546_v33, %v2240_v35  ;;  %vm2262_vm15 = vweird.f32 %v3546_v33 }
 0x829   : > { %3547 = vrsqrt.f32 %v2241_v48  ;;  %vm2263_vm1 = vmor %vm2261_vm0, %vm2262_vm15  ;;  %vm2271_vm4 = vweird.f32 %v2241_v48  ;;  %vm2645_vm15 = vcmask 523264  }
 0x82a   : > { %v2257_v38 = vmul.f32 %v3546_v33, %v2256_v5  ;;  %v2254_v37 = vsel %vm2253_vm14, %v3544_v34, %v2250_v53 }
 0x82b   : > { %v2305_v56 = vmul.f32 %v2254_v37, %v4875_v6 }
 0x82c   : > { %v2258_v61 = vmul.f32 0.5, %v2257_v38  ;;  %v2226_v46 = vpop.xlane.xlu1 %2225 }
 0x82d   : > { %v2236_v19 = vmul.f32 %v2226_v46, %v4365_v44  ;;  %v2314_v58 = vmul.f32 %v4933_v47, %v2305_v56 }
 0x82e   : > { %v2259_v55 = vsub.f32 1.5, %v2258_v61 }
 0x82f   : > { %v3548_v1 = vpop.eup %3547  ;;  %v2242_v15 = vadd.f32 1e-06, %v2236_v19  ;;  %v2323_v30 = vadd.f32 %v4938_v51, %v2314_v58  ;;  %v3284_v58 = vld [vmem:[%s4327_s28 + $0x18] sm:$0xff] }
 0x830   : > { %v2260_v52 = vmul.f32 %v3546_v33, %v2259_v55  ;;  %v2266_v4 = vmul.f32 %v3548_v1, %v2241_v48  ;;  %vm2272_vm3 = vweird.f32 %v3548_v1 }
 0x831   : > { %3549 = vrsqrt.f32 %v2242_v15  ;;  %vm2273_vm5 = vmor %vm2271_vm4, %vm2272_vm3  ;;  %vm2281_vm7 = vweird.f32 %v2242_v15 }
 0x832   : > { %v2264_v63 = vsel %vm2263_vm1, %v3546_v33, %v2260_v52  ;;  %v2267_v26 = vmul.f32 %v3548_v1, %v2266_v4 }
 0x833   : > { %v2306_v43 = vmul.f32 %v2264_v63, %v4882_v49  ;;  %v3288_v63 = vld [vmem:[%s4327_s28 + $0x38] sm:$0xff] }
 0x834   : > { %v2268_v50 = vmul.f32 0.5, %v2267_v26  ;;  %v2229_v11 = vpop.xlane.xlu2 %2228  ;;  %2655 = vmatpush.bf16.msra.mxu3 %v3288_v63  ;;  %v3286_v26 = vld [vmem:[%s4327_s28 + $0x28] sm:$0xff] }
 0x835   : > { %v2315_v62 = vmul.f32 %v4933_v47, %v2306_v43  ;;  %v2237_v6 = vmul.f32 %v2229_v11, %v4365_v44  ;;  %v2338_v43 = vld [vmem:[%s4292_s12] sm:$0x3] }
 0x836   : > { %v2269_v60 = vsub.f32 1.5, %v2268_v50  ;;  %v3282_v50 = vld [vmem:[%s4327_s28 + $0x8] sm:$0xff]  ;;  %v4974_v11 = vperm.slane %v2338_v43, 0 }
 0x837   : > { %v3550_v10 = vpop.eup %3549  ;;  %v2324_v3 = vadd.f32 %v4938_v51, %v2315_v62  ;;  %v2243_v23 = vadd.f32 1e-06, %v2237_v6  ;;  %v3291_v62 = vld [vmem:[%s4327_s28 + $0x50] sm:$0xff] }
 0x838   : > { %v2270_v14 = vmul.f32 %v3548_v1, %v2269_v60  ;;  %v2276_v13 = vmul.f32 %v3550_v10, %v2242_v15  ;;  %vm2282_vm6 = vweird.f32 %v3550_v10  ;;  %2684 = vmatpush.bf16.msra.mxu0 %v3291_v62  ;;  %v3281_v60 = vld [vmem:[%s4327_s28] sm:$0xff] }
 0x839   : > { %3551 = vrsqrt.f32 %v2243_v23  ;;  %v2329_v8 = vpack.c.bf16 %v2324_v3, %v2323_v30  ;;  %vm2283_vm8 = vmor %vm2281_vm7, %vm2282_vm6  ;;  %vm2291_vm10 = vweird.f32 %v2243_v23  ;;  %v3290_v30 = vld [vmem:[%s4327_s28 + $0x48] sm:$0xff] }
 0x83a   : > { %v2277_v49 = vmul.f32 %v3550_v10, %v2276_v13  ;;  %v2274_v9 = vsel %vm2273_vm5, %v3548_v1, %v2270_v14 }
 0x83b   : > { %3188 = vmatmul.msk.bf16.vlgmr.msra.gmra.mxu1 %vm1036_vm2, %v2329_v8  ;;  %3191 = vmatmul.msk.bf16.vlgmr.msra.gmra.mxu2 %vm1036_vm2, %v2329_v8  ;;  %v2307_v25 = vmul.f32 %v2274_v9, %v4889_v54  ;;  %v3289_v8 = vld [vmem:[%s4327_s28 + $0x40] sm:$0xff] }
 0x83c   : > { %v2278_v42 = vmul.f32 0.5, %v2277_v49  ;;  %v2232_v18 = vpop.xlane.xlu0 %2231  ;;  %2685 = vmatpush.bf16.msra.mxu0 %v3290_v30 }
 0x83d   : > { %v2238_v20 = vmul.f32 %v2232_v18, %v4365_v44  ;;  %v2316_v27 = vmul.f32 %v4933_v47, %v2307_v25 }
 0x83e   : > { %v2279_v21 = vsub.f32 1.5, %v2278_v42 }
 0x83f   : > { %v3552_v36 = vpop.eup %3551  ;;  %v2244_v31 = vadd.f32 1e-06, %v2238_v20  ;;  %v2325_v33 = vadd.f32 %v4938_v51, %v2316_v27 }
 0x840   : > { %v2280_v16 = vmul.f32 %v3550_v10, %v2279_v21  ;;  %v2286_v32 = vmul.f32 %v3552_v36, %v2243_v23  ;;  %vm2292_vm9 = vweird.f32 %v3552_v36  ;;  %v4984_v23 = vperm.slane %v2338_v43, 1  ;;  %2686 = vmatpush.bf16.msra.mxu0 %v3289_v8 }
 0x841   : > { %3553 = vrsqrt.f32 %v2244_v31  ;;  %vm2293_vm11 = vmor %vm2291_vm10, %vm2292_vm9  ;;  %vm2301_vm13 = vweird.f32 %v2244_v31 }
 0x842   : > { %v2284_v34 = vsel %vm2283_vm8, %v3550_v10, %v2280_v16  ;;  %v2287_v35 = vmul.f32 %v3552_v36, %v2286_v32 }
 0x843   : > { %v2308_v40 = vmul.f32 %v2284_v34, %v4896_v29 }
 0x844   : > { %v2288_v28 = vmul.f32 0.5, %v2287_v35 }
 0x845   : > { %v2317_v41 = vmul.f32 %v4933_v47, %v2308_v40 }
 0x846   : > { %v2289_v59 = vsub.f32 1.5, %v2288_v28 }
 0x847   : > { %v3554_v0 = vpop.eup %3553  ;;  %v2326_v54 = vadd.f32 %v4938_v51, %v2317_v41 }
 0x848   : > { %v2290_v48 = vmul.f32 %v3552_v36, %v2289_v59  ;;  %v2296_v53 = vmul.f32 %v3554_v0, %v2244_v31  ;;  %vm2302_vm12 = vweird.f32 %v3554_v0 }
 0x849   : > { %v2330_v5 = vpack.c.bf16 %v2326_v54, %v2325_v33  ;;  %vm2303_vm14 = vmor %vm2301_vm13, %vm2302_vm12 }
 0x84a   : > { %v2297_v38 = vmul.f32 %v3554_v0, %v2296_v53  ;;  %v2294_v29 = vsel %vm2293_vm11, %v3552_v36, %v2290_v48 }
 0x84b   : > { %3189 = vmatmul.msk.bf16.gmra.mxu1 %vm1036_vm2, %v2330_v5  ;;  %3192 = vmatmul.msk.bf16.gmra.mxu2 %vm1036_vm2, %v2330_v5  ;;  %v2309_v46 = vmul.f32 %v2294_v29, %v4903_v57 }
 0x84c   : > { %v2298_v37 = vmul.f32 0.5, %v2297_v38 }
 0x84d   : > { %v2318_v56 = vmul.f32 %v4933_v47, %v2309_v46 }
 0x84e   : > { %v2299_v61 = vsub.f32 1.5, %v2298_v37 }
 0x84f   : > { %v2327_v52 = vadd.f32 %v4938_v51, %v2318_v56 }
 0x850   : > { %v2300_v19 = vmul.f32 %v3554_v0, %v2299_v61 }
 0x852   : > { %v2304_v55 = vsel %vm2303_vm14, %v3554_v0, %v2300_v19 }
 0x853   : > { %v2310_v1 = vmul.f32 %v2304_v55, %v4910_v45  ;;  %v3287_v45 = vld [vmem:[%s4327_s28 + $0x30] sm:$0xff] }
 0x854   : > { %2656 = vmatpush.bf16.msra.mxu3 %v3287_v45 }
 0x855   : > { %v2319_v15 = vmul.f32 %v4933_v47, %v2310_v1  ;;  %v3285_v47 = vld [vmem:[%s4327_s28 + $0x20] sm:$0xff] }
 0x857   : > { %v2328_v4 = vadd.f32 %v4938_v51, %v2319_v15  ;;  %v3283_v51 = vld [vmem:[%s4327_s28 + $0x10] sm:$0xff]  ;;  %s5191_s28 = sld [smem:[#allocation41_spill]] (!%p3245_p8) }
 0x858   : > { %2657 = vmatpush.bf16.msra.mxu3 %v3286_v26 }
 0x859   : > { %v2331_v57 = vpack.c.bf16 %v2328_v4, %v2327_v52 }
 0x85b   : > { %3190 = vmatmul.msk.bf16.gmra.mxu1 %vm1036_vm2, %v2331_v57  ;;  %3193 = vmatmul.msk.bf16.gmra.mxu2 %vm1036_vm2, %v2331_v57 }
 0x85c   : > { %2658 = vmatpush.bf16.msra.mxu3 %v3285_v47 }
 0x860   : > { %2659 = vmatpush.bf16.msra.mxu3 %v3284_v58 }
 0x864   : > { %2660 = vmatpush.bf16.msra.mxu3 %v3283_v51 }
 0x868   : > { %2661 = vmatpush.bf16.msra.mxu3 %v3282_v50 }
 0x86c   : > { %2662 = vmatpush.bf16.msra.mxu3 %v3281_v60 }
 0x8b8   : > { %v2392_v6 = vpop.f32.mrf.mxu1 }
 0x8b9   : > { %v4979_v10 = vadd.f32 %v2392_v6, %v4974_v11 }
 0x8bb   : > { %v2431_v3 = vmul.f32 %v4979_v10, %v4979_v10 }
 0x8bd   : > { %v2443_v14 = vmul.f32 %v2431_v3, %v4979_v10 }
 0x8be   : > { %v2416_v13 = vpop.f32.mrf.mxu2 }
 0x8bf   : > { %v2455_v49 = vmul.f32 0.044715, %v2443_v14  ;;  %v4989_v17 = vadd.f32 %v2416_v13, %v4984_v23 }
 0x8c0   : > { %v2394_v9 = vpop.f32.mrf.mxu1 }
 0x8c1   : > { %v2467_v42 = vadd.f32 %v2455_v49, %v4979_v10  ;;  %v2432_v18 = vmul.f32 %v4989_v17, %v4989_v17  ;;  %v2395_v20 = vadd.f32 %v2394_v9, %v4974_v11 }
 0x8c3   : > { %v2479_v21 = vmul.f32 0.7978846, %v2467_v42  ;;  %v2444_v36 = vmul.f32 %v2432_v18, %v4989_v17  ;;  %v2433_v25 = vmul.f32 %v2395_v20, %v2395_v20 }
 0x8c5   : > { %v2456_v31 = vmul.f32 0.044715, %v2444_v36  ;;  %v2445_v16 = vmul.f32 %v2433_v25, %v2395_v20  ;;  %3555 = vtanh.f32 %v2479_v21 }
 0x8c6   : > { %v2418_v32 = vpop.f32.mrf.mxu2 }
 0x8c7   : > { %v2468_v34 = vadd.f32 %v2456_v31, %v4989_v17  ;;  %v2457_v35 = vmul.f32 0.044715, %v2445_v16  ;;  %v4998_v40 = vadd.f32 %v2418_v32, %v4984_v23 }
 0x8c8   : > { %v2397_v27 = vpop.f32.mrf.mxu1 }
 0x8c9   : > { %v2480_v28 = vmul.f32 0.7978846, %v2468_v34  ;;  %v2469_v41 = vadd.f32 %v2457_v35, %v2395_v20  ;;  %v2434_v59 = vmul.f32 %v4998_v40, %v4998_v40  ;;  %v5003_v0 = vadd.f32 %v2397_v27, %v4974_v11 }
 0x8cb   : > { %v2481_v33 = vmul.f32 0.7978846, %v2469_v41  ;;  %v2446_v54 = vmul.f32 %v2434_v59, %v4998_v40  ;;  %v2435_v48 = vmul.f32 %v5003_v0, %v5003_v0  ;;  %3557 = vtanh.f32 %v2480_v28  ;;  %v3556_v53 = vpop.eup %3555 }
 0x8cc   : > { %v2503_v19 = vadd.f32 1.0, %v3556_v53 }
 0x8cd   : > { %3559 = vtanh.f32 %v2481_v33  ;;  %v2458_v5 = vmul.f32 0.044715, %v2446_v54  ;;  %v2447_v38 = vmul.f32 %v2435_v48, %v5003_v0 }
 0x8ce   : > { %v2421_v29 = vpop.f32.mrf.mxu2  ;;  %v2515_v47 = vmul.f32 0.5, %v2503_v19 }
 0x8cf   : > { %v2470_v37 = vadd.f32 %v2458_v5, %v4998_v40  ;;  %v2459_v61 = vmul.f32 0.044715, %v2447_v38  ;;  %v5011_v46 = vadd.f32 %v2421_v29, %v4984_v23 }
 0x8d0   : > { %v2399_v55 = vpop.f32.mrf.mxu1  ;;  %v2527_v14 = vmul.f32 %v2515_v47, %v4979_v10 }
 0x8d1   : > { %v2482_v1 = vmul.f32 0.7978846, %v2470_v37  ;;  %v2471_v56 = vadd.f32 %v2459_v61, %v5003_v0  ;;  %v2436_v15 = vmul.f32 %v5011_v46, %v5011_v46  ;;  %v5017_v52 = vadd.f32 %v2399_v55, %v4974_v11  ;;  %v3558_v4 = vpop.eup %3557 }
 0x8d2   : > { %v2504_v50 = vadd.f32 1.0, %v3558_v4 }
 0x8d3   : > { %v3560_v57 = vpop.eup %3559  ;;  %3561 = vtanh.f32 %v2482_v1  ;;  %v2448_v63 = vmul.f32 %v2436_v15, %v5011_v46  ;;  %v2437_v45 = vmul.f32 %v5017_v52, %v5017_v52  ;;  %v2483_v26 = vmul.f32 0.7978846, %v2471_v56 }
 0x8d4   : > { %v2505_v58 = vadd.f32 1.0, %v3560_v57  ;;  %v2516_v36 = vmul.f32 0.5, %v2504_v50 }
 0x8d5   : > { %v2460_v51 = vmul.f32 0.044715, %v2448_v63  ;;  %v2449_v43 = vmul.f32 %v2437_v45, %v5017_v52  ;;  %3563 = vtanh.f32 %v2483_v26 }
 0x8d6   : > { %v2517_v62 = vmul.f32 0.5, %v2505_v58  ;;  %v2423_v6 = vpop.f32.mrf.mxu2  ;;  %v2528_v28 = vmul.f32 %v2516_v36, %v4989_v17 }
 0x8d7   : > { %v2472_v60 = vadd.f32 %v2460_v51, %v5011_v46  ;;  %v2461_v30 = vmul.f32 0.044715, %v2449_v43  ;;  %v5025_v3 = vadd.f32 %v2423_v6, %v4984_v23 }
 0x8d8   : > { %v2529_v13 = vmul.f32 %v2517_v62, %v2395_v20  ;;  %v2402_v8 = vpop.f32.mrf.mxu1 }
 0x8d9   : > { %v3562_v49 = vpop.eup %3561  ;;  %v2484_v9 = vmul.f32 0.7978846, %v2472_v60  ;;  %v2473_v42 = vadd.f32 %v2461_v30, %v5017_v52  ;;  %v2438_v18 = vmul.f32 %v5025_v3, %v5025_v3  ;;  %v5032_v21 = vadd.f32 %v2402_v8, %v4974_v11 }
 0x8da   : > { %v2506_v25 = vadd.f32 1.0, %v3562_v49  ;;  %v2539_v31 = vpack.c.bf16 %v2529_v13, %v2527_v14 }
 0x8db   : > { %v2450_v16 = vmul.f32 %v2438_v18, %v5025_v3  ;;  %v2439_v10 = vmul.f32 %v5032_v21, %v5032_v21  ;;  %v2485_v20 = vmul.f32 0.7978846, %v2473_v42  ;;  %3565 = vtanh.f32 %v2484_v9  ;;  %v3564_v34 = vpop.eup %3563 }
 0x8dc   : > { %v2518_v32 = vmul.f32 0.5, %v2506_v25  ;;  %2663 = vmatmul.bf16.vlgmr.msra.gmra.mxu3 %v2539_v31  ;;  %v2507_v38 = vadd.f32 1.0, %v3564_v34 }
 0x8dd   : > { %v2462_v35 = vmul.f32 0.044715, %v2450_v16  ;;  %v2451_v27 = vmul.f32 %v2439_v10, %v5032_v21  ;;  %3567 = vtanh.f32 %v2485_v20 }
 0x8de   : > { %v2530_v41 = vmul.f32 %v2518_v32, %v4998_v40  ;;  %v2426_v59 = vpop.f32.mrf.mxu2  ;;  %v2519_v4 = vmul.f32 0.5, %v2507_v38 }
 0x8df   : > { %v2474_v33 = vadd.f32 %v2462_v35, %v5025_v3  ;;  %v2463_v54 = vmul.f32 0.044715, %v2451_v27  ;;  %v5042_v48 = vadd.f32 %v2426_v59, %v4984_v23 }
 0x8e0   : > { %v2540_v53 = vpack.c.bf16 %v2530_v41, %v2528_v28  ;;  %v2404_v5 = vpop.f32.mrf.mxu1  ;;  %v2531_v43 = vmul.f32 %v2519_v4, %v5003_v0 }
 0x8e1   : > { %v2486_v29 = vmul.f32 0.7978846, %v2474_v33  ;;  %v2475_v37 = vadd.f32 %v2463_v54, %v5032_v21  ;;  %v2440_v61 = vmul.f32 %v5042_v48, %v5042_v48  ;;  %v2405_v17 = vadd.f32 %v2404_v5, %v4974_v11  ;;  %v3566_v40 = vpop.eup %3565 }
 0x8e2   : > { %3242 = vmatmul.msk.bf16.vlgmr.msra.gmra.mxu0 %vm2645_vm15, %v2540_v53  ;;  %v2508_v47 = vadd.f32 1.0, %v3566_v40 }
 0x8e3   : > { %v3568_v19 = vpop.eup %3567  ;;  %3569 = vtanh.f32 %v2486_v29  ;;  %v2452_v55 = vmul.f32 %v2440_v61, %v5042_v48  ;;  %v2441_v1 = vmul.f32 %v2405_v17, %v2405_v17  ;;  %v2487_v56 = vmul.f32 0.7978846, %v2475_v37  ;;  %v3456_v29 = vld [vmem:[%s824_s30] ss:$0 sm:$0xff] }
 0x8e4   : > { %v2509_v15 = vadd.f32 1.0, %v3568_v19  ;;  %v2520_v8 = vmul.f32 0.5, %v2508_v47 }
 0x8e5   : > { %v2464_v57 = vmul.f32 0.044715, %v2452_v55  ;;  %v2453_v63 = vmul.f32 %v2441_v1, %v2405_v17  ;;  %3571 = vtanh.f32 %v2487_v56 }
 0x8e6   : > { %v2428_v45 = vpop.f32.mrf.mxu2  ;;  %v2521_v26 = vmul.f32 0.5, %v2509_v15 }
 0x8e7   : > { %v2476_v58 = vadd.f32 %v2464_v57, %v5042_v48  ;;  %v2465_v51 = vmul.f32 0.044715, %v2453_v63  ;;  %v2429_v11 = vadd.f32 %v2428_v45, %v4984_v23  ;;  %v2532_v23 = vmul.f32 %v2520_v8, %v5011_v46 }
 0x8e8   : > { %v2533_v50 = vmul.f32 %v2521_v26, %v5017_v52 }
 0x8e9   : > { %v3570_v62 = vpop.eup %3569  ;;  %v2488_v6 = vmul.f32 0.7978846, %v2476_v58  ;;  %v2477_v60 = vadd.f32 %v2465_v51, %v2405_v17  ;;  %v2442_v30 = vmul.f32 %v2429_v11, %v2429_v11 }
 0x8ea   : > { %v2541_v14 = vpack.c.bf16 %v2533_v50, %v2531_v43  ;;  %v2510_v13 = vadd.f32 1.0, %v3570_v62 }
 0x8eb   : > { %v2454_v49 = vmul.f32 %v2442_v30, %v2429_v11  ;;  %v2489_v9 = vmul.f32 0.7978846, %v2477_v60  ;;  %3573 = vtanh.f32 %v2488_v6  ;;  %v3572_v18 = vpop.eup %3571 }
 0x8ec   : > { %2668 = vmatmul.bf16.gmra.mxu3 %v2541_v14  ;;  %v2522_v42 = vmul.f32 0.5, %v2510_v13  ;;  %v2511_v31 = vadd.f32 1.0, %v3572_v18 }
 0x8ed   : > { %v2466_v36 = vmul.f32 0.044715, %v2454_v49  ;;  %3575 = vtanh.f32 %v2489_v9 }
 0x8ee   : > { %v2534_v0 = vmul.f32 %v2522_v42, %v5025_v3  ;;  %v2523_v34 = vmul.f32 0.5, %v2511_v31 }
 0x8ef   : > { %v2478_v52 = vadd.f32 %v2466_v36, %v2429_v11 }
 0x8f0   : > { %v2542_v25 = vpack.c.bf16 %v2534_v0, %v2532_v23  ;;  %v2535_v28 = vmul.f32 %v2523_v34, %v5032_v21 }
 0x8f1   : > { %v2490_v16 = vmul.f32 0.7978846, %v2478_v52  ;;  %v3574_v10 = vpop.eup %3573 }
 0x8f2   : > { %3243 = vmatmul.msk.bf16.gmra.mxu0 %vm2645_vm15, %v2542_v25  ;;  %v2512_v27 = vadd.f32 1.0, %v3574_v10 }
 0x8f3   : > { %v3576_v20 = vpop.eup %3575  ;;  %3577 = vtanh.f32 %v2490_v16 }
 0x8f4   : > { %v2513_v32 = vadd.f32 1.0, %v3576_v20  ;;  %v2524_v33 = vmul.f32 0.5, %v2512_v27 }
 0x8f6   : > { %v2525_v35 = vmul.f32 0.5, %v2513_v32  ;;  %v2536_v53 = vmul.f32 %v2524_v33, %v5042_v48 }
 0x8f8   : > { %v2537_v41 = vmul.f32 %v2525_v35, %v2405_v17 }
 0x8f9   : > { %v3578_v46 = vpop.eup %3577 }
 0x8fa   : > { %v2543_v59 = vpack.c.bf16 %v2537_v41, %v2535_v28  ;;  %v2514_v3 = vadd.f32 1.0, %v3578_v46 }
 0x8fc   : > { %2673 = vmatmul.bf16.gmra.mxu3 %v2543_v59  ;;  %v2526_v54 = vmul.f32 0.5, %v2514_v3 }
 0x8fe   : > { %v2538_v5 = vmul.f32 %v2526_v54, %v2429_v11 }
 0x900   : > { %v2544_v38 = vpack.c.bf16 %v2538_v5, %v2536_v53 }
 0x902   : > { %3244 = vmatmul.msk.bf16.gmra.mxu0 %vm2645_vm15, %v2544_v38 }
 0x95f   : > { %v2664_v37 = vpop.f32.mrf.mxu3  ;;  %v2688_v61 = vpop.f32.mrf.mxu0 }
 0x960   : > { %v2665_v40 = vadd.f32 %v3456_v29, %v2664_v37 }
 0x962   : > { %v2689_v19 = vadd.f32 %v2688_v61, %v2665_v40 }
 0x964   : > { %v2703_v21 = vadd.f32 %v2689_v19, %v4849_v12 }
 0x966   : > { %2709 = vst.msk [vmem:[#allocation2] sm:$0xff] %vm1036_vm2, %v2703_v21 }
 0x967   : > { %v2666_v17 = vpop.f32.mrf.mxu3  ;;  %v2690_v55 = vpop.f32.mrf.mxu0 }
 0x968   : > { %v2667_v1 = vadd.f32 %v3456_v29, %v2666_v17 }
 0x96a   : > { %v2691_v56 = vadd.f32 %v2690_v55, %v2667_v1 }
 0x96c   : > { %v2704_v48 = vadd.f32 %v2691_v56, %v4853_v7 }
 0x96e   : > { %2710 = vst.msk [vmem:[#allocation2 + $0x8] sm:$0xff] %vm1036_vm2, %v2704_v48 }
 0x96f   : > { %v2669_v15 = vpop.f32.mrf.mxu3  ;;  %v2693_v4 = vpop.f32.mrf.mxu0 }
 0x970   : > { %v2670_v57 = vadd.f32 %v3456_v29, %v2669_v15 }
 0x972   : > { %v2694_v63 = vadd.f32 %v2693_v4, %v2670_v57 }
 0x974   : > { %v2705_v45 = vadd.f32 %v2694_v63, %v4857_v24 }
 0x976   : > { %2711 = vst.msk [vmem:[#allocation2 + $0x10] sm:$0xff] %vm1036_vm2, %v2705_v45 }
 0x977   : > { %v2671_v26 = vpop.f32.mrf.mxu3  ;;  %v2695_v12 = vpop.f32.mrf.mxu0 }
 0x978   : > { %v2672_v47 = vadd.f32 %v3456_v29, %v2671_v26 }
 0x97a   : > { %v2696_v58 = vadd.f32 %v2695_v12, %v2672_v47 }
 0x97c   : > { %v2706_v51 = vadd.f32 %v2696_v58, %v4861_v22 }
 0x97e   : > { %2712 = vst.msk [vmem:[#allocation2 + $0x18] sm:$0xff] %vm1036_vm2, %v2706_v51 }
 0x97f   : > { %v2674_v11 = vpop.f32.mrf.mxu3  ;;  %v2698_v7 = vpop.f32.mrf.mxu0 }
 0x980   : > { %v2675_v43 = vadd.f32 %v3456_v29, %v2674_v11 }
 0x982   : > { %v2699_v50 = vadd.f32 %v2698_v7, %v2675_v43 }
 0x984   : > { %v2707_v62 = vadd.f32 %v2699_v50, %v4865_v39 }
 0x986   : > { %2713 = vst.msk [vmem:[#allocation2 + $0x20] sm:$0xff] %vm1036_vm2, %v2707_v62 }
 0x987   : > { %v2676_v6 = vpop.f32.mrf.mxu3  ;;  %v2700_v60 = vpop.f32.mrf.mxu0 }
 0x988   : > { %v2677_v24 = vadd.f32 %v3456_v29, %v2676_v6 }
 0x98a   : > { %v2701_v30 = vadd.f32 %v2700_v60, %v2677_v24  ;;  %2718 = sbr.rel (%p3245_p8) target bundleno = 2868 (0xb34), region = 144 }
 0x98c   : > { %v2708_v14 = vadd.f32 %v2701_v30, %v4869_v2 }
 0x98e   : > { %2714 = vst.msk [vmem:[#allocation2 + $0x28] sm:$0xff] %vm1036_vm2, %v2708_v14 }
 0x98f   : > { %v2723_v22 = vrot.slane %v2706_v51, 7  ;;  %vm2724_vm0 = vcmask 1041409   ;;  %vm2727_vm1 = vcmask 386048   ;;  %v3295_v25 = vld [vmem:[%s5191_s28 + $0x10] sm:$0xff]  ;;  %v3294_v31 = vld [vmem:[%s5191_s28 + $0x8] sm:$0xff]  ;;  %v3293_v16 = vld [vmem:[%s5191_s28] sm:$0xff] }
 0x990   : > { %2821 = vmatpush.bf16.msra.mxu0 %v3295_v25  ;;  %v3585_v59 = vld [vmem:[%s5192_s13] ss:$0 sm:$0xff] }
 0x991   : > { %v2725_v13 = vsel %vm2724_vm0, %v2723_v22, %v2703_v21  ;;  %v3587_v56 = vld [vmem:[%s5194_s8] ss:$0 sm:$0xff] }
 0x992   : > { %v2728_v8 = vsel %vm2727_vm1, %v2725_v13, 0.0 }
 0x993   : > { %2729 = vadd.xlane.f32.xlu0 %v2728_v8 }
 0x994   : > { %2822 = vmatpush.bf16.msra.mxu0 %v3294_v31 }
 0x998   : > { %2823 = vmatpush.bf16.msra.mxu0 %v3293_v16 }
 0xa06   : > { %v2730_v39 = vpop.xlane.xlu0 %2729 }
 0xa07   : > { %v2731_v49 = vmul.f32 %v2730_v39, %v4365_v44 }
 0xa09   : > { %v2733_v9 = vrot.slane %v2731_v49, 1  ;;  %v2736_v42 = vsub.f32 %v2703_v21, %v2731_v49 }
 0xa0b   : > { %v2737_v18 = vsub.f32 %v2706_v51, %v2733_v9  ;;  %v2738_v2 = vmul.f32 %v2736_v42, %v2736_v42 }
 0xa0d   : > { %v2739_v36 = vmul.f32 %v2737_v18, %v2737_v18 }
 0xa0f   : > { %v2742_v23 = vrot.slane %v2739_v36, 7 }
 0xa11   : > { %v2743_v0 = vsel %vm2724_vm0, %v2742_v23, %v2738_v2 }
 0xa12   : > { %v2745_v52 = vsel %vm2727_vm1, %v2743_v0, 0.0 }
 0xa13   : > { %2746 = vadd.xlane.f32.xlu0 %v2745_v52 }
 0xa86   : > { %v2747_v10 = vpop.xlane.xlu0 %2746 }
 0xa87   : > { %v2748_v20 = vmul.f32 %v2747_v10, %v4365_v44  ;;  %v3586_v44 = vld [vmem:[%s5193_s16] ss:$0 sm:$0xff] }
 0xa89   : > { %v2749_v32 = vadd.f32 1e-05, %v2748_v20 }
 0xa8b   : > { %3588 = vrsqrt.f32 %v2749_v32  ;;  %vm2756_vm4 = vweird.f32 %v2749_v32 }
 0xa91   : > { %v3589_v34 = vpop.eup %3588 }
 0xa92   : > { %v2751_v35 = vmul.f32 %v3589_v34, %v2749_v32  ;;  %vm2757_vm3 = vweird.f32 %v3589_v34 }
 0xa93   : > { %vm2758_vm5 = vmor %vm2756_vm4, %vm2757_vm3 }
 0xa94   : > { %v2752_v27 = vmul.f32 %v3589_v34, %v2751_v35 }
 0xa96   : > { %v2753_v28 = vmul.f32 0.5, %v2752_v27 }
 0xa98   : > { %v2754_v41 = vsub.f32 1.5, %v2753_v28 }
 0xa9a   : > { %v2755_v46 = vmul.f32 %v3589_v34, %v2754_v41 }
 0xa9c   : > { %v2759_v3 = vsel %vm2758_vm5, %v3589_v34, %v2755_v46 }
 0xa9d   : > { %v2761_v33 = vrot.slane %v2759_v3, 1  ;;  %v2764_v54 = vmul.f32 %v2759_v3, %v2736_v42 }
 0xa9f   : > { %v2765_v53 = vmul.f32 %v2761_v33, %v2737_v18  ;;  %v2769_v5 = vmul.f32 %v3585_v59, %v2764_v54 }
 0xaa1   : > { %v2770_v38 = vmul.f32 %v3585_v59, %v2765_v53  ;;  %v2774_v29 = vadd.f32 %v3586_v44, %v2769_v5 }
 0xaa3   : > { %v2775_v37 = vadd.f32 %v3586_v44, %v2770_v38  ;;  %v2776_v61 = vpack.c.bf16 %v2774_v29, %v2774_v29 }
 0xaa5   : > { %v2777_v40 = vpack.c.bf16 %v2775_v37, %v2775_v37  ;;  %v2790_v21 = vunpack.c.l.b16 %v2776_v61 }
 0xaa7   : > { %v2791_v19 = vunpack.c.l.b16 %v2777_v40 }
 0xaa9   : > { %v2792_v17 = vrot.slane %v2791_v19, 7 }
 0xaab   : > { %v2793_v55 = vsel %vm2724_vm0, %v2792_v17, %v2790_v21 }
 0xaac   : > { %v2794_v1 = vpack.c.b16 %v2793_v55, %v2793_v55 }
 0xaae   : > { %3258 = vmatmul.msk.bf16.vlgmr.msra.gmra.mxu0 %vm1036_vm2, %v2794_v1 }
 0xb2b   : > { %v2825_v48 = vpop.f32.mrf.mxu0 }
 0xb2c   : > { %v2826_v15 = vadd.f32 %v3587_v56, %v2825_v48 }
 0xb2e   : > { %2829 = vst [vmem:[#allocation18] sm:$0x3] %v2826_v15 }
 0xb33   : > { %v2827_v4 = vpop.f32.mrf.mxu0 }
 0xb34 PF: > { %p3369_p9 = scmp.eq.s32.totalorder %s4085_s2, 1  ;;  %s3960_s4 = smov [#allocation18]  }
 0xb35   : > { %s2836_s1 = sshll.u32 %s3960_s4, 4  ;;  %s5195_s18 = sld [smem:[#allocation43_spill]]  ;;  %s2837_s1 = int_to_ptr.vmem [resolvable:$true] %s2836_s1 }
 0xb3b   : > { %s2838_s20 = sshll.u32 %s5195_s18, 4  ;;  %s2839_s20 = int_to_ptr.hbm [resolvable:$true] %s2838_s20 }
 0xb3c   : > { %3330 = dma.vmem_to_hbm [thread:$0]  (%p3369_p9), %s2837_s1, 32, %s2839_s20, [#allocation5]  }
 0xb3d   : > { %3925 = dma.done.wait (%p3369_p9), [#allocation5], 32  }
 0xb3e   : > { %3927 = vsyncadd (%p3369_p9), [#allocation5], 4294967264 }
 0xb3f PF: > { %s5196_s24 = sld [smem:[#allocation26_spill]]  ;;  %s5199_s1 = smov %s3934_s22 }
 0xb40   : > { %s5197_s6 = sld [smem:[#allocation25_spill]] }
 0xb41   : > { %s5198_s23 = sld [smem:[#allocation27_spill]] }
 0xb45   : > { %p39_p10 = scmp.ge.s32.totalorder %s5196_s24, 4  }
 0xb46   : > { %s5200_s22 = smov %s5197_s6 }
 0xb47   :  { %41 = sbr.rel (!%p39_p10) target bundleno = 27 (0x1b), region = 232 }
 0xb4c   :  { %2852 = vsyncpa [#allocation4], 1 }
 0xb4d   :  { %2854 = vsyncpa [#allocation4 + $0x1], 1 }
 0xb4e   :  { %2855 = vsyncpa [#allocation7], 1 }
 0xb4f   :  { %2856 = vsyncpa [#allocation10], 1 }
 0xb50   :  { %2858 = vsyncpa [#allocation10 + $0x1], 1 }
 0xb51   :  { %2859 = vsyncpa [#allocation13], 1 }
 0xb52   :  { %2861 = vsyncpa [#allocation13 + $0x1], 1 }
 0xb53   :  { %2862 = vsyncpa [#allocation16], 1 }
 0xb54   :  { %2864 = vsyncpa [#allocation16 + $0x1], 1 }
 0xb55   :  { %2865 = vsyncpa [#allocation5], 1 }
 0xb56   :  { %2867 = vsyncpa [#allocation5 + $0x1], 1 }

</bundles_post_ra>
